<compile_context>
chip_gen: v7x
topology: tpu7x:2x2x1
jax: 0.10.0
libtpu: 0.0.40
codegen_flags: <defaults>
</compile_context>

<pallas_src>
import jax
import jax.numpy as jnp
from jax.experimental import pallas as pl
from jax.experimental.pallas import tpu as pltpu

_LANES = 128      # TPU vreg lane width; minor-dim tiles should be multiples of this.
_SUBLANES = 8     # f32 sublane granularity.


def _round_up(x, m):
    return (x + m - 1) // m * m


def _distmult_kernel(table_ref, h_ref, r_ref, t_ref, nh_ids_ref, nt_ids_ref,
                     fact_ref, hpred_ref, tpred_ref):
    """Scores one batch tile (TB positive triples + all their negatives).

    table_ref   : (E, D)        entity embedding table, VMEM-resident
    h/r/t_ref   : (TB, D)       gathered positive head / relation / tail
    nh/nt_ids   : (TB * NP, 1)  int32 negative entity ids (b-major, n-minor)
    fact_ref    : (TB, 128)     lane-dense slab; column 0 holds the fact score
    hpred/tpred : (TB, NP)      negative-sample scores (NP = N padded to 128k)
    """
    table = table_ref[...].astype(jnp.float32)            # (E, D)
    h = h_ref[...].astype(jnp.float32)                     # (TB, D)
    r = r_ref[...].astype(jnp.float32)
    t = t_ref[...].astype(jnp.float32)

    tb, d = h.shape
    e = table.shape[0]
    tbn = nh_ids_ref.shape[0]
    np_ = tbn // tb                                         # padded N per tile

    # Shared factors, hoisted (computed once per tile, reused by two scores).
    rt = r * t                                              # (TB, D)
    hr = h * r                                              # (TB, D)

    # fact_score = sum_d h*r*t.  Broadcast across all 128 lanes so the store
    # is an unmasked lane-dense vst; the wrapper slices out column 0.
    fact = jnp.sum(h * rt, axis=-1, keepdims=True)          # (TB, 1)
    fact_ref[...] = jnp.broadcast_to(fact, fact_ref.shape)

    # Fused negative-embedding gather: one_hot(ids) @ table on the MXU.
    # The table is VMEM-resident, so the gathered (TB, NP, D) embeddings are
    # produced directly in VMEM and never touch HBM.  This is the small-table
    # strategy; the MXU is idle in this kernel, so the gather matmul is
    # effectively free (the score reduction itself stays on the VPU).
    # TODO(synk): for entity tables too large for VMEM, replace this with a
    # scalar-prefetched-id DMA gather (pltpu.make_async_copy) per tile.
    iota_e = jax.lax.broadcasted_iota(jnp.int32, (tbn, e), 1)

    def gather_rows(ids_ref):
        ids = ids_ref[...]                                  # (TB*NP, 1) int32
        onehot = jnp.where(ids == iota_e, 1.0, 0.0)         # (TB*NP, E) f32
        rows = jnp.dot(onehot, table,
                       preferred_element_type=jnp.float32)  # (TB*NP, D)
        return rows.reshape(tb, np_, d)                     # split-major reshape (free)

    neg_h = gather_rows(nh_ids_ref)                         # (TB, NP, D)
    neg_t = gather_rows(nt_ids_ref)                         # (TB, NP, D)

    # DistMult score reduction: broadcast-multiply + lane-axis sum on VPU/XLU
    # (no MXU reformulation of the (N, D) x (D,) reduction).
    hpred_ref[...] = jnp.sum(neg_h * rt[:, None, :], axis=-1)   # (TB, NP)
    tpred_ref[...] = jnp.sum(neg_t * hr[:, None, :], axis=-1)   # (TB, NP)


def distmult_forward(entity_emb, relation_emb, positive_samples,
                     negative_heads, negative_tails):
    """JAX/Pallas equivalent of DistMult.forward.

    entity_emb       : (numEntity, D)   f32 (or bf16)
    relation_emb     : (numRelation, D) f32 (or bf16)
    positive_samples : (B, 3) int32  [head_id, relation_id, tail_id]
    negative_heads / negative_tails : (B, N) int32
    Returns (fact_score (B, 1), head_prediction_score (B, N),
             tail_prediction_score (B, N)), all float32.
    """
    num_entity, emb_dim = entity_emb.shape
    batch, n_neg = negative_heads.shape

    # ---- tiling ----------------------------------------------------------
    # N is padded to a multiple of 128 so the hpred/tpred tiles (and their
    # stores) are lane-dense.  The batch is tiled TB rows per grid step; the
    # per-step VMEM footprint is dominated by the two (TB, NP, D) gathered
    # tensors, so TB stays modest and everything fits the 32 MiB default
    # scoped-VMEM limit on every generation (incl. v7x's 64 MiB physical
    # VMEM).  For much larger N*D: shrink TB / chunk NP and raise
    # pltpu.CompilerParams(vmem_limit_bytes=...) (v6e can go to ~100 MiB of
    # buffers, keep <= ~32 MiB on v7x).
    n_pad = max(_round_up(n_neg, _LANES), _LANES)
    tile_b = min(_round_up(batch, _SUBLANES), 32)
    b_pad = _round_up(batch, tile_b)
    grid = (b_pad // tile_b,)

    head_id = positive_samples[:, 0]
    rel_id = positive_samples[:, 1]
    tail_id = positive_samples[:, 2]

    # Positive-triple gathers are tiny ((B, D)); keep them in plain JAX.
    h = jnp.take(entity_emb, head_id, axis=0)
    r = jnp.take(relation_emb, rel_id, axis=0)
    t = jnp.take(entity_emb, tail_id, axis=0)

    pad_b = b_pad - batch
    h = jnp.pad(h, ((0, pad_b), (0, 0)))
    r = jnp.pad(r, ((0, pad_b), (0, 0)))
    t = jnp.pad(t, ((0, pad_b), (0, 0)))

    # Only the negative *ids* go to the kernel (no (B, N, D) gather in HBM).
    # Pad with id 0 (a valid row); padded scores are sliced off below.
    # b-major / n-minor flat layout so each grid step reads one contiguous
    # (TB*NP, 1) int32 block of ids.
    nh_ids = jnp.pad(negative_heads.astype(jnp.int32),
                     ((0, pad_b), (0, n_pad - n_neg))).reshape(b_pad * n_pad, 1)
    nt_ids = jnp.pad(negative_tails.astype(jnp.int32),
                     ((0, pad_b), (0, n_pad - n_neg))).reshape(b_pad * n_pad, 1)

    n_per_tile = tile_b * n_pad

    out_shape = (
        jax.ShapeDtypeStruct((b_pad, _LANES), jnp.float32),   # fact (lane-padded)
        jax.ShapeDtypeStruct((b_pad, n_pad), jnp.float32),    # head prediction
        jax.ShapeDtypeStruct((b_pad, n_pad), jnp.float32),    # tail prediction
    )
    in_specs = [
        # Entity table: full array, constant index_map -> DMA'd once and kept
        # VMEM-resident across the whole grid.
        pl.BlockSpec((num_entity, emb_dim), lambda i: (0, 0)),
        pl.BlockSpec((tile_b, emb_dim), lambda i: (i, 0)),     # h
        pl.BlockSpec((tile_b, emb_dim), lambda i: (i, 0)),     # r
        pl.BlockSpec((tile_b, emb_dim), lambda i: (i, 0)),     # t
        pl.BlockSpec((n_per_tile, 1), lambda i: (i, 0)),       # neg head ids
        pl.BlockSpec((n_per_tile, 1), lambda i: (i, 0)),       # neg tail ids
    ]
    out_specs = (
        pl.BlockSpec((tile_b, _LANES), lambda i: (i, 0)),
        pl.BlockSpec((tile_b, n_pad), lambda i: (i, 0)),
        pl.BlockSpec((tile_b, n_pad), lambda i: (i, 0)),
    )

    fact_pad, hpred_pad, tpred_pad = pl.pallas_call(
        _distmult_kernel,
        out_shape=out_shape,
        grid=grid,
        in_specs=in_specs,
        out_specs=out_specs,
        compiler_params=pltpu.CompilerParams(
            # Each grid step owns a disjoint slice of every output, so the
            # batch axis is parallel (shardable across v7x's two TensorCores).
            dimension_semantics=("parallel",),
        ),
    )(entity_emb, h, r, t, nh_ids, nt_ids)

    return (fact_pad[:batch, :1],
            hpred_pad[:batch, :n_neg],
            tpred_pad[:batch, :n_neg])


def xavier_uniform(key, shape):
    fan_in, fan_out = shape
    bound = (6.0 / (fan_in + fan_out)) ** 0.5
    return jax.random.uniform(key, shape, jnp.float32, minval=-bound, maxval=bound)


if __name__ == "__main__":
    # Small, deterministic configuration (matches the module's forward pass).
    num_entity = 64
    num_relation = 16
    embedding_dim = 128
    batch_size = 8
    neg_sample_size = 16

    key = jax.random.PRNGKey(0)
    k_ent, k_rel, k_ph, k_pr, k_pt, k_nh, k_nt = jax.random.split(key, 7)

    entity_emb = xavier_uniform(k_ent, (num_entity, embedding_dim))
    relation_emb = xavier_uniform(k_rel, (num_relation, embedding_dim))

    positive_samples = jnp.concatenate([
        jax.random.randint(k_ph, (batch_size, 1), 0, num_entity, jnp.int32),
        jax.random.randint(k_pr, (batch_size, 1), 0, num_relation, jnp.int32),
        jax.random.randint(k_pt, (batch_size, 1), 0, num_entity, jnp.int32),
    ], axis=1)                                                   # (B, 3)
    negative_heads = jax.random.randint(
        k_nh, (batch_size, neg_sample_size), 0, num_entity, jnp.int32)
    negative_tails = jax.random.randint(
        k_nt, (batch_size, neg_sample_size), 0, num_entity, jnp.int32)

    fwd = jax.jit(distmult_forward)
    fact, hpred, tpred = fwd(entity_emb, relation_emb, positive_samples,
                             negative_heads, negative_tails)
    jax.block_until_ready((fact, hpred, tpred))

    # Pure-JAX reference (same semantics as the PyTorch module).
    h_ref = jnp.take(entity_emb, positive_samples[:, 0], axis=0)[:, None, :]
    r_ref = jnp.take(relation_emb, positive_samples[:, 1], axis=0)[:, None, :]
    t_ref = jnp.take(entity_emb, positive_samples[:, 2], axis=0)[:, None, :]
    nh_ref = jnp.take(entity_emb, negative_heads.reshape(-1), axis=0).reshape(
        batch_size, neg_sample_size, embedding_dim)
    nt_ref = jnp.take(entity_emb, negative_tails.reshape(-1), axis=0).reshape(
        batch_size, neg_sample_size, embedding_dim)
    fact_ref = (h_ref * r_ref * t_ref).sum(axis=2)
    hpred_ref = (nh_ref * r_ref * t_ref).sum(axis=2)
    tpred_ref = (h_ref * r_ref * nt_ref).sum(axis=2)

    assert fact.shape == (batch_size, 1)
    assert hpred.shape == (batch_size, neg_sample_size)
    assert tpred.shape == (batch_size, neg_sample_size)

    # The fact score is a pure f32 VPU path -> tight tolerance.  The negative
    # scores route their gather through the MXU (one-hot @ table); the
    # tolerance leaves headroom for the MXU's f32 multi-pass rounding
    # (in practice the result is accurate to ~1e-6).
    assert jnp.allclose(fact, fact_ref, atol=1e-5), \
        float(jnp.abs(fact - fact_ref).max())
    assert jnp.allclose(hpred, hpred_ref, atol=2e-3, rtol=2e-3), \
        float(jnp.abs(hpred - hpred_ref).max())
    assert jnp.allclose(tpred, tpred_ref, atol=2e-3, rtol=2e-3), \
        float(jnp.abs(tpred - tpred_ref).max())

    print("KERNEL_OK")
</pallas_src>

<mosaic_0001>
module attributes {stable_mosaic.version = 11 : i64} {
  func.func @_distmult_kernel(%arg0: i32, %arg1: memref<64x128xf32, #tpu.memory_space<vmem>>, %arg2: memref<8x128xf32, #tpu.memory_space<vmem>>, %arg3: memref<8x128xf32, #tpu.memory_space<vmem>>, %arg4: memref<8x128xf32, #tpu.memory_space<vmem>>, %arg5: memref<1024x1xi32, #tpu.memory_space<vmem>>, %arg6: memref<1024x1xi32, #tpu.memory_space<vmem>>, %arg7: memref<8x128xf32, #tpu.memory_space<vmem>>, %arg8: memref<8x128xf32, #tpu.memory_space<vmem>>, %arg9: memref<8x128xf32, #tpu.memory_space<vmem>>) attributes {dimension_semantics = [#tpu.dimension_semantics<parallel>], iteration_bounds = array<i64: 1>, scalar_prefetch = 0 : i64, scratch_operands = 0 : i64, tpu.core_type = #tpu.core_type<tc>, window_params = [{pipeline_mode = #tpu.pipeline_mode<synchronous>, transform_indices = @transform_0, window_bounds = array<i64: 64, 128>}, {transform_indices = @transform_1, window_bounds = array<i64: 8, 128>}, {transform_indices = @transform_2, window_bounds = array<i64: 8, 128>}, {transform_indices = @transform_3, window_bounds = array<i64: 8, 128>}, {transform_indices = @transform_4, window_bounds = array<i64: 1024, 1>}, {transform_indices = @transform_5, window_bounds = array<i64: 1024, 1>}, {transform_indices = @transform_6, window_bounds = array<i64: 8, 128>}, {transform_indices = @transform_7, window_bounds = array<i64: 8, 128>}, {transform_indices = @transform_8, window_bounds = array<i64: 8, 128>}]} {
    %c0 = arith.constant 0 : index
    %c0_0 = arith.constant 0 : index
    %0 = vector.load %arg1[%c0, %c0_0] : memref<64x128xf32, #tpu.memory_space<vmem>>, vector<64x128xf32>
    %c0_1 = arith.constant 0 : index
    %c0_2 = arith.constant 0 : index
    %1 = vector.load %arg2[%c0_1, %c0_2] : memref<8x128xf32, #tpu.memory_space<vmem>>, vector<8x128xf32>
    %c0_3 = arith.constant 0 : index
    %c0_4 = arith.constant 0 : index
    %2 = vector.load %arg3[%c0_3, %c0_4] : memref<8x128xf32, #tpu.memory_space<vmem>>, vector<8x128xf32>
    %c0_5 = arith.constant 0 : index
    %c0_6 = arith.constant 0 : index
    %3 = vector.load %arg4[%c0_5, %c0_6] : memref<8x128xf32, #tpu.memory_space<vmem>>, vector<8x128xf32>
    %4 = arith.mulf %2, %3 : vector<8x128xf32>
    %5 = arith.mulf %1, %2 : vector<8x128xf32>
    %6 = arith.mulf %1, %4 : vector<8x128xf32>
    %cst = arith.constant dense<0.000000e+00> : vector<8xf32>
    %7 = vector.multi_reduction <add>, %6, %cst [1] : vector<8x128xf32> to vector<8xf32>
    %8 = vector.shape_cast %7 : vector<8xf32> to vector<8x1xf32>
    %9 = vector.shape_cast %8 : vector<8x1xf32> to vector<8x1xf32>
    %10 = vector.broadcast %9 : vector<8x1xf32> to vector<8x128xf32>
    %c0_7 = arith.constant 0 : index
    %c0_8 = arith.constant 0 : index
    %11 = vector.load %arg7[%c0_7, %c0_8] : memref<8x128xf32, #tpu.memory_space<vmem>>, vector<8x128xf32>
    tpu.vector_store %arg7[%c0_7, %c0_8], %10 {strides = array<i32>} : memref<8x128xf32, #tpu.memory_space<vmem>>, vector<8x128xf32>,
    %12 = tpu.iota {dimensions = array<i32: 1>} : vector<1024x64xi32>
    %c0_9 = arith.constant 0 : index
    %c0_10 = arith.constant 0 : index
    %13 = vector.load %arg5[%c0_9, %c0_10] : memref<1024x1xi32, #tpu.memory_space<vmem>>, vector<1024x1xi32>
    %14 = vector.broadcast %13 : vector<1024x1xi32> to vector<1024x64xi32>
    %15 = arith.cmpi eq, %14, %12 : vector<1024x64xi32>
    %cst_11 = arith.constant 1.000000e+00 : f32
    %cst_12 = arith.constant 0.000000e+00 : f32
    %16 = vector.broadcast %cst_11 : f32 to vector<1024x64xf32>
    %17 = vector.broadcast %cst_12 : f32 to vector<1024x64xf32>
    %18 = arith.select %15, %16, %17 : vector<1024x64xi1>, vector<1024x64xf32>
    %cst_13 = arith.constant dense<0.000000e+00> : vector<1024x128xf32>
    %19 = tpu.matmul %18, %0, %cst_13 {dimension_numbers = #tpu.dot_dimension_numbers<[1], [0], [0], [1], [0, 0, 1, 1], [], []>} : vector<1024x64xf32>, vector<64x128xf32>, vector<1024x128xf32> -> vector<1024x128xf32>
    %20 = vector.shape_cast %19 : vector<1024x128xf32> to vector<8x128x128xf32>
    %c0_14 = arith.constant 0 : index
    %c0_15 = arith.constant 0 : index
    %21 = vector.load %arg6[%c0_14, %c0_15] : memref<1024x1xi32, #tpu.memory_space<vmem>>, vector<1024x1xi32>
    %22 = vector.broadcast %21 : vector<1024x1xi32> to vector<1024x64xi32>
    %23 = arith.cmpi eq, %22, %12 : vector<1024x64xi32>
    %cst_16 = arith.constant 1.000000e+00 : f32
    %cst_17 = arith.constant 0.000000e+00 : f32
    %24 = vector.broadcast %cst_16 : f32 to vector<1024x64xf32>
    %25 = vector.broadcast %cst_17 : f32 to vector<1024x64xf32>
    %26 = arith.select %23, %24, %25 : vector<1024x64xi1>, vector<1024x64xf32>
    %cst_18 = arith.constant dense<0.000000e+00> : vector<1024x128xf32>
    %27 = tpu.matmul %26, %0, %cst_18 {dimension_numbers = #tpu.dot_dimension_numbers<[1], [0], [0], [1], [0, 0, 1, 1], [], []>} : vector<1024x64xf32>, vector<64x128xf32>, vector<1024x128xf32> -> vector<1024x128xf32>
    %28 = vector.shape_cast %27 : vector<1024x128xf32> to vector<8x128x128xf32>
    %29 = vector.shape_cast %4 : vector<8x128xf32> to vector<8x1x128xf32>
    %30 = vector.broadcast %29 : vector<8x1x128xf32> to vector<8x128x128xf32>
    %31 = arith.mulf %20, %30 : vector<8x128x128xf32>
    %cst_19 = arith.constant dense<0.000000e+00> : vector<8x128xf32>
    %32 = vector.multi_reduction <add>, %31, %cst_19 [2] : vector<8x128x128xf32> to vector<8x128xf32>
    %c0_20 = arith.constant 0 : index
    %c0_21 = arith.constant 0 : index
    %33 = vector.load %arg8[%c0_20, %c0_21] : memref<8x128xf32, #tpu.memory_space<vmem>>, vector<8x128xf32>
    tpu.vector_store %arg8[%c0_20, %c0_21], %32 {strides = array<i32>} : memref<8x128xf32, #tpu.memory_space<vmem>>, vector<8x128xf32>,
    %34 = vector.shape_cast %5 : vector<8x128xf32> to vector<8x1x128xf32>
    %35 = vector.broadcast %34 : vector<8x1x128xf32> to vector<8x128x128xf32>
    %36 = arith.mulf %28, %35 : vector<8x128x128xf32>
    %cst_22 = arith.constant dense<0.000000e+00> : vector<8x128xf32>
    %37 = vector.multi_reduction <add>, %36, %cst_22 [2] : vector<8x128x128xf32> to vector<8x128xf32>
    %c0_23 = arith.constant 0 : index
    %c0_24 = arith.constant 0 : index
    %38 = vector.load %arg9[%c0_23, %c0_24] : memref<8x128xf32, #tpu.memory_space<vmem>>, vector<8x128xf32>
    tpu.vector_store %arg9[%c0_23, %c0_24], %37 {strides = array<i32>} : memref<8x128xf32, #tpu.memory_space<vmem>>, vector<8x128xf32>,
    return
  }
  func.func @transform_0(%arg0: i32) -> (i32, i32) {
    %c0_i32 = arith.constant 0 : i32
    %c0_i32_0 = arith.constant 0 : i32
    %c0_i32_1 = arith.constant 0 : i32
    return %c0_i32, %c0_i32_0 : i32, i32
  }
  func.func @transform_1(%arg0: i32) -> (i32, i32) {
    %c0_i32 = arith.constant 0 : i32
    %c0_i32_0 = arith.constant 0 : i32
    return %arg0, %c0_i32 : i32, i32
  }
  func.func @transform_2(%arg0: i32) -> (i32, i32) {
    %c0_i32 = arith.constant 0 : i32
    %c0_i32_0 = arith.constant 0 : i32
    return %arg0, %c0_i32 : i32, i32
  }
  func.func @transform_3(%arg0: i32) -> (i32, i32) {
    %c0_i32 = arith.constant 0 : i32
    %c0_i32_0 = arith.constant 0 : i32
    return %arg0, %c0_i32 : i32, i32
  }
  func.func @transform_4(%arg0: i32) -> (i32, i32) {
    %c0_i32 = arith.constant 0 : i32
    %c0_i32_0 = arith.constant 0 : i32
    return %arg0, %c0_i32 : i32, i32
  }
  func.func @transform_5(%arg0: i32) -> (i32, i32) {
    %c0_i32 = arith.constant 0 : i32
    %c0_i32_0 = arith.constant 0 : i32
    return %arg0, %c0_i32 : i32, i32
  }
  func.func @transform_6(%arg0: i32) -> (i32, i32) {
    %c0_i32 = arith.constant 0 : i32
    %c0_i32_0 = arith.constant 0 : i32
    return %arg0, %c0_i32 : i32, i32
  }
  func.func @transform_7(%arg0: i32) -> (i32, i32) {
    %c0_i32 = arith.constant 0 : i32
    %c0_i32_0 = arith.constant 0 : i32
    return %arg0, %c0_i32 : i32, i32
  }
  func.func @transform_8(%arg0: i32) -> (i32, i32) {
    %c0_i32 = arith.constant 0 : i32
    %c0_i32_0 = arith.constant 0 : i32
    return %arg0, %c0_i32 : i32, i32
  }
}

</mosaic_0001>

<bundles_post_ra>
// kernel: distmult_forward.1
= control target key start
LH: loop header
LB: loop body
LE: loop exit
PB: predicated region body
PF: predicated region fallthrough
CT: control target
= control target key end

     0   :  { %14 = vsyncpa [#allocation3], 0  ;;  %v7348_v3 = vmov 0   ;;  %s11191_s0 = inlined_call_operand.vmem [shape: f32[64,128], index: 0, kind: input, shape index: {}]   ;;  %s11192_s1 = inlined_call_operand.vmem [shape: f32[8,128], index: 1, kind: input, shape index: {}]   ;;  %s11193_s2 = inlined_call_operand.vmem [shape: f32[8,128], index: 2, kind: input, shape index: {}]   ;;  %s11194_s3 = inlined_call_operand.vmem [shape: f32[8,128], index: 3, kind: input, shape index: {}]   ;;  %s11195_s4 = inlined_call_operand.vmem [shape: s32[1024,1], index: 4, kind: input, shape index: {}]   ;;  %s11196_s5 = inlined_call_operand.vmem [shape: s32[1024,1], index: 5, kind: input, shape index: {}]   ;;  %s11197_s6 = inlined_call_operand.vmem [shape: f32[8,128], index: 6, kind: output, shape index: {0}]   ;;  %s11198_s7 = inlined_call_operand.hbm [shape: f32[8,128], index: 7, kind: output, shape index: {1}]   ;;  %s11199_s8 = inlined_call_operand.hbm [shape: f32[8,128], index: 8, kind: output, shape index: {2}]  }
   0x1   :  { %v48_v0 = vld [vmem:[%s11195_s4 + $0x8] sm:$0xff]  ;;  %v36_v1 = vld [vmem:[%s11192_s1] sm:$0xff]  ;;  %7299 = vset.pattern.permute.xlu1 %v7348_v3  ;;  %7298 = vset.pattern.permute.xlu0 %v7348_v3  ;;  %v49_v7 = vld [vmem:[%s11195_s4 + $0x10] sm:$0xff] }
   0x2   :  { %v37_v2 = vld [vmem:[%s11193_s2] sm:$0xff]  ;;  %179 = vperm.xlu1 %7299, %v48_v0   ;;  %v50_v9 = vld [vmem:[%s11195_s4 + $0x18] sm:$0xff]  ;;  %v52_v11 = vld [vmem:[%s11195_s4 + $0x28] sm:$0xff] }
   0x3   :  { %v38_v4 = vld [vmem:[%s11194_s3] sm:$0xff]  ;;  %v7410_v5 = vmul.f32 %v37_v2, %v36_v1  ;;  %v53_v12 = vld [vmem:[%s11195_s4 + $0x30] sm:$0xff]  ;;  %v54_v14 = vld [vmem:[%s11195_s4 + $0x38] sm:$0xff] }
   0x4   :  { %v7412_v6 = vmul.f32 %v38_v4, %v37_v2  ;;  %v51_v10 = vld [vmem:[%s11195_s4 + $0x20] sm:$0xff]  ;;  %v29_v15 = vld [vmem:[%s11191_s0 + $0x8] sm:$0xff]  ;;  %v30_v17 = vld [vmem:[%s11191_s0 + $0x10] sm:$0xff] }
   0x5   :  { %11217 = vst [vmem:[#allocation8_spill] sm:$0xff] %v7410_v5  ;;  %v28_v13 = vld [vmem:[%s11191_s0] sm:$0xff]  ;;  %v31_v18 = vld [vmem:[%s11191_s0 + $0x18] sm:$0xff]  ;;  %v33_v22 = vld [vmem:[%s11191_s0 + $0x28] sm:$0xff] }
   0x6   :  { %11218 = vst [vmem:[#allocation9_spill] sm:$0xff] %v7412_v6  ;;  %v41_v8 = vmul.f32 %v7412_v6, %v36_v1  ;;  %182 = vperm.xlu1 %7299, %v49_v7   ;;  %v7261_v16 = vpack.c.bf16 %v29_v15, %v28_v13  ;;  %v47_v19 = vld [vmem:[%s11195_s4] sm:$0xff]  ;;  %v7265_v20 = vpack.c.bf16 %v31_v18, %v30_v17 }
   0x7   :  { %v32_v21 = vld [vmem:[%s11191_s0 + $0x20] sm:$0xff] }
   0x8   :  { %42 = vadd.xlane.f32.xlu0 %v41_v8  ;;  %7262 = vmatprep.subr.bf16.mxu0 %v7261_v16  ;;  %v55_v23 = vld [vmem:[%s11195_s4 + $0x40] sm:$0xff] }
   0x9   :  { %7264 = vmatpush3.bf16.msra.mxu0 %v7261_v16  ;;  %7278 = vmatprep.subr.bf16.mxu1 %v7261_v16 }
   0xa   :  { %185 = vperm.xlu1 %7299, %v50_v9  }
   0xe   :  { %188 = vperm.xlu1 %7299, %v51_v10  }
  0x12   :  { %191 = vperm.xlu1 %7299, %v52_v11  }
  0x16   :  { %194 = vperm.xlu1 %7299, %v53_v12  }
  0x1a   :  { %197 = vperm.xlu1 %7299, %v54_v14  }
  0x1b   :  { %15 = vsyncpa [#allocation5], 0  ;;  %7266 = vmatprep.subr.bf16.mxu0 %v7265_v20  ;;  %v7269_v24 = vpack.c.bf16 %v33_v22, %v32_v21  ;;  %v60_v25 = vld [vmem:[%s11195_s4 + $0x68] sm:$0xff]  ;;  %v34_v26 = vld [vmem:[%s11191_s0 + $0x30] sm:$0xff]  ;;  %7280 = vmatpush3.bf16.msra.mxu1 %v7261_v16  ;;  %vm815_vm1 = vcmask 523264  }
  0x1c   :  { %v35_v27 = vld [vmem:[%s11191_s0 + $0x38] sm:$0xff]  ;;  %7282 = vmatprep.subr.bf16.mxu1 %v7265_v20  ;;  %v56_v28 = vld [vmem:[%s11195_s4 + $0x48] sm:$0xff]  ;;  %7268 = vmatpush3.bf16.msra.mxu0 %v7265_v20  ;;  %v57_v31 = vld [vmem:[%s11195_s4 + $0x50] sm:$0xff] }
  0x1d   :  { %7270 = vmatprep.subr.bf16.mxu0 %v7269_v24  ;;  %v7273_v29 = vpack.c.bf16 %v35_v27, %v34_v26  ;;  %v62_v30 = vld [vmem:[%s11195_s4 + $0x78] sm:$0xff]  ;;  %v64_v32 = vld [vmem:[%s11195_s4 + $0x88] sm:$0xff]  ;;  %v59_v35 = vld [vmem:[%s11195_s4 + $0x60] sm:$0xff] }
  0x1e   :  { %176 = vperm.xlu0 %7298, %v47_v19   ;;  %200 = vperm.xlu1 %7299, %v55_v23   ;;  %v58_v33 = vld [vmem:[%s11195_s4 + $0x58] sm:$0xff]  ;;  %v68_v36 = vld [vmem:[%s11195_s4 + $0xa8] sm:$0xff]  ;;  %v61_v37 = vld [vmem:[%s11195_s4 + $0x70] sm:$0xff] }
  0x1f   :  { %7284 = vmatpush3.bf16.msra.mxu1 %v7265_v20  ;;  %v66_v34 = vld [vmem:[%s11195_s4 + $0x98] sm:$0xff]  ;;  %v63_v39 = vld [vmem:[%s11195_s4 + $0x80] sm:$0xff]  ;;  %v72_v40 = vld [vmem:[%s11195_s4 + $0xc8] sm:$0xff] }
  0x20   :  { %7286 = vmatprep.subr.bf16.mxu1 %v7269_v24  ;;  %7272 = vmatpush3.bf16.msra.mxu0 %v7269_v24  ;;  %v70_v38 = vld [vmem:[%s11195_s4 + $0xb8] sm:$0xff]  ;;  %v65_v41 = vld [vmem:[%s11195_s4 + $0x90] sm:$0xff]  ;;  %v67_v43 = vld [vmem:[%s11195_s4 + $0xa0] sm:$0xff] }
  0x21   :  { %7274 = vmatprep.subr.bf16.mxu0 %v7273_v29  ;;  %v74_v42 = vld [vmem:[%s11195_s4 + $0xd8] sm:$0xff]  ;;  %v76_v44 = vld [vmem:[%s11195_s4 + $0xe8] sm:$0xff]  ;;  %v69_v45 = vld [vmem:[%s11195_s4 + $0xb0] sm:$0xff] }
  0x22   :  { %215 = vperm.xlu0 %7298, %v60_v25   ;;  %203 = vperm.xlu1 %7299, %v56_v28   ;;  %v78_v46 = vld [vmem:[%s11195_s4 + $0xf8] sm:$0xff]  ;;  %v71_v47 = vld [vmem:[%s11195_s4 + $0xc0] sm:$0xff]  ;;  %v80_v48 = vld [vmem:[%s11195_s4 + $0x108] sm:$0xff] }
  0x23   :  { %7288 = vmatpush3.bf16.msra.mxu1 %v7269_v24  ;;  %v73_v49 = vld [vmem:[%s11195_s4 + $0xd0] sm:$0xff]  ;;  %v82_v50 = vld [vmem:[%s11195_s4 + $0x118] sm:$0xff]  ;;  %v75_v51 = vld [vmem:[%s11195_s4 + $0xe0] sm:$0xff] }
  0x24   :  { %7290 = vmatprep.subr.bf16.mxu1 %v7273_v29  ;;  %7276 = vmatpush3.bf16.msra.mxu0 %v7273_v29  ;;  %v84_v52 = vld [vmem:[%s11195_s4 + $0x128] sm:$0xff]  ;;  %v77_v53 = vld [vmem:[%s11195_s4 + $0xf0] sm:$0xff]  ;;  %v86_v54 = vld [vmem:[%s11195_s4 + $0x138] sm:$0xff] }
  0x25   :  { %v79_v55 = vld [vmem:[%s11195_s4 + $0x100] sm:$0xff]  ;;  %v88_v56 = vld [vmem:[%s11195_s4 + $0x148] sm:$0xff]  ;;  %v81_v57 = vld [vmem:[%s11195_s4 + $0x110] sm:$0xff] }
  0x26   :  { %221 = vperm.xlu0 %7298, %v62_v30   ;;  %206 = vperm.xlu1 %7299, %v57_v31   ;;  %v90_v58 = vld [vmem:[%s11195_s4 + $0x158] sm:$0xff]  ;;  %v83_v59 = vld [vmem:[%s11195_s4 + $0x120] sm:$0xff]  ;;  %v92_v60 = vld [vmem:[%s11195_s4 + $0x168] sm:$0xff]  ;;  %v11200_v30 = vlaneseq }
  0x27   :  { %7292 = vmatpush3.bf16.msra.mxu1 %v7273_v29  ;;  %v85_v61 = vld [vmem:[%s11195_s4 + $0x130] sm:$0xff]  ;;  %v94_v62 = vld [vmem:[%s11195_s4 + $0x178] sm:$0xff]  ;;  %v87_v63 = vld [vmem:[%s11195_s4 + $0x140] sm:$0xff] }
  0x28   :  { %v96_v0 = vld [vmem:[%s11195_s4 + $0x188] sm:$0xff]  ;;  %v89_v1 = vld [vmem:[%s11195_s4 + $0x150] sm:$0xff]  ;;  %v98_v2 = vld [vmem:[%s11195_s4 + $0x198] sm:$0xff] }
  0x29   :  { %v91_v3 = vld [vmem:[%s11195_s4 + $0x160] sm:$0xff]  ;;  %v100_v4 = vld [vmem:[%s11195_s4 + $0x1a8] sm:$0xff]  ;;  %v93_v7 = vld [vmem:[%s11195_s4 + $0x170] sm:$0xff] }
  0x2a   :  { %227 = vperm.xlu0 %7298, %v64_v32   ;;  %209 = vperm.xlu1 %7299, %v58_v33   ;;  %v102_v8 = vld [vmem:[%s11195_s4 + $0x1b8] sm:$0xff]  ;;  %v95_v9 = vld [vmem:[%s11195_s4 + $0x180] sm:$0xff]  ;;  %v104_v10 = vld [vmem:[%s11195_s4 + $0x1c8] sm:$0xff] }
  0x2b   :  { %v97_v11 = vld [vmem:[%s11195_s4 + $0x190] sm:$0xff]  ;;  %v106_v12 = vld [vmem:[%s11195_s4 + $0x1d8] sm:$0xff]  ;;  %v99_v13 = vld [vmem:[%s11195_s4 + $0x1a0] sm:$0xff] }
  0x2c   :  { %v108_v14 = vld [vmem:[%s11195_s4 + $0x1e8] sm:$0xff]  ;;  %v101_v15 = vld [vmem:[%s11195_s4 + $0x1b0] sm:$0xff]  ;;  %v110_v17 = vld [vmem:[%s11195_s4 + $0x1f8] sm:$0xff] }
  0x2d   :  { %v103_v18 = vld [vmem:[%s11195_s4 + $0x1c0] sm:$0xff]  ;;  %v112_v20 = vld [vmem:[%s11195_s4 + $0x208] sm:$0xff]  ;;  %v105_v21 = vld [vmem:[%s11195_s4 + $0x1d0] sm:$0xff] }
  0x2e   :  { %233 = vperm.xlu0 %7298, %v66_v34   ;;  %212 = vperm.xlu1 %7299, %v59_v35   ;;  %v114_v23 = vld [vmem:[%s11195_s4 + $0x218] sm:$0xff]  ;;  %v107_v24 = vld [vmem:[%s11195_s4 + $0x1e0] sm:$0xff]  ;;  %v116_v26 = vld [vmem:[%s11195_s4 + $0x228] sm:$0xff]  ;;  %v7650_v35 = vand.u32 127, %v11200_v30 }
  0x2f   :  { %v109_v27 = vld [vmem:[%s11195_s4 + $0x1f0] sm:$0xff]  ;;  %v118_v29 = vld [vmem:[%s11195_s4 + $0x238] sm:$0xff]  ;;  %v111_v31 = vld [vmem:[%s11195_s4 + $0x200] sm:$0xff] }
  0x30   :  { %v120_v34 = vld [vmem:[%s11195_s4 + $0x248] sm:$0xff]  ;;  %v2001_v5 = vld [vmem:[%s11196_s5 + $0x300] sm:$0xff] }
  0x32   :  { %239 = vperm.xlu0 %7298, %v68_v36   ;;  %218 = vperm.xlu1 %7299, %v61_v37   ;;  %v113_v36 = vld [vmem:[%s11195_s4 + $0x210] sm:$0xff] }
  0x36   :  { %245 = vperm.xlu0 %7298, %v70_v38   ;;  %224 = vperm.xlu1 %7299, %v63_v39   ;;  %v122_v38 = vld [vmem:[%s11195_s4 + $0x258] sm:$0xff] }
  0x3a   :  { %251 = vperm.xlu0 %7298, %v72_v40   ;;  %230 = vperm.xlu1 %7299, %v65_v41   ;;  %v115_v40 = vld [vmem:[%s11195_s4 + $0x220] sm:$0xff] }
  0x3e   :  { %257 = vperm.xlu0 %7298, %v74_v42   ;;  %236 = vperm.xlu1 %7299, %v67_v43   ;;  %v7349_v42 = vmov 0.0  }
  0x42   :  { %263 = vperm.xlu0 %7298, %v76_v44   ;;  %242 = vperm.xlu1 %7299, %v69_v45   ;;  %v124_v44 = vld [vmem:[%s11195_s4 + $0x268] sm:$0xff] }
  0x46   :  { %269 = vperm.xlu0 %7298, %v78_v46   ;;  %248 = vperm.xlu1 %7299, %v71_v47  }
  0x4a   :  { %275 = vperm.xlu0 %7298, %v80_v48   ;;  %254 = vperm.xlu1 %7299, %v73_v49   ;;  %v117_v48 = vld [vmem:[%s11195_s4 + $0x230] sm:$0xff] }
  0x4e   :  { %281 = vperm.xlu0 %7298, %v82_v50   ;;  %260 = vperm.xlu1 %7299, %v75_v51   ;;  %v126_v50 = vld [vmem:[%s11195_s4 + $0x278] sm:$0xff] }
  0x52   :  { %287 = vperm.xlu0 %7298, %v84_v52   ;;  %266 = vperm.xlu1 %7299, %v77_v53  }
  0x56   :  { %293 = vperm.xlu0 %7298, %v86_v54   ;;  %272 = vperm.xlu1 %7299, %v79_v55   ;;  %v119_v54 = vld [vmem:[%s11195_s4 + $0x240] sm:$0xff] }
  0x5a   :  { %299 = vperm.xlu0 %7298, %v88_v56   ;;  %278 = vperm.xlu1 %7299, %v81_v57   ;;  %v128_v56 = vld [vmem:[%s11195_s4 + $0x288] sm:$0xff] }
  0x5e   :  { %305 = vperm.xlu0 %7298, %v90_v58   ;;  %284 = vperm.xlu1 %7299, %v83_v59  }
  0x62   :  { %311 = vperm.xlu0 %7298, %v92_v60   ;;  %290 = vperm.xlu1 %7299, %v85_v61   ;;  %v121_v60 = vld [vmem:[%s11195_s4 + $0x250] sm:$0xff] }
  0x66   :  { %317 = vperm.xlu0 %7298, %v94_v62   ;;  %296 = vperm.xlu1 %7299, %v87_v63   ;;  %v130_v62 = vld [vmem:[%s11195_s4 + $0x298] sm:$0xff] }
  0x6a   :  { %323 = vperm.xlu0 %7298, %v96_v0   ;;  %302 = vperm.xlu1 %7299, %v89_v1  }
  0x6e   :  { %329 = vperm.xlu0 %7298, %v98_v2   ;;  %308 = vperm.xlu1 %7299, %v91_v3   ;;  %v123_v2 = vld [vmem:[%s11195_s4 + $0x260] sm:$0xff] }
  0x72   :  { %335 = vperm.xlu0 %7298, %v100_v4   ;;  %314 = vperm.xlu1 %7299, %v93_v7   ;;  %v132_v4 = vld [vmem:[%s11195_s4 + $0x2a8] sm:$0xff] }
  0x76   :  { %341 = vperm.xlu0 %7298, %v102_v8   ;;  %320 = vperm.xlu1 %7299, %v95_v9  }
  0x7a   :  { %347 = vperm.xlu0 %7298, %v104_v10   ;;  %326 = vperm.xlu1 %7299, %v97_v11   ;;  %v125_v10 = vld [vmem:[%s11195_s4 + $0x270] sm:$0xff] }
  0x7e   :  { %353 = vperm.xlu0 %7298, %v106_v12   ;;  %332 = vperm.xlu1 %7299, %v99_v13   ;;  %v134_v12 = vld [vmem:[%s11195_s4 + $0x2b8] sm:$0xff] }
  0x81   :  { %v180_v16 = vpop.permute.xlu1 %179 }
  0x82   :  { %359 = vperm.xlu0 %7298, %v108_v14   ;;  %338 = vperm.xlu1 %7299, %v101_v15   ;;  %vm560_vm0 = vcmp.eq.s32.totalorder %v180_v16, %v7650_v35  ;;  %v127_v16 = vld [vmem:[%s11195_s4 + $0x280] sm:$0xff] }
  0x83   :  { %v688_v45 = vsel %vm560_vm0, 1.0, %v7349_v42 }
  0x85   :  { %v183_v19 = vpop.permute.xlu1 %182 }
  0x86   :  { %365 = vperm.xlu0 %7298, %v110_v17   ;;  %344 = vperm.xlu1 %7299, %v103_v18   ;;  %vm561_vm2 = vcmp.eq.s32.totalorder %v183_v19, %v7650_v35  ;;  %v136_v18 = vld [vmem:[%s11195_s4 + $0x2c8] sm:$0xff] }
  0x87   :  { %v689_v46 = vsel %vm561_vm2, 1.0, %v7349_v42 }
  0x89   :  { %v186_v22 = vpop.permute.xlu1 %185 }
  0x8a   :  { %371 = vperm.xlu0 %7298, %v112_v20   ;;  %350 = vperm.xlu1 %7299, %v105_v21   ;;  %vm562_vm4 = vcmp.eq.s32.totalorder %v186_v22, %v7650_v35  ;;  %v129_v22 = vld [vmem:[%s11195_s4 + $0x290] sm:$0xff] }
  0x8b   :  { %v690_v51 = vsel %vm562_vm4, 1.0, %v7349_v42 }
  0x8d   :  { %v189_v25 = vpop.permute.xlu1 %188 }
  0x8e   :  { %377 = vperm.xlu0 %7298, %v114_v23   ;;  %356 = vperm.xlu1 %7299, %v107_v24   ;;  %vm563_vm5 = vcmp.eq.s32.totalorder %v189_v25, %v7650_v35  ;;  %v138_v24 = vld [vmem:[%s11195_s4 + $0x2d8] sm:$0xff] }
  0x8f   :  { %v691_v52 = vsel %vm563_vm5, 1.0, %v7349_v42 }
  0x91   :  { %v192_v28 = vpop.permute.xlu1 %191 }
  0x92   :  { %383 = vperm.xlu0 %7298, %v116_v26   ;;  %362 = vperm.xlu1 %7299, %v109_v27   ;;  %vm564_vm6 = vcmp.eq.s32.totalorder %v192_v28, %v7650_v35  ;;  %v131_v28 = vld [vmem:[%s11195_s4 + $0x2a0] sm:$0xff] }
  0x93   :  { %v692_v57 = vsel %vm564_vm6, 1.0, %v7349_v42 }
  0x95   :  { %v43_v32 = vpop.xlane.xlu0 %42  ;;  %v195_v33 = vpop.permute.xlu1 %194 }
  0x96   :  { %389 = vperm.xlu0 %7298, %v118_v29   ;;  %44 = vst [vmem:[%s11197_s6] sm:$0xff] %v43_v32  ;;  %368 = vperm.xlu1 %7299, %v111_v31   ;;  %vm565_vm7 = vcmp.eq.s32.totalorder %v195_v33, %v7650_v35  ;;  %v140_v31 = vld [vmem:[%s11195_s4 + $0x2e8] sm:$0xff] }
  0x97   :  { %v693_v58 = vsel %vm565_vm7, 1.0, %v7349_v42 }
  0x99   :  { %v198_v37 = vpop.permute.xlu1 %197 }
  0x9a   :  { %395 = vperm.xlu0 %7298, %v120_v34   ;;  %374 = vperm.xlu1 %7299, %v113_v36   ;;  %vm566_vm8 = vcmp.eq.s32.totalorder %v198_v37, %v7650_v35  ;;  %v133_v36 = vld [vmem:[%s11195_s4 + $0x2b0] sm:$0xff] }
  0x9b   :  { %v694_v63 = vsel %vm566_vm8, 1.0, %v7349_v42 }
  0x9d   :  { %v177_v39 = vpop.permute.xlu0 %176  ;;  %v201_v41 = vpop.permute.xlu1 %200 }
  0x9e   :  { %401 = vperm.xlu0 %7298, %v122_v38   ;;  %vm559_vm3 = vcmp.eq.s32.totalorder %v177_v39, %v7650_v35  ;;  %380 = vperm.xlu1 %7299, %v115_v40   ;;  %vm567_vm9 = vcmp.eq.s32.totalorder %v201_v41, %v7650_v35  ;;  %v142_v38 = vld [vmem:[%s11195_s4 + $0x2f8] sm:$0xff] }
  0x9f   :  { %v687_v43 = vsel %vm559_vm3, 1.0, %v7349_v42  ;;  %v695_v0 = vsel %vm567_vm9, 1.0, %v7349_v42 }
  0xa0   :  { %6861 = vmatprep.mubr.msk.f32.mxu0 %vm815_vm1, %v687_v43  ;;  %v135_v43 = vld [vmem:[%s11195_s4 + $0x2c0] sm:$0xff] }
  0xa1   :  { %v7672_v47 = vpop.permute.xlu0 %215  ;;  %6862 = vmatmul.mubr.msk.f32.vlgmr.msra.gmra.mrb[0].mxu0 %vm815_vm1, %v688_v45  ;;  %v204_v49 = vpop.permute.xlu1 %203  ;;  %v144_v45 = vld [vmem:[%s11195_s4 + $0x308] sm:$0xff] }
  0xa2   :  { %407 = vperm.xlu0 %7298, %v124_v44   ;;  %6864 = vmatprep.mubr.msk.f32.mxu0 %vm815_vm1, %v689_v46  ;;  %vm568_vm10 = vcmp.eq.s32.totalorder %v204_v49, %v7650_v35  ;;  %vm572_vm14 = vcmp.eq.s32.totalorder %v7672_v47, %v7650_v35  ;;  %v137_v49 = vld [vmem:[%s11195_s4 + $0x2d0] sm:$0xff] }
  0xa3   :  { %386 = vperm.xlu1 %7299, %v117_v48   ;;  %v696_v7 = vsel %vm568_vm10, 1.0, %v7349_v42  ;;  %v700_v19 = vsel %vm572_vm14, 1.0, %v7349_v42 }
  0xa5   :  { %v7686_v53 = vpop.permute.xlu0 %221  ;;  %6865 = vmatmul.mubr.msk.f32.gmra.mrb[2].mxu0 %vm815_vm1, %v690_v51  ;;  %v207_v55 = vpop.permute.xlu1 %206  ;;  %v146_v51 = vld [vmem:[%s11195_s4 + $0x318] sm:$0xff] }
  0xa6   :  { %413 = vperm.xlu0 %7298, %v126_v50   ;;  %6867 = vmatprep.mubr.msk.f32.mxu0 %vm815_vm1, %v691_v52  ;;  %vm569_vm11 = vcmp.eq.s32.totalorder %v207_v55, %v7650_v35  ;;  %vm574_vm0 = vcmp.eq.s32.totalorder %v7686_v53, %v7650_v35  ;;  %v139_v55 = vld [vmem:[%s11195_s4 + $0x2e0] sm:$0xff] }
  0xa7   :  { %392 = vperm.xlu1 %7299, %v119_v54   ;;  %v697_v8 = vsel %vm569_vm11, 1.0, %v7349_v42  ;;  %v702_v25 = vsel %vm574_vm0, 1.0, %v7349_v42 }
  0xa9   :  { %v7700_v59 = vpop.permute.xlu0 %227  ;;  %6868 = vmatmul.mubr.msk.f32.gmra.mrb[4].mxu0 %vm815_vm1, %v692_v57  ;;  %v210_v61 = vpop.permute.xlu1 %209  ;;  %v148_v57 = vld [vmem:[%s11195_s4 + $0x328] sm:$0xff] }
  0xaa   :  { %419 = vperm.xlu0 %7298, %v128_v56   ;;  %6870 = vmatprep.mubr.msk.f32.mxu0 %vm815_vm1, %v693_v58  ;;  %vm570_vm12 = vcmp.eq.s32.totalorder %v210_v61, %v7650_v35  ;;  %vm576_vm3 = vcmp.eq.s32.totalorder %v7700_v59, %v7650_v35  ;;  %v141_v61 = vld [vmem:[%s11195_s4 + $0x2f0] sm:$0xff] }
  0xab   :  { %398 = vperm.xlu1 %7299, %v121_v60   ;;  %v698_v13 = vsel %vm570_vm12, 1.0, %v7349_v42  ;;  %v704_v32 = vsel %vm576_vm3, 1.0, %v7349_v42 }
  0xad   :  { %v7714_v1 = vpop.permute.xlu0 %233  ;;  %6871 = vmatmul.mubr.msk.f32.gmra.mrb[6].mxu0 %vm815_vm1, %v694_v63  ;;  %v213_v3 = vpop.permute.xlu1 %212  ;;  %v150_v63 = vld [vmem:[%s11195_s4 + $0x338] sm:$0xff] }
  0xae   :  { %425 = vperm.xlu0 %7298, %v130_v62   ;;  %6873 = vmatprep.mubr.msk.f32.mxu0 %vm815_vm1, %v695_v0  ;;  %vm571_vm13 = vcmp.eq.s32.totalorder %v213_v3, %v7650_v35  ;;  %vm578_vm5 = vcmp.eq.s32.totalorder %v7714_v1, %v7650_v35  ;;  %v143_v3 = vld [vmem:[%s11195_s4 + $0x300] sm:$0xff] }
  0xaf   :  { %404 = vperm.xlu1 %7299, %v123_v2   ;;  %v699_v14 = vsel %vm571_vm13, 1.0, %v7349_v42  ;;  %v706_v39 = vsel %vm578_vm5, 1.0, %v7349_v42 }
  0xb1   :  { %v7728_v9 = vpop.permute.xlu0 %239  ;;  %6874 = vmatmul.mubr.msk.f32.gmra.mrb[8].mxu0 %vm815_vm1, %v696_v7  ;;  %v219_v11 = vpop.permute.xlu1 %218  ;;  %v152_v7 = vld [vmem:[%s11195_s4 + $0x348] sm:$0xff] }
  0xb2   :  { %431 = vperm.xlu0 %7298, %v132_v4   ;;  %6876 = vmatprep.mubr.msk.f32.mxu0 %vm815_vm1, %v697_v8  ;;  %vm573_vm15 = vcmp.eq.s32.totalorder %v219_v11, %v7650_v35  ;;  %vm580_vm7 = vcmp.eq.s32.totalorder %v7728_v9, %v7650_v35  ;;  %v145_v11 = vld [vmem:[%s11195_s4 + $0x310] sm:$0xff] }
  0xb3   :  { %410 = vperm.xlu1 %7299, %v125_v10   ;;  %v701_v20 = vsel %vm573_vm15, 1.0, %v7349_v42  ;;  %v708_v46 = vsel %vm580_vm7, 1.0, %v7349_v42 }
  0xb5   :  { %v7743_v15 = vpop.permute.xlu0 %245  ;;  %6877 = vmatmul.mubr.msk.f32.gmra.mrb[10].mxu0 %vm815_vm1, %v698_v13  ;;  %v225_v17 = vpop.permute.xlu1 %224  ;;  %v154_v13 = vld [vmem:[%s11195_s4 + $0x358] sm:$0xff] }
  0xb6   :  { %437 = vperm.xlu0 %7298, %v134_v12   ;;  %6879 = vmatprep.mubr.msk.f32.mxu0 %vm815_vm1, %v699_v14  ;;  %vm575_vm2 = vcmp.eq.s32.totalorder %v225_v17, %v7650_v35  ;;  %vm582_vm9 = vcmp.eq.s32.totalorder %v7743_v15, %v7650_v35  ;;  %v147_v17 = vld [vmem:[%s11195_s4 + $0x320] sm:$0xff] }
  0xb7   :  { %416 = vperm.xlu1 %7299, %v127_v16   ;;  %v703_v26 = vsel %vm575_vm2, 1.0, %v7349_v42  ;;  %v710_v52 = vsel %vm582_vm9, 1.0, %v7349_v42 }
  0xb9   :  { %v7758_v21 = vpop.permute.xlu0 %251  ;;  %6880 = vmatmul.mubr.msk.f32.gmra.mrb[12].mxu0 %vm815_vm1, %v700_v19  ;;  %v231_v23 = vpop.permute.xlu1 %230  ;;  %v156_v19 = vld [vmem:[%s11195_s4 + $0x368] sm:$0xff] }
  0xba   :  { %443 = vperm.xlu0 %7298, %v136_v18   ;;  %6882 = vmatprep.mubr.msk.f32.mxu0 %vm815_vm1, %v701_v20  ;;  %vm577_vm4 = vcmp.eq.s32.totalorder %v231_v23, %v7650_v35  ;;  %vm584_vm11 = vcmp.eq.s32.totalorder %v7758_v21, %v7650_v35  ;;  %v149_v23 = vld [vmem:[%s11195_s4 + $0x330] sm:$0xff] }
  0xbb   :  { %422 = vperm.xlu1 %7299, %v129_v22   ;;  %v705_v33 = vsel %vm577_vm4, 1.0, %v7349_v42  ;;  %v712_v58 = vsel %vm584_vm11, 1.0, %v7349_v42 }
  0xbd   :  { %v7773_v27 = vpop.permute.xlu0 %257  ;;  %6883 = vmatmul.mubr.msk.f32.gmra.mrb[14].mxu0 %vm815_vm1, %v702_v25  ;;  %v237_v29 = vpop.permute.xlu1 %236  ;;  %v158_v25 = vld [vmem:[%s11195_s4 + $0x378] sm:$0xff] }
  0xbe   :  { %449 = vperm.xlu0 %7298, %v138_v24   ;;  %6885 = vmatprep.mubr.msk.f32.mxu0 %vm815_vm1, %v703_v26  ;;  %vm579_vm6 = vcmp.eq.s32.totalorder %v237_v29, %v7650_v35  ;;  %vm586_vm13 = vcmp.eq.s32.totalorder %v7773_v27, %v7650_v35  ;;  %v151_v29 = vld [vmem:[%s11195_s4 + $0x340] sm:$0xff] }
  0xbf   :  { %428 = vperm.xlu1 %7299, %v131_v28   ;;  %v707_v40 = vsel %vm579_vm6, 1.0, %v7349_v42  ;;  %v714_v0 = vsel %vm586_vm13, 1.0, %v7349_v42 }
  0xc1   :  { %v7788_v34 = vpop.permute.xlu0 %263  ;;  %6886 = vmatmul.mubr.msk.f32.gmra.mrb[16].mxu0 %vm815_vm1, %v704_v32  ;;  %v243_v37 = vpop.permute.xlu1 %242  ;;  %v160_v32 = vld [vmem:[%s11195_s4 + $0x388] sm:$0xff] }
  0xc2   :  { %455 = vperm.xlu0 %7298, %v140_v31   ;;  %6888 = vmatprep.mubr.msk.f32.mxu0 %vm815_vm1, %v705_v33  ;;  %vm581_vm8 = vcmp.eq.s32.totalorder %v243_v37, %v7650_v35  ;;  %vm588_vm15 = vcmp.eq.s32.totalorder %v7788_v34, %v7650_v35  ;;  %v153_v37 = vld [vmem:[%s11195_s4 + $0x350] sm:$0xff] }
  0xc3   :  { %434 = vperm.xlu1 %7299, %v133_v36   ;;  %v709_v47 = vsel %vm581_vm8, 1.0, %v7349_v42  ;;  %v716_v8 = vsel %vm588_vm15, 1.0, %v7349_v42 }
  0xc5   :  { %v7803_v41 = vpop.permute.xlu0 %269  ;;  %6889 = vmatmul.mubr.msk.f32.gmra.mrb[18].mxu0 %vm815_vm1, %v706_v39  ;;  %v249_v44 = vpop.permute.xlu1 %248  ;;  %v162_v39 = vld [vmem:[%s11195_s4 + $0x398] sm:$0xff] }
  0xc6   :  { %461 = vperm.xlu0 %7298, %v142_v38   ;;  %6891 = vmatprep.mubr.msk.f32.mxu0 %vm815_vm1, %v707_v40  ;;  %vm583_vm10 = vcmp.eq.s32.totalorder %v249_v44, %v7650_v35  ;;  %vm590_vm2 = vcmp.eq.s32.totalorder %v7803_v41, %v7650_v35  ;;  %v155_v44 = vld [vmem:[%s11195_s4 + $0x360] sm:$0xff] }
  0xc7   :  { %440 = vperm.xlu1 %7299, %v135_v43   ;;  %v711_v53 = vsel %vm583_vm10, 1.0, %v7349_v42  ;;  %v718_v14 = vsel %vm590_vm2, 1.0, %v7349_v42 }
  0xc9   :  { %v7818_v48 = vpop.permute.xlu0 %275  ;;  %6892 = vmatmul.mubr.msk.f32.gmra.mrb[20].mxu0 %vm815_vm1, %v708_v46  ;;  %v255_v50 = vpop.permute.xlu1 %254  ;;  %v164_v46 = vld [vmem:[%s11195_s4 + $0x3a8] sm:$0xff] }
  0xca   :  { %467 = vperm.xlu0 %7298, %v144_v45   ;;  %6894 = vmatprep.mubr.msk.f32.mxu0 %vm815_vm1, %v709_v47  ;;  %vm585_vm12 = vcmp.eq.s32.totalorder %v255_v50, %v7650_v35  ;;  %vm592_vm4 = vcmp.eq.s32.totalorder %v7818_v48, %v7650_v35  ;;  %v157_v50 = vld [vmem:[%s11195_s4 + $0x370] sm:$0xff] }
  0xcb   :  { %446 = vperm.xlu1 %7299, %v137_v49   ;;  %v713_v59 = vsel %vm585_vm12, 1.0, %v7349_v42  ;;  %v720_v20 = vsel %vm592_vm4, 1.0, %v7349_v42 }
  0xcd   :  { %v7833_v54 = vpop.permute.xlu0 %281  ;;  %6895 = vmatmul.mubr.msk.f32.gmra.mrb[22].mxu0 %vm815_vm1, %v710_v52  ;;  %v261_v56 = vpop.permute.xlu1 %260  ;;  %v166_v52 = vld [vmem:[%s11195_s4 + $0x3b8] sm:$0xff] }
  0xce   :  { %473 = vperm.xlu0 %7298, %v146_v51   ;;  %6897 = vmatprep.mubr.msk.f32.mxu0 %vm815_vm1, %v711_v53  ;;  %vm587_vm14 = vcmp.eq.s32.totalorder %v261_v56, %v7650_v35  ;;  %vm594_vm6 = vcmp.eq.s32.totalorder %v7833_v54, %v7650_v35  ;;  %v159_v56 = vld [vmem:[%s11195_s4 + $0x380] sm:$0xff] }
  0xcf   :  { %452 = vperm.xlu1 %7299, %v139_v55   ;;  %v715_v1 = vsel %vm587_vm14, 1.0, %v7349_v42  ;;  %v722_v26 = vsel %vm594_vm6, 1.0, %v7349_v42 }
  0xd1   :  { %v7848_v60 = vpop.permute.xlu0 %287  ;;  %6898 = vmatmul.mubr.msk.f32.gmra.mrb[24].mxu0 %vm815_vm1, %v712_v58  ;;  %v267_v62 = vpop.permute.xlu1 %266  ;;  %v168_v58 = vld [vmem:[%s11195_s4 + $0x3c8] sm:$0xff] }
  0xd2   :  { %479 = vperm.xlu0 %7298, %v148_v57   ;;  %6900 = vmatprep.mubr.msk.f32.mxu0 %vm815_vm1, %v713_v59  ;;  %vm589_vm0 = vcmp.eq.s32.totalorder %v267_v62, %v7650_v35  ;;  %vm596_vm8 = vcmp.eq.s32.totalorder %v7848_v60, %v7650_v35  ;;  %v161_v62 = vld [vmem:[%s11195_s4 + $0x390] sm:$0xff] }
  0xd3   :  { %458 = vperm.xlu1 %7299, %v141_v61   ;;  %v717_v9 = vsel %vm589_vm0, 1.0, %v7349_v42  ;;  %v724_v33 = vsel %vm596_vm8, 1.0, %v7349_v42 }
  0xd5   :  { %v7863_v2 = vpop.permute.xlu0 %293  ;;  %6901 = vmatmul.mubr.msk.f32.gmra.mrb[26].mxu0 %vm815_vm1, %v714_v0  ;;  %v273_v4 = vpop.permute.xlu1 %272  ;;  %v170_v0 = vld [vmem:[%s11195_s4 + $0x3d8] sm:$0xff] }
  0xd6   :  { %485 = vperm.xlu0 %7298, %v150_v63   ;;  %6903 = vmatprep.mubr.msk.f32.mxu0 %vm815_vm1, %v715_v1  ;;  %vm591_vm3 = vcmp.eq.s32.totalorder %v273_v4, %v7650_v35  ;;  %vm598_vm10 = vcmp.eq.s32.totalorder %v7863_v2, %v7650_v35  ;;  %v163_v4 = vld [vmem:[%s11195_s4 + $0x3a0] sm:$0xff] }
  0xd7   :  { %464 = vperm.xlu1 %7299, %v143_v3   ;;  %v719_v15 = vsel %vm591_vm3, 1.0, %v7349_v42  ;;  %v726_v40 = vsel %vm598_vm10, 1.0, %v7349_v42 }
  0xd9   :  { %v7878_v10 = vpop.permute.xlu0 %299  ;;  %6904 = vmatmul.mubr.msk.f32.gmra.mrb[28].mxu0 %vm815_vm1, %v716_v8  ;;  %v279_v12 = vpop.permute.xlu1 %278  ;;  %v172_v8 = vld [vmem:[%s11195_s4 + $0x3e8] sm:$0xff] }
  0xda   :  { %491 = vperm.xlu0 %7298, %v152_v7   ;;  %6906 = vmatprep.mubr.msk.f32.mxu0 %vm815_vm1, %v717_v9  ;;  %vm593_vm5 = vcmp.eq.s32.totalorder %v279_v12, %v7650_v35  ;;  %vm600_vm12 = vcmp.eq.s32.totalorder %v7878_v10, %v7650_v35  ;;  %v165_v12 = vld [vmem:[%s11195_s4 + $0x3b0] sm:$0xff] }
  0xdb   :  { %470 = vperm.xlu1 %7299, %v145_v11   ;;  %v721_v21 = vsel %vm593_vm5, 1.0, %v7349_v42  ;;  %v728_v47 = vsel %vm600_vm12, 1.0, %v7349_v42 }
  0xdd   :  { %v7893_v16 = vpop.permute.xlu0 %305  ;;  %6907 = vmatmul.mubr.msk.f32.gmra.mrb[30].mxu0 %vm815_vm1, %v718_v14  ;;  %v285_v18 = vpop.permute.xlu1 %284  ;;  %v174_v14 = vld [vmem:[%s11195_s4 + $0x3f8] sm:$0xff] }
  0xde   :  { %497 = vperm.xlu0 %7298, %v154_v13   ;;  %6909 = vmatprep.mubr.msk.f32.mxu0 %vm815_vm1, %v719_v15  ;;  %vm595_vm7 = vcmp.eq.s32.totalorder %v285_v18, %v7650_v35  ;;  %vm602_vm14 = vcmp.eq.s32.totalorder %v7893_v16, %v7650_v35  ;;  %v167_v18 = vld [vmem:[%s11195_s4 + $0x3c0] sm:$0xff] }
  0xdf   :  { %476 = vperm.xlu1 %7299, %v147_v17   ;;  %v723_v27 = vsel %vm595_vm7, 1.0, %v7349_v42  ;;  %v730_v53 = vsel %vm602_vm14, 1.0, %v7349_v42 }
  0xe1   :  { %v7908_v22 = vpop.permute.xlu0 %311  ;;  %6910 = vmatmul.mubr.msk.f32.gmra.mrb[32].mxu0 %vm815_vm1, %v720_v20  ;;  %v291_v24 = vpop.permute.xlu1 %290  ;;  %v1906_v20 = vld [vmem:[%s11196_s5 + $0x8] sm:$0xff] }
  0xe2   :  { %503 = vperm.xlu0 %7298, %v156_v19   ;;  %6912 = vmatprep.mubr.msk.f32.mxu0 %vm815_vm1, %v721_v21  ;;  %vm597_vm9 = vcmp.eq.s32.totalorder %v291_v24, %v7650_v35  ;;  %vm604_vm0 = vcmp.eq.s32.totalorder %v7908_v22, %v7650_v35  ;;  %v169_v24 = vld [vmem:[%s11195_s4 + $0x3d0] sm:$0xff] }
  0xe3   :  { %482 = vperm.xlu1 %7299, %v149_v23   ;;  %v725_v34 = vsel %vm597_vm9, 1.0, %v7349_v42  ;;  %v732_v59 = vsel %vm604_vm0, 1.0, %v7349_v42 }
  0xe5   :  { %v7923_v28 = vpop.permute.xlu0 %317  ;;  %6913 = vmatmul.mubr.msk.f32.gmra.mrb[34].mxu0 %vm815_vm1, %v722_v26  ;;  %v297_v31 = vpop.permute.xlu1 %296  ;;  %v1908_v26 = vld [vmem:[%s11196_s5 + $0x18] sm:$0xff] }
  0xe6   :  { %509 = vperm.xlu0 %7298, %v158_v25   ;;  %6915 = vmatprep.mubr.msk.f32.mxu0 %vm815_vm1, %v723_v27  ;;  %vm599_vm11 = vcmp.eq.s32.totalorder %v297_v31, %v7650_v35  ;;  %vm606_vm3 = vcmp.eq.s32.totalorder %v7923_v28, %v7650_v35  ;;  %v171_v31 = vld [vmem:[%s11195_s4 + $0x3e0] sm:$0xff] }
  0xe7   :  { %488 = vperm.xlu1 %7299, %v151_v29   ;;  %v727_v41 = vsel %vm599_vm11, 1.0, %v7349_v42  ;;  %v734_v1 = vsel %vm606_vm3, 1.0, %v7349_v42 }
  0xe9   :  { %v7938_v36 = vpop.permute.xlu0 %323  ;;  %6916 = vmatmul.mubr.msk.f32.gmra.mrb[36].mxu0 %vm815_vm1, %v724_v33  ;;  %v303_v38 = vpop.permute.xlu1 %302  ;;  %v1910_v33 = vld [vmem:[%s11196_s5 + $0x28] sm:$0xff] }
  0xea   :  { %515 = vperm.xlu0 %7298, %v160_v32   ;;  %6918 = vmatprep.mubr.msk.f32.mxu0 %vm815_vm1, %v725_v34  ;;  %vm601_vm13 = vcmp.eq.s32.totalorder %v303_v38, %v7650_v35  ;;  %vm608_vm5 = vcmp.eq.s32.totalorder %v7938_v36, %v7650_v35  ;;  %v173_v38 = vld [vmem:[%s11195_s4 + $0x3f0] sm:$0xff] }
  0xeb   :  { %494 = vperm.xlu1 %7299, %v153_v37   ;;  %v729_v48 = vsel %vm601_vm13, 1.0, %v7349_v42  ;;  %v736_v9 = vsel %vm608_vm5, 1.0, %v7349_v42 }
  0xed   :  { %v7953_v43 = vpop.permute.xlu0 %329  ;;  %6919 = vmatmul.mubr.msk.f32.gmra.mrb[38].mxu0 %vm815_vm1, %v726_v40  ;;  %v309_v45 = vpop.permute.xlu1 %308  ;;  %v1912_v40 = vld [vmem:[%s11196_s5 + $0x38] sm:$0xff] }
  0xee   :  { %521 = vperm.xlu0 %7298, %v162_v39   ;;  %6921 = vmatprep.mubr.msk.f32.mxu0 %vm815_vm1, %v727_v41  ;;  %vm603_vm15 = vcmp.eq.s32.totalorder %v309_v45, %v7650_v35  ;;  %vm610_vm7 = vcmp.eq.s32.totalorder %v7953_v43, %v7650_v35  ;;  %v1905_v45 = vld [vmem:[%s11196_s5] sm:$0xff] }
  0xef   :  { %500 = vperm.xlu1 %7299, %v155_v44   ;;  %v731_v54 = vsel %vm603_vm15, 1.0, %v7349_v42  ;;  %v738_v15 = vsel %vm610_vm7, 1.0, %v7349_v42 }
  0xf1   :  { %v7968_v49 = vpop.permute.xlu0 %335  ;;  %6922 = vmatmul.mubr.msk.f32.gmra.mrb[40].mxu0 %vm815_vm1, %v728_v47  ;;  %v315_v51 = vpop.permute.xlu1 %314  ;;  %v1914_v47 = vld [vmem:[%s11196_s5 + $0x48] sm:$0xff] }
  0xf2   :  { %527 = vperm.xlu0 %7298, %v164_v46   ;;  %6924 = vmatprep.mubr.msk.f32.mxu0 %vm815_vm1, %v729_v48  ;;  %vm605_vm2 = vcmp.eq.s32.totalorder %v315_v51, %v7650_v35  ;;  %vm612_vm9 = vcmp.eq.s32.totalorder %v7968_v49, %v7650_v35  ;;  %v1907_v51 = vld [vmem:[%s11196_s5 + $0x10] sm:$0xff] }
  0xf3   :  { %506 = vperm.xlu1 %7299, %v157_v50   ;;  %v733_v60 = vsel %vm605_vm2, 1.0, %v7349_v42  ;;  %v740_v21 = vsel %vm612_vm9, 1.0, %v7349_v42 }
  0xf5   :  { %v7983_v55 = vpop.permute.xlu0 %341  ;;  %6925 = vmatmul.mubr.msk.f32.gmra.mrb[42].mxu0 %vm815_vm1, %v730_v53  ;;  %v321_v57 = vpop.permute.xlu1 %320  ;;  %v1916_v53 = vld [vmem:[%s11196_s5 + $0x58] sm:$0xff] }
  0xf6   :  { %533 = vperm.xlu0 %7298, %v166_v52   ;;  %6927 = vmatprep.mubr.msk.f32.mxu0 %vm815_vm1, %v731_v54  ;;  %vm607_vm4 = vcmp.eq.s32.totalorder %v321_v57, %v7650_v35  ;;  %vm614_vm11 = vcmp.eq.s32.totalorder %v7983_v55, %v7650_v35  ;;  %v1909_v57 = vld [vmem:[%s11196_s5 + $0x20] sm:$0xff] }
  0xf7   :  { %512 = vperm.xlu1 %7299, %v159_v56   ;;  %v735_v2 = vsel %vm607_vm4, 1.0, %v7349_v42  ;;  %v742_v27 = vsel %vm614_vm11, 1.0, %v7349_v42 }
  0xf9   :  { %v7998_v61 = vpop.permute.xlu0 %347  ;;  %6928 = vmatmul.mubr.msk.f32.gmra.mrb[44].mxu0 %vm815_vm1, %v732_v59  ;;  %v327_v63 = vpop.permute.xlu1 %326  ;;  %v1918_v59 = vld [vmem:[%s11196_s5 + $0x68] sm:$0xff] }
  0xfa   :  { %539 = vperm.xlu0 %7298, %v168_v58   ;;  %6930 = vmatprep.mubr.msk.f32.mxu0 %vm815_vm1, %v733_v60  ;;  %vm609_vm6 = vcmp.eq.s32.totalorder %v327_v63, %v7650_v35  ;;  %vm616_vm13 = vcmp.eq.s32.totalorder %v7998_v61, %v7650_v35  ;;  %v1911_v63 = vld [vmem:[%s11196_s5 + $0x30] sm:$0xff] }
  0xfb   :  { %518 = vperm.xlu1 %7299, %v161_v62   ;;  %v737_v10 = vsel %vm609_vm6, 1.0, %v7349_v42  ;;  %v744_v34 = vsel %vm616_vm13, 1.0, %v7349_v42 }
  0xfd   :  { %v8013_v3 = vpop.permute.xlu0 %353  ;;  %6931 = vmatmul.mubr.msk.f32.gmra.mrb[46].mxu0 %vm815_vm1, %v734_v1  ;;  %v333_v7 = vpop.permute.xlu1 %332  ;;  %v1920_v1 = vld [vmem:[%s11196_s5 + $0x78] sm:$0xff] }
  0xfe   :  { %545 = vperm.xlu0 %7298, %v170_v0   ;;  %6933 = vmatprep.mubr.msk.f32.mxu0 %vm815_vm1, %v735_v2  ;;  %vm611_vm8 = vcmp.eq.s32.totalorder %v333_v7, %v7650_v35  ;;  %vm618_vm15 = vcmp.eq.s32.totalorder %v8013_v3, %v7650_v35  ;;  %v1913_v7 = vld [vmem:[%s11196_s5 + $0x40] sm:$0xff] }
  0xff   :  { %524 = vperm.xlu1 %7299, %v163_v4   ;;  %v739_v16 = vsel %vm611_vm8, 1.0, %v7349_v42  ;;  %v746_v41 = vsel %vm618_vm15, 1.0, %v7349_v42 }
 0x101   :  { %v8028_v11 = vpop.permute.xlu0 %359  ;;  %6934 = vmatmul.mubr.msk.f32.gmra.mrb[48].mxu0 %vm815_vm1, %v736_v9  ;;  %v339_v13 = vpop.permute.xlu1 %338  ;;  %v1922_v9 = vld [vmem:[%s11196_s5 + $0x88] sm:$0xff] }
 0x102   :  { %551 = vperm.xlu0 %7298, %v172_v8   ;;  %6936 = vmatprep.mubr.msk.f32.mxu0 %vm815_vm1, %v737_v10  ;;  %vm613_vm10 = vcmp.eq.s32.totalorder %v339_v13, %v7650_v35  ;;  %vm620_vm2 = vcmp.eq.s32.totalorder %v8028_v11, %v7650_v35  ;;  %v1915_v13 = vld [vmem:[%s11196_s5 + $0x50] sm:$0xff] }
 0x103   :  { %530 = vperm.xlu1 %7299, %v165_v12   ;;  %v741_v22 = vsel %vm613_vm10, 1.0, %v7349_v42  ;;  %v748_v48 = vsel %vm620_vm2, 1.0, %v7349_v42 }
 0x105   :  { %v8043_v17 = vpop.permute.xlu0 %365  ;;  %6937 = vmatmul.mubr.msk.f32.gmra.mrb[50].mxu0 %vm815_vm1, %v738_v15  ;;  %v345_v19 = vpop.permute.xlu1 %344  ;;  %v1924_v15 = vld [vmem:[%s11196_s5 + $0x98] sm:$0xff] }
 0x106   :  { %557 = vperm.xlu0 %7298, %v174_v14   ;;  %6939 = vmatprep.mubr.msk.f32.mxu0 %vm815_vm1, %v739_v16  ;;  %vm615_vm12 = vcmp.eq.s32.totalorder %v345_v19, %v7650_v35  ;;  %vm622_vm4 = vcmp.eq.s32.totalorder %v8043_v17, %v7650_v35  ;;  %v1917_v19 = vld [vmem:[%s11196_s5 + $0x60] sm:$0xff] }
 0x107   :  { %536 = vperm.xlu1 %7299, %v167_v18   ;;  %v743_v28 = vsel %vm615_vm12, 1.0, %v7349_v42  ;;  %v750_v54 = vsel %vm622_vm4, 1.0, %v7349_v42 }
 0x109   :  { %v8058_v23 = vpop.permute.xlu0 %371  ;;  %6940 = vmatmul.mubr.msk.f32.gmra.mrb[52].mxu0 %vm815_vm1, %v740_v21  ;;  %v351_v25 = vpop.permute.xlu1 %350  ;;  %v1926_v21 = vld [vmem:[%s11196_s5 + $0xa8] sm:$0xff] }
 0x10a   :  { %2037 = vperm.xlu0 %7298, %v1906_v20   ;;  %6942 = vmatprep.mubr.msk.f32.mxu0 %vm815_vm1, %v741_v22  ;;  %vm617_vm14 = vcmp.eq.s32.totalorder %v351_v25, %v7650_v35  ;;  %vm624_vm6 = vcmp.eq.s32.totalorder %v8058_v23, %v7650_v35  ;;  %v1919_v25 = vld [vmem:[%s11196_s5 + $0x70] sm:$0xff] }
 0x10b   :  { %542 = vperm.xlu1 %7299, %v169_v24   ;;  %v745_v36 = vsel %vm617_vm14, 1.0, %v7349_v42  ;;  %v752_v60 = vsel %vm624_vm6, 1.0, %v7349_v42 }
 0x10d   :  { %v8073_v29 = vpop.permute.xlu0 %377  ;;  %6943 = vmatmul.mubr.msk.f32.gmra.mrb[54].mxu0 %vm815_vm1, %v742_v27  ;;  %v357_v32 = vpop.permute.xlu1 %356  ;;  %v1928_v27 = vld [vmem:[%s11196_s5 + $0xb8] sm:$0xff] }
 0x10e   :  { %2043 = vperm.xlu0 %7298, %v1908_v26   ;;  %6945 = vmatprep.mubr.msk.f32.mxu0 %vm815_vm1, %v743_v28  ;;  %vm619_vm0 = vcmp.eq.s32.totalorder %v357_v32, %v7650_v35  ;;  %vm626_vm8 = vcmp.eq.s32.totalorder %v8073_v29, %v7650_v35  ;;  %v1921_v32 = vld [vmem:[%s11196_s5 + $0x80] sm:$0xff] }
 0x10f   :  { %548 = vperm.xlu1 %7299, %v171_v31   ;;  %v747_v43 = vsel %vm619_vm0, 1.0, %v7349_v42  ;;  %v754_v2 = vsel %vm626_vm8, 1.0, %v7349_v42 }
 0x111   :  { %v8088_v37 = vpop.permute.xlu0 %383  ;;  %6946 = vmatmul.mubr.msk.f32.gmra.mrb[56].mxu0 %vm815_vm1, %v744_v34  ;;  %v363_v39 = vpop.permute.xlu1 %362  ;;  %v1930_v34 = vld [vmem:[%s11196_s5 + $0xc8] sm:$0xff] }
 0x112   :  { %2049 = vperm.xlu0 %7298, %v1910_v33   ;;  %6948 = vmatprep.mubr.msk.f32.mxu0 %vm815_vm1, %v745_v36  ;;  %vm621_vm3 = vcmp.eq.s32.totalorder %v363_v39, %v7650_v35  ;;  %vm628_vm10 = vcmp.eq.s32.totalorder %v8088_v37, %v7650_v35  ;;  %v1923_v39 = vld [vmem:[%s11196_s5 + $0x90] sm:$0xff] }
 0x113   :  { %554 = vperm.xlu1 %7299, %v173_v38   ;;  %v749_v49 = vsel %vm621_vm3, 1.0, %v7349_v42  ;;  %v756_v10 = vsel %vm628_vm10, 1.0, %v7349_v42 }
 0x115   :  { %v8103_v44 = vpop.permute.xlu0 %389  ;;  %6949 = vmatmul.mubr.msk.f32.gmra.mrb[58].mxu0 %vm815_vm1, %v746_v41  ;;  %v369_v46 = vpop.permute.xlu1 %368  ;;  %v1932_v41 = vld [vmem:[%s11196_s5 + $0xd8] sm:$0xff] }
 0x116   :  { %2055 = vperm.xlu0 %7298, %v1912_v40   ;;  %6951 = vmatprep.mubr.msk.f32.mxu0 %vm815_vm1, %v747_v43  ;;  %vm623_vm5 = vcmp.eq.s32.totalorder %v369_v46, %v7650_v35  ;;  %vm630_vm12 = vcmp.eq.s32.totalorder %v8103_v44, %v7650_v35  ;;  %v1925_v46 = vld [vmem:[%s11196_s5 + $0xa0] sm:$0xff] }
 0x117   :  { %2034 = vperm.xlu1 %7299, %v1905_v45   ;;  %v751_v55 = vsel %vm623_vm5, 1.0, %v7349_v42  ;;  %v758_v16 = vsel %vm630_vm12, 1.0, %v7349_v42 }
 0x119   :  { %v8118_v50 = vpop.permute.xlu0 %395  ;;  %6952 = vmatmul.mubr.msk.f32.gmra.mrb[60].mxu0 %vm815_vm1, %v748_v48  ;;  %v375_v52 = vpop.permute.xlu1 %374  ;;  %v1934_v48 = vld [vmem:[%s11196_s5 + $0xe8] sm:$0xff] }
 0x11a   :  { %2061 = vperm.xlu0 %7298, %v1914_v47   ;;  %6954 = vmatprep.mubr.msk.f32.mxu0 %vm815_vm1, %v749_v49  ;;  %vm625_vm7 = vcmp.eq.s32.totalorder %v375_v52, %v7650_v35  ;;  %vm632_vm14 = vcmp.eq.s32.totalorder %v8118_v50, %v7650_v35  ;;  %v1927_v52 = vld [vmem:[%s11196_s5 + $0xb0] sm:$0xff] }
 0x11b   :  { %2040 = vperm.xlu1 %7299, %v1907_v51   ;;  %v753_v61 = vsel %vm625_vm7, 1.0, %v7349_v42  ;;  %v760_v22 = vsel %vm632_vm14, 1.0, %v7349_v42 }
 0x11d   :  { %v8133_v56 = vpop.permute.xlu0 %401  ;;  %6955 = vmatmul.mubr.msk.f32.gmra.mrb[62].mxu0 %vm815_vm1, %v750_v54  ;;  %v381_v58 = vpop.permute.xlu1 %380  ;;  %v1936_v54 = vld [vmem:[%s11196_s5 + $0xf8] sm:$0xff] }
 0x11e   :  { %2067 = vperm.xlu0 %7298, %v1916_v53   ;;  %6957 = vmatprep.mubr.msk.f32.mxu0 %vm815_vm1, %v751_v55  ;;  %vm627_vm9 = vcmp.eq.s32.totalorder %v381_v58, %v7650_v35  ;;  %vm634_vm0 = vcmp.eq.s32.totalorder %v8133_v56, %v7650_v35  ;;  %v1929_v58 = vld [vmem:[%s11196_s5 + $0xc0] sm:$0xff] }
 0x11f   :  { %2046 = vperm.xlu1 %7299, %v1909_v57   ;;  %v755_v3 = vsel %vm627_vm9, 1.0, %v7349_v42  ;;  %v762_v28 = vsel %vm634_vm0, 1.0, %v7349_v42 }
 0x121   :  { %v8148_v62 = vpop.permute.xlu0 %407  ;;  %6958 = vmatmul.mubr.msk.f32.gmra.mrb[64].mxu0 %vm815_vm1, %v752_v60  ;;  %v1938_v60 = vld [vmem:[%s11196_s5 + $0x108] sm:$0xff] }
 0x122   :  { %2073 = vperm.xlu0 %7298, %v1918_v59   ;;  %6960 = vmatprep.mubr.msk.f32.mxu0 %vm815_vm1, %v753_v61  ;;  %v387_v0 = vpop.permute.xlu1 %386  ;;  %vm636_vm3 = vcmp.eq.s32.totalorder %v8148_v62, %v7650_v35 }
 0x123   :  { %2052 = vperm.xlu1 %7299, %v1911_v63   ;;  %vm629_vm11 = vcmp.eq.s32.totalorder %v387_v0, %v7650_v35  ;;  %v764_v36 = vsel %vm636_vm3, 1.0, %v7349_v42  ;;  %v1931_v0 = vld [vmem:[%s11196_s5 + $0xd0] sm:$0xff] }
 0x124   :  { %v757_v11 = vsel %vm629_vm11, 1.0, %v7349_v42 }
 0x125   :  { %v8163_v4 = vpop.permute.xlu0 %413  ;;  %6961 = vmatmul.mubr.msk.f32.gmra.mrb[66].mxu0 %vm815_vm1, %v754_v2  ;;  %v1940_v2 = vld [vmem:[%s11196_s5 + $0x118] sm:$0xff] }
 0x126   :  { %2079 = vperm.xlu0 %7298, %v1920_v1   ;;  %6963 = vmatprep.mubr.msk.f32.mxu0 %vm815_vm1, %v755_v3  ;;  %v393_v8 = vpop.permute.xlu1 %392  ;;  %vm638_vm5 = vcmp.eq.s32.totalorder %v8163_v4, %v7650_v35 }
 0x127   :  { %2058 = vperm.xlu1 %7299, %v1913_v7   ;;  %vm631_vm13 = vcmp.eq.s32.totalorder %v393_v8, %v7650_v35  ;;  %v766_v43 = vsel %vm638_vm5, 1.0, %v7349_v42  ;;  %v1933_v8 = vld [vmem:[%s11196_s5 + $0xe0] sm:$0xff] }
 0x128   :  { %v759_v17 = vsel %vm631_vm13, 1.0, %v7349_v42 }
 0x129   :  { %v8178_v12 = vpop.permute.xlu0 %419  ;;  %6964 = vmatmul.mubr.msk.f32.gmra.mrb[68].mxu0 %vm815_vm1, %v756_v10  ;;  %v1942_v10 = vld [vmem:[%s11196_s5 + $0x128] sm:$0xff] }
 0x12a   :  { %2085 = vperm.xlu0 %7298, %v1922_v9   ;;  %6966 = vmatprep.mubr.msk.f32.mxu0 %vm815_vm1, %v757_v11  ;;  %v399_v14 = vpop.permute.xlu1 %398  ;;  %vm640_vm7 = vcmp.eq.s32.totalorder %v8178_v12, %v7650_v35 }
 0x12b   :  { %2064 = vperm.xlu1 %7299, %v1915_v13   ;;  %vm633_vm15 = vcmp.eq.s32.totalorder %v399_v14, %v7650_v35  ;;  %v768_v49 = vsel %vm640_vm7, 1.0, %v7349_v42  ;;  %v1935_v14 = vld [vmem:[%s11196_s5 + $0xf0] sm:$0xff] }
 0x12c   :  { %v761_v23 = vsel %vm633_vm15, 1.0, %v7349_v42 }
 0x12d   :  { %v8193_v18 = vpop.permute.xlu0 %425  ;;  %6967 = vmatmul.mubr.msk.f32.gmra.mrb[70].mxu0 %vm815_vm1, %v758_v16  ;;  %v1944_v16 = vld [vmem:[%s11196_s5 + $0x138] sm:$0xff] }
 0x12e   :  { %2091 = vperm.xlu0 %7298, %v1924_v15   ;;  %6969 = vmatprep.mubr.msk.f32.mxu0 %vm815_vm1, %v759_v17  ;;  %v405_v20 = vpop.permute.xlu1 %404  ;;  %vm642_vm9 = vcmp.eq.s32.totalorder %v8193_v18, %v7650_v35 }
 0x12f   :  { %2070 = vperm.xlu1 %7299, %v1917_v19   ;;  %vm635_vm2 = vcmp.eq.s32.totalorder %v405_v20, %v7650_v35  ;;  %v770_v55 = vsel %vm642_vm9, 1.0, %v7349_v42  ;;  %v1937_v20 = vld [vmem:[%s11196_s5 + $0x100] sm:$0xff] }
 0x130   :  { %v763_v29 = vsel %vm635_vm2, 1.0, %v7349_v42 }
 0x131   :  { %v8208_v24 = vpop.permute.xlu0 %431  ;;  %6970 = vmatmul.mubr.msk.f32.gmra.mrb[72].mxu0 %vm815_vm1, %v760_v22  ;;  %v1946_v22 = vld [vmem:[%s11196_s5 + $0x148] sm:$0xff] }
 0x132   :  { %2097 = vperm.xlu0 %7298, %v1926_v21   ;;  %6972 = vmatprep.mubr.msk.f32.mxu0 %vm815_vm1, %v761_v23  ;;  %v411_v26 = vpop.permute.xlu1 %410  ;;  %vm644_vm11 = vcmp.eq.s32.totalorder %v8208_v24, %v7650_v35 }
 0x133   :  { %2076 = vperm.xlu1 %7299, %v1919_v25   ;;  %vm637_vm4 = vcmp.eq.s32.totalorder %v411_v26, %v7650_v35  ;;  %v772_v61 = vsel %vm644_vm11, 1.0, %v7349_v42  ;;  %v1939_v26 = vld [vmem:[%s11196_s5 + $0x110] sm:$0xff] }
 0x134   :  { %v765_v37 = vsel %vm637_vm4, 1.0, %v7349_v42 }
 0x135   :  { %v8223_v31 = vpop.permute.xlu0 %437  ;;  %6973 = vmatmul.mubr.msk.f32.gmra.mrb[74].mxu0 %vm815_vm1, %v762_v28  ;;  %v1948_v28 = vld [vmem:[%s11196_s5 + $0x158] sm:$0xff] }
 0x136   :  { %2103 = vperm.xlu0 %7298, %v1928_v27   ;;  %6975 = vmatprep.mubr.msk.f32.mxu0 %vm815_vm1, %v763_v29  ;;  %v417_v33 = vpop.permute.xlu1 %416  ;;  %vm646_vm13 = vcmp.eq.s32.totalorder %v8223_v31, %v7650_v35 }
 0x137   :  { %2082 = vperm.xlu1 %7299, %v1921_v32   ;;  %vm639_vm6 = vcmp.eq.s32.totalorder %v417_v33, %v7650_v35  ;;  %v774_v3 = vsel %vm646_vm13, 1.0, %v7349_v42  ;;  %v1941_v33 = vld [vmem:[%s11196_s5 + $0x120] sm:$0xff] }
 0x138   :  { %v767_v44 = vsel %vm639_vm6, 1.0, %v7349_v42 }
 0x139   :  { %v8238_v38 = vpop.permute.xlu0 %443  ;;  %6976 = vmatmul.mubr.msk.f32.gmra.mrb[76].mxu0 %vm815_vm1, %v764_v36  ;;  %v1950_v36 = vld [vmem:[%s11196_s5 + $0x168] sm:$0xff] }
 0x13a   :  { %2109 = vperm.xlu0 %7298, %v1930_v34   ;;  %6978 = vmatprep.mubr.msk.f32.mxu0 %vm815_vm1, %v765_v37  ;;  %v423_v40 = vpop.permute.xlu1 %422  ;;  %vm648_vm15 = vcmp.eq.s32.totalorder %v8238_v38, %v7650_v35 }
 0x13b   :  { %2088 = vperm.xlu1 %7299, %v1923_v39   ;;  %vm641_vm8 = vcmp.eq.s32.totalorder %v423_v40, %v7650_v35  ;;  %v776_v11 = vsel %vm648_vm15, 1.0, %v7349_v42  ;;  %v1943_v40 = vld [vmem:[%s11196_s5 + $0x130] sm:$0xff] }
 0x13c   :  { %v769_v50 = vsel %vm641_vm8, 1.0, %v7349_v42 }
 0x13d   :  { %v8253_v45 = vpop.permute.xlu0 %449  ;;  %6979 = vmatmul.mubr.msk.f32.gmra.mrb[78].mxu0 %vm815_vm1, %v766_v43  ;;  %v1952_v43 = vld [vmem:[%s11196_s5 + $0x178] sm:$0xff] }
 0x13e   :  { %2115 = vperm.xlu0 %7298, %v1932_v41   ;;  %6981 = vmatprep.mubr.msk.f32.mxu0 %vm815_vm1, %v767_v44  ;;  %v429_v47 = vpop.permute.xlu1 %428  ;;  %vm650_vm2 = vcmp.eq.s32.totalorder %v8253_v45, %v7650_v35 }
 0x13f   :  { %2094 = vperm.xlu1 %7299, %v1925_v46   ;;  %vm643_vm10 = vcmp.eq.s32.totalorder %v429_v47, %v7650_v35  ;;  %v778_v17 = vsel %vm650_vm2, 1.0, %v7349_v42  ;;  %v1945_v47 = vld [vmem:[%s11196_s5 + $0x140] sm:$0xff] }
 0x140   :  { %v771_v56 = vsel %vm643_vm10, 1.0, %v7349_v42 }
 0x141   :  { %v8268_v51 = vpop.permute.xlu0 %455  ;;  %6982 = vmatmul.mubr.msk.f32.gmra.mrb[80].mxu0 %vm815_vm1, %v768_v49  ;;  %v1954_v49 = vld [vmem:[%s11196_s5 + $0x188] sm:$0xff] }
 0x142   :  { %2121 = vperm.xlu0 %7298, %v1934_v48   ;;  %6984 = vmatprep.mubr.msk.f32.mxu0 %vm815_vm1, %v769_v50  ;;  %v435_v53 = vpop.permute.xlu1 %434  ;;  %vm652_vm4 = vcmp.eq.s32.totalorder %v8268_v51, %v7650_v35 }
 0x143   :  { %2100 = vperm.xlu1 %7299, %v1927_v52   ;;  %vm645_vm12 = vcmp.eq.s32.totalorder %v435_v53, %v7650_v35  ;;  %v780_v23 = vsel %vm652_vm4, 1.0, %v7349_v42  ;;  %v1947_v53 = vld [vmem:[%s11196_s5 + $0x150] sm:$0xff] }
 0x144   :  { %v773_v62 = vsel %vm645_vm12, 1.0, %v7349_v42 }
 0x145   :  { %v8283_v57 = vpop.permute.xlu0 %461  ;;  %6985 = vmatmul.mubr.msk.f32.gmra.mrb[82].mxu0 %vm815_vm1, %v770_v55  ;;  %v1956_v55 = vld [vmem:[%s11196_s5 + $0x198] sm:$0xff] }
 0x146   :  { %2127 = vperm.xlu0 %7298, %v1936_v54   ;;  %6987 = vmatprep.mubr.msk.f32.mxu0 %vm815_vm1, %v771_v56  ;;  %v441_v59 = vpop.permute.xlu1 %440  ;;  %vm654_vm6 = vcmp.eq.s32.totalorder %v8283_v57, %v7650_v35 }
 0x147   :  { %2106 = vperm.xlu1 %7299, %v1929_v58   ;;  %vm647_vm14 = vcmp.eq.s32.totalorder %v441_v59, %v7650_v35  ;;  %v782_v29 = vsel %vm654_vm6, 1.0, %v7349_v42  ;;  %v1949_v59 = vld [vmem:[%s11196_s5 + $0x160] sm:$0xff] }
 0x148   :  { %v775_v4 = vsel %vm647_vm14, 1.0, %v7349_v42 }
 0x149   :  { %v8298_v63 = vpop.permute.xlu0 %467  ;;  %6988 = vmatmul.mubr.msk.f32.gmra.mrb[84].mxu0 %vm815_vm1, %v772_v61  ;;  %v1958_v61 = vld [vmem:[%s11196_s5 + $0x1a8] sm:$0xff] }
 0x14a   :  { %2133 = vperm.xlu0 %7298, %v1938_v60   ;;  %6990 = vmatprep.mubr.msk.f32.mxu0 %vm815_vm1, %v773_v62  ;;  %v447_v1 = vpop.permute.xlu1 %446  ;;  %vm656_vm8 = vcmp.eq.s32.totalorder %v8298_v63, %v7650_v35 }
 0x14b   :  { %2112 = vperm.xlu1 %7299, %v1931_v0   ;;  %vm649_vm0 = vcmp.eq.s32.totalorder %v447_v1, %v7650_v35  ;;  %v784_v37 = vsel %vm656_vm8, 1.0, %v7349_v42  ;;  %v1951_v1 = vld [vmem:[%s11196_s5 + $0x170] sm:$0xff] }
 0x14c   :  { %v777_v12 = vsel %vm649_vm0, 1.0, %v7349_v42 }
 0x14d   :  { %v8313_v7 = vpop.permute.xlu0 %473  ;;  %6991 = vmatmul.mubr.msk.f32.gmra.mrb[86].mxu0 %vm815_vm1, %v774_v3  ;;  %v1960_v3 = vld [vmem:[%s11196_s5 + $0x1b8] sm:$0xff] }
 0x14e   :  { %2139 = vperm.xlu0 %7298, %v1940_v2   ;;  %6993 = vmatprep.mubr.msk.f32.mxu0 %vm815_vm1, %v775_v4  ;;  %v453_v9 = vpop.permute.xlu1 %452  ;;  %vm658_vm10 = vcmp.eq.s32.totalorder %v8313_v7, %v7650_v35 }
 0x14f   :  { %2118 = vperm.xlu1 %7299, %v1933_v8   ;;  %vm651_vm3 = vcmp.eq.s32.totalorder %v453_v9, %v7650_v35  ;;  %v786_v44 = vsel %vm658_vm10, 1.0, %v7349_v42 }
 0x150   :  { %v779_v18 = vsel %vm651_vm3, 1.0, %v7349_v42 }
 0x151   :  { %v8328_v13 = vpop.permute.xlu0 %479  ;;  %6994 = vmatmul.mubr.msk.f32.gmra.mrb[88].mxu0 %vm815_vm1, %v776_v11  ;;  %v1953_v11 = vld [vmem:[%s11196_s5 + $0x180] sm:$0xff] }
 0x152   :  { %2145 = vperm.xlu0 %7298, %v1942_v10   ;;  %6996 = vmatprep.mubr.msk.f32.mxu0 %vm815_vm1, %v777_v12  ;;  %v459_v15 = vpop.permute.xlu1 %458  ;;  %vm660_vm12 = vcmp.eq.s32.totalorder %v8328_v13, %v7650_v35  ;;  %v1962_v13 = vld [vmem:[%s11196_s5 + $0x1c8] sm:$0xff] }
 0x153   :  { %2124 = vperm.xlu1 %7299, %v1935_v14   ;;  %vm653_vm5 = vcmp.eq.s32.totalorder %v459_v15, %v7650_v35  ;;  %v788_v50 = vsel %vm660_vm12, 1.0, %v7349_v42 }
 0x154   :  { %v781_v24 = vsel %vm653_vm5, 1.0, %v7349_v42 }
 0x155   :  { %v8343_v19 = vpop.permute.xlu0 %485  ;;  %6997 = vmatmul.mubr.msk.f32.gmra.mrb[90].mxu0 %vm815_vm1, %v778_v17 }
 0x156   :  { %2151 = vperm.xlu0 %7298, %v1944_v16   ;;  %6999 = vmatprep.mubr.msk.f32.mxu0 %vm815_vm1, %v779_v18  ;;  %v465_v21 = vpop.permute.xlu1 %464  ;;  %vm662_vm14 = vcmp.eq.s32.totalorder %v8343_v19, %v7650_v35  ;;  %v1955_v19 = vld [vmem:[%s11196_s5 + $0x190] sm:$0xff] }
 0x157   :  { %2130 = vperm.xlu1 %7299, %v1937_v20   ;;  %vm655_vm7 = vcmp.eq.s32.totalorder %v465_v21, %v7650_v35  ;;  %v790_v56 = vsel %vm662_vm14, 1.0, %v7349_v42  ;;  %v1964_v21 = vld [vmem:[%s11196_s5 + $0x1d8] sm:$0xff] }
 0x158   :  { %v783_v31 = vsel %vm655_vm7, 1.0, %v7349_v42 }
 0x159   :  { %v8358_v25 = vpop.permute.xlu0 %491  ;;  %7000 = vmatmul.mubr.msk.f32.gmra.mrb[92].mxu0 %vm815_vm1, %v780_v23 }
 0x15a   :  { %2157 = vperm.xlu0 %7298, %v1946_v22   ;;  %7002 = vmatprep.mubr.msk.f32.mxu0 %vm815_vm1, %v781_v24  ;;  %v471_v27 = vpop.permute.xlu1 %470  ;;  %vm664_vm0 = vcmp.eq.s32.totalorder %v8358_v25, %v7650_v35 }
 0x15b   :  { %2136 = vperm.xlu1 %7299, %v1939_v26   ;;  %vm657_vm9 = vcmp.eq.s32.totalorder %v471_v27, %v7650_v35  ;;  %v792_v62 = vsel %vm664_vm0, 1.0, %v7349_v42  ;;  %v1957_v27 = vld [vmem:[%s11196_s5 + $0x1a0] sm:$0xff] }
 0x15c   :  { %v785_v38 = vsel %vm657_vm9, 1.0, %v7349_v42 }
 0x15d   :  { %v8373_v32 = vpop.permute.xlu0 %497  ;;  %7003 = vmatmul.mubr.msk.f32.gmra.mrb[94].mxu0 %vm815_vm1, %v782_v29  ;;  %v1966_v29 = vld [vmem:[%s11196_s5 + $0x1e8] sm:$0xff] }
 0x15e   :  { %2163 = vperm.xlu0 %7298, %v1948_v28   ;;  %7005 = vmatprep.mubr.msk.f32.mxu0 %vm815_vm1, %v783_v31  ;;  %v477_v34 = vpop.permute.xlu1 %476  ;;  %vm666_vm3 = vcmp.eq.s32.totalorder %v8373_v32, %v7650_v35 }
 0x15f   :  { %2142 = vperm.xlu1 %7299, %v1941_v33   ;;  %vm659_vm11 = vcmp.eq.s32.totalorder %v477_v34, %v7650_v35  ;;  %v794_v4 = vsel %vm666_vm3, 1.0, %v7349_v42 }
 0x160   :  { %v787_v45 = vsel %vm659_vm11, 1.0, %v7349_v42 }
 0x161   :  { %v8388_v39 = vpop.permute.xlu0 %503  ;;  %7006 = vmatmul.mubr.msk.f32.gmra.mrb[96].mxu0 %vm815_vm1, %v784_v37  ;;  %v1959_v37 = vld [vmem:[%s11196_s5 + $0x1b0] sm:$0xff] }
 0x162   :  { %2169 = vperm.xlu0 %7298, %v1950_v36   ;;  %7008 = vmatprep.mubr.msk.f32.mxu0 %vm815_vm1, %v785_v38  ;;  %v483_v41 = vpop.permute.xlu1 %482  ;;  %vm668_vm5 = vcmp.eq.s32.totalorder %v8388_v39, %v7650_v35  ;;  %v1968_v39 = vld [vmem:[%s11196_s5 + $0x1f8] sm:$0xff] }
 0x163   :  { %2148 = vperm.xlu1 %7299, %v1943_v40   ;;  %vm661_vm13 = vcmp.eq.s32.totalorder %v483_v41, %v7650_v35  ;;  %v796_v14 = vsel %vm668_vm5, 1.0, %v7349_v42 }
 0x164   :  { %v789_v51 = vsel %vm661_vm13, 1.0, %v7349_v42 }
 0x165   :  { %v8403_v46 = vpop.permute.xlu0 %509  ;;  %7009 = vmatmul.mubr.msk.f32.gmra.mrb[98].mxu0 %vm815_vm1, %v786_v44 }
 0x166   :  { %2175 = vperm.xlu0 %7298, %v1952_v43   ;;  %7011 = vmatprep.mubr.msk.f32.mxu0 %vm815_vm1, %v787_v45  ;;  %v489_v48 = vpop.permute.xlu1 %488  ;;  %vm670_vm7 = vcmp.eq.s32.totalorder %v8403_v46, %v7650_v35  ;;  %v1961_v46 = vld [vmem:[%s11196_s5 + $0x1c0] sm:$0xff] }
 0x167   :  { %2154 = vperm.xlu1 %7299, %v1945_v47   ;;  %vm663_vm15 = vcmp.eq.s32.totalorder %v489_v48, %v7650_v35  ;;  %v798_v22 = vsel %vm670_vm7, 1.0, %v7349_v42  ;;  %v1970_v48 = vld [vmem:[%s11196_s5 + $0x208] sm:$0xff] }
 0x168   :  { %v791_v57 = vsel %vm663_vm15, 1.0, %v7349_v42 }
 0x169   :  { %v8418_v52 = vpop.permute.xlu0 %515  ;;  %7012 = vmatmul.mubr.msk.f32.gmra.mrb[100].mxu0 %vm815_vm1, %v788_v50 }
 0x16a   :  { %2181 = vperm.xlu0 %7298, %v1954_v49   ;;  %7014 = vmatprep.mubr.msk.f32.mxu0 %vm815_vm1, %v789_v51  ;;  %v495_v54 = vpop.permute.xlu1 %494  ;;  %vm672_vm9 = vcmp.eq.s32.totalorder %v8418_v52, %v7650_v35 }
 0x16b   :  { %2160 = vperm.xlu1 %7299, %v1947_v53   ;;  %vm665_vm2 = vcmp.eq.s32.totalorder %v495_v54, %v7650_v35  ;;  %v800_v31 = vsel %vm672_vm9, 1.0, %v7349_v42  ;;  %v1963_v54 = vld [vmem:[%s11196_s5 + $0x1d0] sm:$0xff] }
 0x16c   :  { %v793_v63 = vsel %vm665_vm2, 1.0, %v7349_v42 }
 0x16d   :  { %v8433_v58 = vpop.permute.xlu0 %521  ;;  %7015 = vmatmul.mubr.msk.f32.gmra.mrb[102].mxu0 %vm815_vm1, %v790_v56  ;;  %v1972_v56 = vld [vmem:[%s11196_s5 + $0x218] sm:$0xff] }
 0x16e   :  { %2187 = vperm.xlu0 %7298, %v1956_v55   ;;  %7017 = vmatprep.mubr.msk.f32.mxu0 %vm815_vm1, %v791_v57  ;;  %v501_v60 = vpop.permute.xlu1 %500  ;;  %vm674_vm11 = vcmp.eq.s32.totalorder %v8433_v58, %v7650_v35 }
 0x16f   :  { %2166 = vperm.xlu1 %7299, %v1949_v59   ;;  %vm667_vm4 = vcmp.eq.s32.totalorder %v501_v60, %v7650_v35  ;;  %v802_v40 = vsel %vm674_vm11, 1.0, %v7349_v42 }
 0x170   :  { %v795_v8 = vsel %vm667_vm4, 1.0, %v7349_v42 }
 0x171   :  { %v8448_v0 = vpop.permute.xlu0 %527  ;;  %7018 = vmatmul.mubr.msk.f32.gmra.mrb[104].mxu0 %vm815_vm1, %v792_v62  ;;  %v1965_v62 = vld [vmem:[%s11196_s5 + $0x1e0] sm:$0xff] }
 0x172   :  { %2193 = vperm.xlu0 %7298, %v1958_v61   ;;  %7020 = vmatprep.mubr.msk.f32.mxu0 %vm815_vm1, %v793_v63  ;;  %v507_v2 = vpop.permute.xlu1 %506  ;;  %vm676_vm13 = vcmp.eq.s32.totalorder %v8448_v0, %v7650_v35  ;;  %v1974_v0 = vld [vmem:[%s11196_s5 + $0x228] sm:$0xff] }
 0x173   :  { %2172 = vperm.xlu1 %7299, %v1951_v1   ;;  %vm669_vm6 = vcmp.eq.s32.totalorder %v507_v2, %v7650_v35  ;;  %v804_v49 = vsel %vm676_vm13, 1.0, %v7349_v42 }
 0x174   :  { %v8460_v7 = vpop.f32.mrb[0].mxu0  ;;  %v797_v16 = vsel %vm669_vm6, 1.0, %v7349_v42 }
 0x175   :  { %v8465_v9 = vpop.permute.xlu0 %533  ;;  %v8467_v10 = vpop.f32.mrb[1].mxu0  ;;  %7021 = vmatmul.mubr.msk.f32.gmra.mrb[106].mxu0 %vm815_vm1, %v794_v4 }
 0x176   :  { %2199 = vperm.xlu0 %7298, %v1960_v3   ;;  %7023 = vmatprep.mubr.msk.f32.mxu0 %vm815_vm1, %v795_v8  ;;  %v513_v12 = vpop.permute.xlu1 %512  ;;  %vm678_vm15 = vcmp.eq.s32.totalorder %v8465_v9, %v7650_v35  ;;  %v1967_v9 = vld [vmem:[%s11196_s5 + $0x1f0] sm:$0xff] }
 0x177   :  { %2178 = vperm.xlu1 %7299, %v1953_v11   ;;  %vm671_vm8 = vcmp.eq.s32.totalorder %v513_v12, %v7650_v35  ;;  %v806_v57 = vsel %vm678_vm15, 1.0, %v7349_v42  ;;  %v1976_v12 = vld [vmem:[%s11196_s5 + $0x238] sm:$0xff] }
 0x178   :  { %v8479_v15 = vpop.f32.mrb[2].mxu0  ;;  %v799_v24 = vsel %vm671_vm8, 1.0, %v7349_v42 }
 0x179   :  { %v8484_v17 = vpop.permute.xlu0 %539  ;;  %v8486_v18 = vpop.f32.mrb[3].mxu0  ;;  %7024 = vmatmul.mubr.msk.f32.gmra.mrb[108].mxu0 %vm815_vm1, %v796_v14 }
 0x17a   :  { %2205 = vperm.xlu0 %7298, %v1962_v13   ;;  %7026 = vmatprep.mubr.msk.f32.mxu0 %vm815_vm1, %v797_v16  ;;  %v519_v20 = vpop.permute.xlu1 %518  ;;  %vm680_vm2 = vcmp.eq.s32.totalorder %v8484_v17, %v7650_v35 }
 0x17b   :  { %2184 = vperm.xlu1 %7299, %v1955_v19   ;;  %vm673_vm10 = vcmp.eq.s32.totalorder %v519_v20, %v7650_v35  ;;  %v808_v1 = vsel %vm680_vm2, 1.0, %v7349_v42  ;;  %v1969_v20 = vld [vmem:[%s11196_s5 + $0x200] sm:$0xff] }
 0x17c   :  { %v8498_v23 = vpop.f32.mrb[4].mxu0  ;;  %v801_v33 = vsel %vm673_vm10, 1.0, %v7349_v42 }
 0x17d   :  { %v8503_v25 = vpop.permute.xlu0 %545  ;;  %v8505_v26 = vpop.f32.mrb[5].mxu0  ;;  %7027 = vmatmul.mubr.msk.f32.gmra.mrb[110].mxu0 %vm815_vm1, %v798_v22  ;;  %v1978_v22 = vld [vmem:[%s11196_s5 + $0x248] sm:$0xff] }
 0x17e   :  { %2211 = vperm.xlu0 %7298, %v1964_v21   ;;  %7029 = vmatprep.mubr.msk.f32.mxu0 %vm815_vm1, %v799_v24  ;;  %v525_v28 = vpop.permute.xlu1 %524  ;;  %vm682_vm4 = vcmp.eq.s32.totalorder %v8503_v25, %v7650_v35 }
 0x17f   :  { %2190 = vperm.xlu1 %7299, %v1957_v27   ;;  %vm675_vm12 = vcmp.eq.s32.totalorder %v525_v28, %v7650_v35  ;;  %v810_v13 = vsel %vm682_vm4, 1.0, %v7349_v42 }
 0x180   :  { %v8517_v32 = vpop.f32.mrb[6].mxu0  ;;  %v803_v43 = vsel %vm675_vm12, 1.0, %v7349_v42 }
 0x181   :  { %v8522_v34 = vpop.permute.xlu0 %551  ;;  %v8524_v36 = vpop.f32.mrb[7].mxu0  ;;  %7030 = vmatmul.mubr.msk.f32.gmra.mrb[112].mxu0 %vm815_vm1, %v800_v31 }
 0x182   :  { %2217 = vperm.xlu0 %7298, %v1966_v29   ;;  %7032 = vmatprep.mubr.msk.f32.mxu0 %vm815_vm1, %v801_v33  ;;  %v531_v38 = vpop.permute.xlu1 %530  ;;  %vm684_vm6 = vcmp.eq.s32.totalorder %v8522_v34, %v7650_v35  ;;  %v1971_v33 = vld [vmem:[%s11196_s5 + $0x210] sm:$0xff] }
 0x183   :  { %2196 = vperm.xlu1 %7299, %v1959_v37   ;;  %vm677_vm14 = vcmp.eq.s32.totalorder %v531_v38, %v7650_v35  ;;  %v812_v24 = vsel %vm684_vm6, 1.0, %v7349_v42  ;;  %v1980_v38 = vld [vmem:[%s11196_s5 + $0x258] sm:$0xff] }
 0x184   :  { %v8536_v41 = vpop.f32.mrb[8].mxu0  ;;  %v805_v51 = vsel %vm677_vm14, 1.0, %v7349_v42 }
 0x185   :  { %v8541_v44 = vpop.permute.xlu0 %557  ;;  %v8543_v45 = vpop.f32.mrb[9].mxu0  ;;  %7033 = vmatmul.mubr.msk.f32.gmra.mrb[114].mxu0 %vm815_vm1, %v802_v40 }
 0x186   :  { %2223 = vperm.xlu0 %7298, %v1968_v39   ;;  %7035 = vmatprep.mubr.msk.f32.mxu0 %vm815_vm1, %v803_v43  ;;  %v537_v47 = vpop.permute.xlu1 %536  ;;  %vm686_vm10 = vcmp.eq.s32.totalorder %v8541_v44, %v7650_v35 }
 0x187   :  { %2202 = vperm.xlu1 %7299, %v1961_v46   ;;  %vm679_vm0 = vcmp.eq.s32.totalorder %v537_v47, %v7650_v35  ;;  %v814_v39 = vsel %vm686_vm10, 1.0, %v7349_v42  ;;  %v1973_v47 = vld [vmem:[%s11196_s5 + $0x220] sm:$0xff] }
 0x188   :  { %v8555_v50 = vpop.f32.mrb[10].mxu0  ;;  %v807_v59 = vsel %vm679_vm0, 1.0, %v7349_v42 }
 0x189   :  { %v8560_v52 = vpop.permute.xlu0 %2037  ;;  %v8562_v53 = vpop.f32.mrb[11].mxu0  ;;  %7036 = vmatmul.mubr.msk.f32.gmra.mrb[116].mxu0 %vm815_vm1, %v804_v49 }
 0x18a   :  { %2229 = vperm.xlu0 %7298, %v1970_v48   ;;  %7038 = vmatprep.mubr.msk.f32.mxu0 %vm815_vm1, %v805_v51  ;;  %v543_v55 = vpop.permute.xlu1 %542  ;;  %vm2418_vm8 = vcmp.eq.s32.totalorder %v8560_v52, %v7650_v35  ;;  %v1982_v51 = vld [vmem:[%s11196_s5 + $0x268] sm:$0xff] }
 0x18b   :  { %2208 = vperm.xlu1 %7299, %v1963_v54   ;;  %vm681_vm3 = vcmp.eq.s32.totalorder %v543_v55, %v7650_v35  ;;  %v2546_v34 = vsel %vm2418_vm8, 1.0, %v7349_v42 }
 0x18c   :  { %v8574_v58 = vpop.f32.mrb[12].mxu0  ;;  %v809_v3 = vsel %vm681_vm3, 1.0, %v7349_v42 }
 0x18d   :  { %v8579_v60 = vpop.permute.xlu0 %2043  ;;  %v8581_v61 = vpop.f32.mrb[13].mxu0  ;;  %7039 = vmatmul.mubr.msk.f32.gmra.mrb[118].mxu0 %vm815_vm1, %v806_v57  ;;  %v1975_v57 = vld [vmem:[%s11196_s5 + $0x230] sm:$0xff] }
 0x18e   :  { %2235 = vperm.xlu0 %7298, %v1972_v56   ;;  %7041 = vmatprep.mubr.msk.f32.mxu0 %vm815_vm1, %v807_v59  ;;  %v549_v63 = vpop.permute.xlu1 %548  ;;  %vm2420_vm11 = vcmp.eq.s32.totalorder %v8579_v60, %v7650_v35 }
 0x18f   :  { %2214 = vperm.xlu1 %7299, %v1965_v62   ;;  %vm683_vm5 = vcmp.eq.s32.totalorder %v549_v63, %v7650_v35  ;;  %v2548_v48 = vsel %vm2420_vm11, 1.0, %v7349_v42  ;;  %v1984_v62 = vld [vmem:[%s11196_s5 + $0x278] sm:$0xff] }
 0x190   :  { %v8593_v2 = vpop.f32.mrb[14].mxu0  ;;  %v811_v16 = vsel %vm683_vm5, 1.0, %v7349_v42 }
 0x191   :  { %v8598_v4 = vpop.permute.xlu0 %2049  ;;  %v8600_v8 = vpop.f32.mrb[15].mxu0  ;;  %7042 = vmatmul.mubr.msk.f32.gmra.mrb[120].mxu0 %vm815_vm1, %v808_v1 }
 0x192   :  { %2241 = vperm.xlu0 %7298, %v1974_v0   ;;  %7044 = vmatprep.mubr.msk.f32.mxu0 %vm815_vm1, %v809_v3  ;;  %v555_v11 = vpop.permute.xlu1 %554  ;;  %vm2422_vm13 = vcmp.eq.s32.totalorder %v8598_v4, %v7650_v35  ;;  %v1977_v4 = vld [vmem:[%s11196_s5 + $0x240] sm:$0xff] }
 0x193   :  { %2220 = vperm.xlu1 %7299, %v1967_v9   ;;  %vm685_vm7 = vcmp.eq.s32.totalorder %v555_v11, %v7650_v35  ;;  %v2550_v59 = vsel %vm2422_vm13, 1.0, %v7349_v42 }
 0x194   :  { %v8612_v14 = vpop.f32.mrb[16].mxu0  ;;  %v813_v27 = vsel %vm685_vm7, 1.0, %v7349_v42 }
 0x195   :  { %v8617_v17 = vpop.permute.xlu0 %2055  ;;  %v8619_v19 = vpop.f32.mrb[17].mxu0  ;;  %7045 = vmatmul.mubr.msk.f32.gmra.mrb[122].mxu0 %vm815_vm1, %v810_v13 }
 0x196   :  { %2247 = vperm.xlu0 %7298, %v1976_v12   ;;  %7047 = vmatprep.mubr.msk.f32.mxu0 %vm815_vm1, %v811_v16  ;;  %v2035_v21 = vpop.permute.xlu1 %2034  ;;  %vm2424_vm15 = vcmp.eq.s32.totalorder %v8617_v17, %v7650_v35  ;;  %v1986_v12 = vld [vmem:[%s11196_s5 + $0x288] sm:$0xff] }
 0x197   :  { %2226 = vperm.xlu1 %7299, %v1969_v20   ;;  %vm2417_vm9 = vcmp.eq.s32.totalorder %v2035_v21, %v7650_v35  ;;  %v2552_v9 = vsel %vm2424_vm15, 1.0, %v7349_v42  ;;  %v1979_v21 = vld [vmem:[%s11196_s5 + $0x250] sm:$0xff] }
 0x198   :  { %v8633_v25 = vpop.f32.mrb[18].mxu0  ;;  %v2545_v31 = vsel %vm2417_vm9, 1.0, %v7349_v42 }
 0x199   :  { %v8639_v28 = vpop.permute.xlu0 %2061  ;;  %v8641_v29 = vpop.f32.mrb[19].mxu0  ;;  %7048 = vmatmul.mubr.msk.f32.gmra.mrb[124].mxu0 %vm815_vm1, %v812_v24  ;;  %7069 = vmatprep.mubr.msk.f32.mxu1 %vm815_vm1, %v2545_v31 }
 0x19a   :  { %2253 = vperm.xlu0 %7298, %v1978_v22   ;;  %7050 = vmatprep.mubr.msk.f32.mxu0 %vm815_vm1, %v813_v27  ;;  %v2041_v37 = vpop.permute.xlu1 %2040  ;;  %vm2426_vm2 = vcmp.eq.s32.totalorder %v8639_v28, %v7650_v35  ;;  %v1988_v27 = vld [vmem:[%s11196_s5 + $0x298] sm:$0xff] }
 0x19b   :  { %vm2419_vm12 = vcmp.eq.s32.totalorder %v2041_v37, %v7650_v35  ;;  %7070 = vmatmul.mubr.msk.f32.vlgmr.msra.gmra.mrb[0].mxu1 %vm815_vm1, %v2546_v34  ;;  %2232 = vperm.xlu1 %7299, %v1971_v33   ;;  %v2554_v22 = vsel %vm2426_vm2, 1.0, %v7349_v42  ;;  %v1981_v37 = vld [vmem:[%s11196_s5 + $0x260] sm:$0xff] }
 0x19c   :  { %v8658_v40 = vpop.f32.mrb[20].mxu0  ;;  %v2547_v43 = vsel %vm2419_vm12, 1.0, %v7349_v42 }
 0x19d   :  { %v8662_v44 = vpop.permute.xlu0 %2067  ;;  %v8664_v46 = vpop.f32.mrb[21].mxu0  ;;  %7051 = vmatmul.mubr.msk.f32.gmra.mrb[126].mxu0 %vm815_vm1, %v814_v39  ;;  %7072 = vmatprep.mubr.msk.f32.mxu1 %vm815_vm1, %v2547_v43  ;;  %v1990_v43 = vld [vmem:[%s11196_s5 + $0x2a8] sm:$0xff] }
 0x19e   :  { %2259 = vperm.xlu0 %7298, %v1980_v38   ;;  %v2047_v49 = vpop.permute.xlu1 %2046  ;;  %vm2428_vm4 = vcmp.eq.s32.totalorder %v8662_v44, %v7650_v35 }
 0x19f   :  { %vm2421_vm14 = vcmp.eq.s32.totalorder %v2047_v49, %v7650_v35  ;;  %7073 = vmatmul.mubr.msk.f32.gmra.mrb[2].mxu1 %vm815_vm1, %v2548_v48  ;;  %2238 = vperm.xlu1 %7299, %v1973_v47   ;;  %v2556_v38 = vsel %vm2428_vm4, 1.0, %v7349_v42 }
 0x1a0   :  { %v8678_v52 = vpop.f32.mrb[22].mxu0  ;;  %v2549_v54 = vsel %vm2421_vm14, 1.0, %v7349_v42 }
 0x1a1   :  { %v2074_v55 = vpop.permute.xlu0 %2073  ;;  %v8682_v56 = vpop.f32.mrb[23].mxu0  ;;  %7075 = vmatprep.mubr.msk.f32.mxu1 %vm815_vm1, %v2549_v54 }
 0x1a2   :  { %2265 = vperm.xlu0 %7298, %v1982_v51   ;;  %v2053_v60 = vpop.permute.xlu1 %2052  ;;  %vm2430_vm6 = vcmp.eq.s32.totalorder %v2074_v55, %v7650_v35  ;;  %v1983_v51 = vld [vmem:[%s11196_s5 + $0x270] sm:$0xff] }
 0x1a3   :  { %vm2423_vm0 = vcmp.eq.s32.totalorder %v2053_v60, %v7650_v35  ;;  %7076 = vmatmul.mubr.msk.f32.gmra.mrb[4].mxu1 %vm815_vm1, %v2550_v59  ;;  %2244 = vperm.xlu1 %7299, %v1975_v57   ;;  %v2558_v54 = vsel %vm2430_vm6, 1.0, %v7349_v42  ;;  %v1992_v57 = vld [vmem:[%s11196_s5 + $0x2b8] sm:$0xff] }
 0x1a4   :  { %v8695_v63 = vpop.f32.mrb[24].mxu0  ;;  %v2551_v0 = vsel %vm2423_vm0, 1.0, %v7349_v42 }
 0x1a5   :  { %v2080_v1 = vpop.permute.xlu0 %2079  ;;  %v8699_v3 = vpop.f32.mrb[25].mxu0  ;;  %7078 = vmatprep.mubr.msk.f32.mxu1 %vm815_vm1, %v2551_v0 }
 0x1a6   :  { %2271 = vperm.xlu0 %7298, %v1984_v62   ;;  %v2059_v11 = vpop.permute.xlu1 %2058  ;;  %vm2432_vm8 = vcmp.eq.s32.totalorder %v2080_v1, %v7650_v35 }
 0x1a7   :  { %vm2425_vm3 = vcmp.eq.s32.totalorder %v2059_v11, %v7650_v35  ;;  %7079 = vmatmul.mubr.msk.f32.gmra.mrb[6].mxu1 %vm815_vm1, %v2552_v9  ;;  %2250 = vperm.xlu1 %7299, %v1977_v4   ;;  %v1985_v4 = vld [vmem:[%s11196_s5 + $0x280] sm:$0xff]  ;;  %v2560_v1 = vsel %vm2432_vm8, 1.0, %v7349_v42  ;;  %v1994_v11 = vld [vmem:[%s11196_s5 + $0x2c8] sm:$0xff] }
 0x1a8   :  { %v8712_v13 = vpop.f32.mrb[26].mxu0  ;;  %v2553_v16 = vsel %vm2425_vm3, 1.0, %v7349_v42 }
 0x1a9   :  { %v2086_v17 = vpop.permute.xlu0 %2085  ;;  %v8716_v20 = vpop.f32.mrb[27].mxu0  ;;  %7081 = vmatprep.mubr.msk.f32.mxu1 %vm815_vm1, %v2553_v16 }
 0x1aa   :  { %2277 = vperm.xlu0 %7298, %v1986_v12   ;;  %v2065_v24 = vpop.permute.xlu1 %2064  ;;  %vm2434_vm10 = vcmp.eq.s32.totalorder %v2086_v17, %v7650_v35 }
 0x1ab   :  { %vm2427_vm5 = vcmp.eq.s32.totalorder %v2065_v24, %v7650_v35  ;;  %7082 = vmatmul.mubr.msk.f32.gmra.mrb[8].mxu1 %vm815_vm1, %v2554_v22  ;;  %2256 = vperm.xlu1 %7299, %v1979_v21   ;;  %v1987_v24 = vld [vmem:[%s11196_s5 + $0x290] sm:$0xff]  ;;  %v2562_v17 = vsel %vm2434_vm10, 1.0, %v7349_v42 }
 0x1ac   :  { %v8729_v28 = vpop.f32.mrb[28].mxu0  ;;  %v2555_v31 = vsel %vm2427_vm5, 1.0, %v7349_v42 }
 0x1ad   :  { %v2092_v33 = vpop.permute.xlu0 %2091  ;;  %v8733_v34 = vpop.f32.mrb[29].mxu0  ;;  %7084 = vmatprep.mubr.msk.f32.mxu1 %vm815_vm1, %v2555_v31  ;;  %v1996_v31 = vld [vmem:[%s11196_s5 + $0x2d8] sm:$0xff] }
 0x1ae   :  { %2283 = vperm.xlu0 %7298, %v1988_v27   ;;  %v2071_v39 = vpop.permute.xlu1 %2070  ;;  %vm2436_vm12 = vcmp.eq.s32.totalorder %v2092_v33, %v7650_v35 }
 0x1af   :  { %vm2429_vm7 = vcmp.eq.s32.totalorder %v2071_v39, %v7650_v35  ;;  %7085 = vmatmul.mubr.msk.f32.gmra.mrb[10].mxu1 %vm815_vm1, %v2556_v38  ;;  %2262 = vperm.xlu1 %7299, %v1981_v37   ;;  %v2564_v33 = vsel %vm2436_vm12, 1.0, %v7349_v42 }
 0x1b0   :  { %v8745_v44 = vpop.f32.mrb[30].mxu0  ;;  %v2557_v47 = vsel %vm2429_vm7, 1.0, %v7349_v42 }
 0x1b1   :  { %v2098_v48 = vpop.permute.xlu0 %2097  ;;  %v8749_v49 = vpop.f32.mrb[31].mxu0  ;;  %7087 = vmatprep.mubr.msk.f32.mxu1 %vm815_vm1, %v2557_v47  ;;  %v1989_v47 = vld [vmem:[%s11196_s5 + $0x2a0] sm:$0xff] }
 0x1b2   :  { %2289 = vperm.xlu0 %7298, %v1990_v43   ;;  %v2077_v55 = vpop.permute.xlu1 %2076  ;;  %vm2438_vm14 = vcmp.eq.s32.totalorder %v2098_v48, %v7650_v35 }
 0x1b3   :  { %vm2431_vm9 = vcmp.eq.s32.totalorder %v2077_v55, %v7650_v35  ;;  %7088 = vmatmul.mubr.msk.f32.gmra.mrb[12].mxu1 %vm815_vm1, %v2558_v54  ;;  %2268 = vperm.xlu1 %7299, %v1983_v51   ;;  %v1998_v54 = vld [vmem:[%s11196_s5 + $0x2e8] sm:$0xff]  ;;  %v2566_v48 = vsel %vm2438_vm14, 1.0, %v7349_v42 }
 0x1b4   :  { %v8761_v59 = vpop.f32.mrb[32].mxu0  ;;  %v2559_v60 = vsel %vm2431_vm9, 1.0, %v7349_v42 }
 0x1b5   :  { %v2104_v62 = vpop.permute.xlu0 %2103  ;;  %v8765_v0 = vpop.f32.mrb[33].mxu0  ;;  %7090 = vmatprep.mubr.msk.f32.mxu1 %vm815_vm1, %v2559_v60 }
 0x1b6   :  { %2295 = vperm.xlu0 %7298, %v1992_v57   ;;  %v2083_v9 = vpop.permute.xlu1 %2082  ;;  %vm2440_vm0 = vcmp.eq.s32.totalorder %v2104_v62, %v7650_v35 }
 0x1b7   :  { %vm2433_vm11 = vcmp.eq.s32.totalorder %v2083_v9, %v7650_v35  ;;  %7091 = vmatmul.mubr.msk.f32.gmra.mrb[14].mxu1 %vm815_vm1, %v2560_v1  ;;  %2274 = vperm.xlu1 %7299, %v1985_v4   ;;  %v1991_v1 = vld [vmem:[%s11196_s5 + $0x2b0] sm:$0xff]  ;;  %v2568_v62 = vsel %vm2440_vm0, 1.0, %v7349_v42 }
 0x1b8   :  { %v8777_v12 = vpop.f32.mrb[34].mxu0  ;;  %v2561_v16 = vsel %vm2433_vm11, 1.0, %v7349_v42 }
 0x1b9   :  { %v2110_v21 = vpop.permute.xlu0 %2109  ;;  %v8781_v22 = vpop.f32.mrb[35].mxu0  ;;  %7093 = vmatprep.mubr.msk.f32.mxu1 %vm815_vm1, %v2561_v16 }
 0x1ba   :  { %2301 = vperm.xlu0 %7298, %v1994_v11   ;;  %v2089_v27 = vpop.permute.xlu1 %2088  ;;  %v2000_v11 = vld [vmem:[%s11196_s5 + $0x2f8] sm:$0xff]  ;;  %vm2442_vm3 = vcmp.eq.s32.totalorder %v2110_v21, %v7650_v35 }
 0x1bb   :  { %vm2435_vm13 = vcmp.eq.s32.totalorder %v2089_v27, %v7650_v35  ;;  %7094 = vmatmul.mubr.msk.f32.gmra.mrb[16].mxu1 %vm815_vm1, %v2562_v17  ;;  %2280 = vperm.xlu1 %7299, %v1987_v24   ;;  %v2570_v21 = vsel %vm2442_vm3, 1.0, %v7349_v42 }
 0x1bc   :  { %v8793_v37 = vpop.f32.mrb[36].mxu0  ;;  %v2563_v38 = vsel %vm2435_vm13, 1.0, %v7349_v42 }
 0x1bd   :  { %v2116_v39 = vpop.permute.xlu0 %2115  ;;  %v8797_v43 = vpop.f32.mrb[37].mxu0  ;;  %7096 = vmatprep.mubr.msk.f32.mxu1 %vm815_vm1, %v2563_v38 }
 0x1be   :  { %2307 = vperm.xlu0 %7298, %v1996_v31   ;;  %v2095_v51 = vpop.permute.xlu1 %2094  ;;  %v1993_v31 = vld [vmem:[%s11196_s5 + $0x2c0] sm:$0xff]  ;;  %vm2444_vm5 = vcmp.eq.s32.totalorder %v2116_v39, %v7650_v35 }
 0x1bf   :  { %vm2437_vm15 = vcmp.eq.s32.totalorder %v2095_v51, %v7650_v35  ;;  %7097 = vmatmul.mubr.msk.f32.gmra.mrb[18].mxu1 %vm815_vm1, %v2564_v33  ;;  %2286 = vperm.xlu1 %7299, %v1989_v47   ;;  %v2002_v47 = vld [vmem:[%s11196_s5 + $0x308] sm:$0xff]  ;;  %v2572_v39 = vsel %vm2444_vm5, 1.0, %v7349_v42 }
 0x1c0   :  { %v8809_v55 = vpop.f32.mrb[38].mxu0  ;;  %v2565_v57 = vsel %vm2437_vm15, 1.0, %v7349_v42 }
 0x1c1   :  { %v2122_v60 = vpop.permute.xlu0 %2121  ;;  %v8813_v4 = vpop.f32.mrb[39].mxu0  ;;  %7099 = vmatprep.mubr.msk.f32.mxu1 %vm815_vm1, %v2565_v57 }
 0x1c2   :  { %2313 = vperm.xlu0 %7298, %v1998_v54   ;;  %v2101_v9 = vpop.permute.xlu1 %2100  ;;  %vm2446_vm7 = vcmp.eq.s32.totalorder %v2122_v60, %v7650_v35 }
 0x1c3   :  { %vm2439_vm2 = vcmp.eq.s32.totalorder %v2101_v9, %v7650_v35  ;;  %7100 = vmatmul.mubr.msk.f32.gmra.mrb[20].mxu1 %vm815_vm1, %v2566_v48  ;;  %2292 = vperm.xlu1 %7299, %v1991_v1   ;;  %v1995_v1 = vld [vmem:[%s11196_s5 + $0x2d0] sm:$0xff]  ;;  %v2004_v9 = vld [vmem:[%s11196_s5 + $0x318] sm:$0xff]  ;;  %v2574_v60 = vsel %vm2446_vm7, 1.0, %v7349_v42 }
 0x1c4   :  { %v8825_v16 = vpop.f32.mrb[40].mxu0  ;;  %v2567_v24 = vsel %vm2439_vm2, 1.0, %v7349_v42 }
 0x1c5   :  { %11219 = vst [vmem:[#allocation10_spill] sm:$0xff] %v8825_v16  ;;  %v2128_v17 = vpop.permute.xlu0 %2127  ;;  %v8829_v27 = vpop.f32.mrb[41].mxu0  ;;  %7102 = vmatprep.mubr.msk.f32.mxu1 %vm815_vm1, %v2567_v24 }
 0x1c6   :  { %2319 = vperm.xlu0 %7298, %v2000_v11   ;;  %v2107_v38 = vpop.permute.xlu1 %2106  ;;  %vm2448_vm9 = vcmp.eq.s32.totalorder %v2128_v17, %v7650_v35 }
 0x1c7   :  { %vm2441_vm4 = vcmp.eq.s32.totalorder %v2107_v38, %v7650_v35  ;;  %7103 = vmatmul.mubr.msk.f32.gmra.mrb[22].mxu1 %vm815_vm1, %v2568_v62  ;;  %2298 = vperm.xlu1 %7299, %v1993_v31   ;;  %v1997_v38 = vld [vmem:[%s11196_s5 + $0x2e0] sm:$0xff]  ;;  %v2576_v17 = vsel %vm2448_vm9, 1.0, %v7349_v42 }
 0x1c8   :  { %v8841_v33 = vpop.f32.mrb[42].mxu0  ;;  %v2569_v51 = vsel %vm2441_vm4, 1.0, %v7349_v42 }
 0x1c9   :  { %11220 = vst [vmem:[#allocation11_spill] sm:$0xff] %v8841_v33  ;;  %v2134_v54 = vpop.permute.xlu0 %2133  ;;  %v8845_v57 = vpop.f32.mrb[43].mxu0  ;;  %7105 = vmatprep.mubr.msk.f32.mxu1 %vm815_vm1, %v2569_v51  ;;  %v2006_v51 = vld [vmem:[%s11196_s5 + $0x328] sm:$0xff] }
 0x1ca   :  { %2325 = vperm.xlu0 %7298, %v2002_v47   ;;  %v2113_v48 = vpop.permute.xlu1 %2112  ;;  %vm2450_vm11 = vcmp.eq.s32.totalorder %v2134_v54, %v7650_v35 }
 0x1cb   :  { %vm2443_vm6 = vcmp.eq.s32.totalorder %v2113_v48, %v7650_v35  ;;  %7106 = vmatmul.mubr.msk.f32.gmra.mrb[24].mxu1 %vm815_vm1, %v2570_v21  ;;  %2304 = vperm.xlu1 %7299, %v1995_v1   ;;  %v2578_v54 = vsel %vm2450_vm11, 1.0, %v7349_v42 }
 0x1cc   :  { %v8857_v11 = vpop.f32.mrb[44].mxu0  ;;  %v2571_v24 = vsel %vm2443_vm6, 1.0, %v7349_v42 }
 0x1cd   :  { %11221 = vst [vmem:[#allocation12_spill] sm:$0xff] %v8857_v11  ;;  %v2140_v31 = vpop.permute.xlu0 %2139  ;;  %v8861_v62 = vpop.f32.mrb[45].mxu0  ;;  %7108 = vmatprep.mubr.msk.f32.mxu1 %vm815_vm1, %v2571_v24  ;;  %v1999_v24 = vld [vmem:[%s11196_s5 + $0x2f0] sm:$0xff]  ;;  %v2005_v11 = vld [vmem:[%s11196_s5 + $0x320] sm:$0xff] }
 0x1ce   :  { %2331 = vperm.xlu0 %7298, %v2004_v9   ;;  %v2119_v47 = vpop.permute.xlu1 %2118  ;;  %vm2452_vm13 = vcmp.eq.s32.totalorder %v2140_v31, %v7650_v35 }
 0x1cf   :  { %vm2445_vm8 = vcmp.eq.s32.totalorder %v2119_v47, %v7650_v35  ;;  %7109 = vmatmul.mubr.msk.f32.gmra.mrb[26].mxu1 %vm815_vm1, %v2572_v39  ;;  %2310 = vperm.xlu1 %7299, %v1997_v38   ;;  %v2008_v39 = vld [vmem:[%s11196_s5 + $0x338] sm:$0xff]  ;;  %v2580_v31 = vsel %vm2452_vm13, 1.0, %v7349_v42 }
 0x1d0   :  { %v8873_v1 = vpop.f32.mrb[46].mxu0  ;;  %v2573_v21 = vsel %vm2445_vm8, 1.0, %v7349_v42 }
 0x1d1   :  { %11222 = vst [vmem:[#allocation13_spill] sm:$0xff] %v8873_v1  ;;  %v2146_v48 = vpop.permute.xlu0 %2145  ;;  %v8877_v9 = vpop.f32.mrb[47].mxu0  ;;  %7111 = vmatprep.mubr.msk.f32.mxu1 %vm815_vm1, %v2573_v21  ;;  %v2003_v1 = vld [vmem:[%s11196_s5 + $0x310] sm:$0xff] }
 0x1d2   :  { %2337 = vperm.xlu0 %7298, %v2006_v51   ;;  %v2125_v47 = vpop.permute.xlu1 %2124  ;;  %vm2454_vm15 = vcmp.eq.s32.totalorder %v2146_v48, %v7650_v35 }
 0x1d3   :  { %vm2447_vm10 = vcmp.eq.s32.totalorder %v2125_v47, %v7650_v35  ;;  %7112 = vmatmul.mubr.msk.f32.gmra.mrb[28].mxu1 %vm815_vm1, %v2574_v60  ;;  %2316 = vperm.xlu1 %7299, %v1999_v24   ;;  %v2010_v60 = vld [vmem:[%s11196_s5 + $0x348] sm:$0xff]  ;;  %v2582_v48 = vsel %vm2454_vm15, 1.0, %v7349_v42 }
 0x1d4   :  { %v8889_v38 = vpop.f32.mrb[48].mxu0  ;;  %v2575_v51 = vsel %vm2447_vm10, 1.0, %v7349_v42 }
 0x1d5   :  { %11223 = vst [vmem:[#allocation14_spill] sm:$0xff] %v8889_v38  ;;  %v2152_v30 = vpop.permute.xlu0 %2151  ;;  %v8893_v21 = vpop.f32.mrb[49].mxu0  ;;  %7114 = vmatprep.mubr.msk.f32.mxu1 %vm815_vm1, %v2575_v51 }
 0x1d6   :  { %11224 = vst [vmem:[#allocation15_spill] sm:$0xff] %v8893_v21  ;;  %2343 = vperm.xlu0 %7298, %v2008_v39   ;;  %v2131_v47 = vpop.permute.xlu1 %2130  ;;  %vm2456_vm2 = vcmp.eq.s32.totalorder %v2152_v30, %v7650_v35 }
 0x1d7   :  { %vm2449_vm12 = vcmp.eq.s32.totalorder %v2131_v47, %v7650_v35  ;;  %7115 = vmatmul.mubr.msk.f32.gmra.mrb[30].mxu1 %vm815_vm1, %v2576_v17  ;;  %2322 = vperm.xlu1 %7299, %v2001_v5   ;;  %v2012_v17 = vld [vmem:[%s11196_s5 + $0x358] sm:$0xff]  ;;  %v2584_v30 = vsel %vm2456_vm2, 1.0, %v7349_v42 }
 0x1d8   :  { %v8905_v24 = vpop.f32.mrb[50].mxu0  ;;  %v2577_v39 = vsel %vm2449_vm12, 1.0, %v7349_v42 }
 0x1d9   :  { %11225 = vst [vmem:[#allocation16_spill] sm:$0xff] %v8905_v24  ;;  %v2158_v38 = vpop.permute.xlu0 %2157  ;;  %v8909_v51 = vpop.f32.mrb[51].mxu0  ;;  %7117 = vmatprep.mubr.msk.f32.mxu1 %vm815_vm1, %v2577_v39 }
 0x1da   :  { %11226 = vst [vmem:[#allocation17_spill] sm:$0xff] %v8909_v51  ;;  %2349 = vperm.xlu0 %7298, %v2010_v60   ;;  %v2137_v47 = vpop.permute.xlu1 %2136  ;;  %vm2458_vm4 = vcmp.eq.s32.totalorder %v2158_v38, %v7650_v35 }
 0x1db   :  { %vm2451_vm14 = vcmp.eq.s32.totalorder %v2137_v47, %v7650_v35  ;;  %7118 = vmatmul.mubr.msk.f32.gmra.mrb[32].mxu1 %vm815_vm1, %v2578_v54  ;;  %2328 = vperm.xlu1 %7299, %v2003_v1   ;;  %v2014_v54 = vld [vmem:[%s11196_s5 + $0x368] sm:$0xff]  ;;  %v2586_v38 = vsel %vm2458_vm4, 1.0, %v7349_v42 }
 0x1dc   :  { %v8921_v5 = vpop.f32.mrb[52].mxu0  ;;  %v2579_v60 = vsel %vm2451_vm14, 1.0, %v7349_v42 }
 0x1dd   :  { %11227 = vst [vmem:[#allocation18_spill] sm:$0xff] %v8921_v5  ;;  %v2164_v24 = vpop.permute.xlu0 %2163  ;;  %v8925_v39 = vpop.f32.mrb[53].mxu0  ;;  %7120 = vmatprep.mubr.msk.f32.mxu1 %vm815_vm1, %v2579_v60 }
 0x1de   :  { %11228 = vst [vmem:[#allocation19_spill] sm:$0xff] %v8925_v39  ;;  %2355 = vperm.xlu0 %7298, %v2012_v17   ;;  %v2143_v47 = vpop.permute.xlu1 %2142  ;;  %v2007_v39 = vld [vmem:[%s11196_s5 + $0x330] sm:$0xff]  ;;  %vm2460_vm6 = vcmp.eq.s32.totalorder %v2164_v24, %v7650_v35 }
 0x1df   :  { %vm2453_vm0 = vcmp.eq.s32.totalorder %v2143_v47, %v7650_v35  ;;  %7121 = vmatmul.mubr.msk.f32.gmra.mrb[34].mxu1 %vm815_vm1, %v2580_v31  ;;  %2334 = vperm.xlu1 %7299, %v2005_v11   ;;  %v2016_v31 = vld [vmem:[%s11196_s5 + $0x378] sm:$0xff]  ;;  %v2588_v24 = vsel %vm2460_vm6, 1.0, %v7349_v42 }
 0x1e0   :  { %v8937_v1 = vpop.f32.mrb[54].mxu0  ;;  %v2581_v17 = vsel %vm2453_vm0, 1.0, %v7349_v42 }
 0x1e1   :  { %11229 = vst [vmem:[#allocation20_spill] sm:$0xff] %v8937_v1  ;;  %v2170_v5 = vpop.permute.xlu0 %2169  ;;  %v8941_v60 = vpop.f32.mrb[55].mxu0  ;;  %7123 = vmatprep.mubr.msk.f32.mxu1 %vm815_vm1, %v2581_v17 }
 0x1e2   :  { %11230 = vst [vmem:[#allocation21_spill] sm:$0xff] %v8941_v60  ;;  %2361 = vperm.xlu0 %7298, %v2014_v54   ;;  %v2149_v47 = vpop.permute.xlu1 %2148  ;;  %v2009_v60 = vld [vmem:[%s11196_s5 + $0x340] sm:$0xff]  ;;  %vm2462_vm8 = vcmp.eq.s32.totalorder %v2170_v5, %v7650_v35 }
 0x1e3   :  { %vm2455_vm3 = vcmp.eq.s32.totalorder %v2149_v47, %v7650_v35  ;;  %7124 = vmatmul.mubr.msk.f32.gmra.mrb[36].mxu1 %vm815_vm1, %v2582_v48  ;;  %2340 = vperm.xlu1 %7299, %v2007_v39   ;;  %v2018_v48 = vld [vmem:[%s11196_s5 + $0x388] sm:$0xff]  ;;  %v2590_v5 = vsel %vm2462_vm8, 1.0, %v7349_v42 }
 0x1e4   :  { %v8953_v11 = vpop.f32.mrb[56].mxu0  ;;  %v2583_v54 = vsel %vm2455_vm3, 1.0, %v7349_v42 }
 0x1e5   :  { %11231 = vst [vmem:[#allocation22_spill] sm:$0xff] %v8953_v11  ;;  %v2176_v1 = vpop.permute.xlu0 %2175  ;;  %v8957_v17 = vpop.f32.mrb[57].mxu0  ;;  %7126 = vmatprep.mubr.msk.f32.mxu1 %vm815_vm1, %v2583_v54 }
 0x1e6   :  { %11232 = vst [vmem:[#allocation23_spill] sm:$0xff] %v8957_v17  ;;  %2367 = vperm.xlu0 %7298, %v2016_v31   ;;  %v2155_v47 = vpop.permute.xlu1 %2154  ;;  %v2011_v17 = vld [vmem:[%s11196_s5 + $0x350] sm:$0xff]  ;;  %vm2464_vm10 = vcmp.eq.s32.totalorder %v2176_v1, %v7650_v35 }
 0x1e7   :  { %vm2457_vm5 = vcmp.eq.s32.totalorder %v2155_v47, %v7650_v35  ;;  %7127 = vmatmul.mubr.msk.f32.gmra.mrb[38].mxu1 %vm815_vm1, %v2584_v30  ;;  %2346 = vperm.xlu1 %7299, %v2009_v60   ;;  %v2020_v30 = vld [vmem:[%s11196_s5 + $0x398] sm:$0xff]  ;;  %v2592_v1 = vsel %vm2464_vm10, 1.0, %v7349_v42 }
 0x1e8   :  { %v8969_v39 = vpop.f32.mrb[58].mxu0  ;;  %v2585_v31 = vsel %vm2457_vm5, 1.0, %v7349_v42 }
 0x1e9   :  { %11233 = vst [vmem:[#allocation24_spill] sm:$0xff] %v8969_v39  ;;  %v2182_v11 = vpop.permute.xlu0 %2181  ;;  %v8973_v54 = vpop.f32.mrb[59].mxu0  ;;  %7129 = vmatprep.mubr.msk.f32.mxu1 %vm815_vm1, %v2585_v31 }
 0x1ea   :  { %11234 = vst [vmem:[#allocation25_spill] sm:$0xff] %v8973_v54  ;;  %2373 = vperm.xlu0 %7298, %v2018_v48   ;;  %v2161_v47 = vpop.permute.xlu1 %2160  ;;  %v2013_v54 = vld [vmem:[%s11196_s5 + $0x360] sm:$0xff]  ;;  %vm2466_vm12 = vcmp.eq.s32.totalorder %v2182_v11, %v7650_v35 }
 0x1eb   :  { %vm2459_vm7 = vcmp.eq.s32.totalorder %v2161_v47, %v7650_v35  ;;  %7130 = vmatmul.mubr.msk.f32.gmra.mrb[40].mxu1 %vm815_vm1, %v2586_v38  ;;  %2352 = vperm.xlu1 %7299, %v2011_v17   ;;  %v2022_v38 = vld [vmem:[%s11196_s5 + $0x3a8] sm:$0xff]  ;;  %v2594_v11 = vsel %vm2466_vm12, 1.0, %v7349_v42 }
 0x1ec   :  { %v8985_v60 = vpop.f32.mrb[60].mxu0  ;;  %v2587_v48 = vsel %vm2459_vm7, 1.0, %v7349_v42 }
 0x1ed   :  { %11235 = vst [vmem:[#allocation26_spill] sm:$0xff] %v8985_v60  ;;  %v2188_v39 = vpop.permute.xlu0 %2187  ;;  %v8989_v31 = vpop.f32.mrb[61].mxu0  ;;  %7132 = vmatprep.mubr.msk.f32.mxu1 %vm815_vm1, %v2587_v48 }
 0x1ee   :  { %11236 = vst [vmem:[#allocation27_spill] sm:$0xff] %v8989_v31  ;;  %2379 = vperm.xlu0 %7298, %v2020_v30   ;;  %v2167_v47 = vpop.permute.xlu1 %2166  ;;  %v2015_v31 = vld [vmem:[%s11196_s5 + $0x370] sm:$0xff]  ;;  %vm2468_vm14 = vcmp.eq.s32.totalorder %v2188_v39, %v7650_v35 }
 0x1ef   :  { %vm2461_vm9 = vcmp.eq.s32.totalorder %v2167_v47, %v7650_v35  ;;  %7133 = vmatmul.mubr.msk.f32.gmra.mrb[42].mxu1 %vm815_vm1, %v2588_v24  ;;  %2358 = vperm.xlu1 %7299, %v2013_v54   ;;  %v2024_v24 = vld [vmem:[%s11196_s5 + $0x3b8] sm:$0xff]  ;;  %v2596_v39 = vsel %vm2468_vm14, 1.0, %v7349_v42 }
 0x1f0   :  { %v9001_v17 = vpop.f32.mrb[62].mxu0  ;;  %v2589_v30 = vsel %vm2461_vm9, 1.0, %v7349_v42 }
 0x1f1   :  { %11237 = vst [vmem:[#allocation28_spill] sm:$0xff] %v9001_v17  ;;  %v2194_v60 = vpop.permute.xlu0 %2193  ;;  %v9005_v48 = vpop.f32.mrb[63].mxu0  ;;  %7135 = vmatprep.mubr.msk.f32.mxu1 %vm815_vm1, %v2589_v30 }
 0x1f2   :  { %11238 = vst [vmem:[#allocation29_spill] sm:$0xff] %v9005_v48  ;;  %2385 = vperm.xlu0 %7298, %v2022_v38   ;;  %v2173_v47 = vpop.permute.xlu1 %2172  ;;  %v2017_v48 = vld [vmem:[%s11196_s5 + $0x380] sm:$0xff]  ;;  %vm2470_vm0 = vcmp.eq.s32.totalorder %v2194_v60, %v7650_v35 }
 0x1f3   :  { %vm2463_vm11 = vcmp.eq.s32.totalorder %v2173_v47, %v7650_v35  ;;  %7136 = vmatmul.mubr.msk.f32.gmra.mrb[44].mxu1 %vm815_vm1, %v2590_v5  ;;  %2364 = vperm.xlu1 %7299, %v2015_v31   ;;  %v2026_v5 = vld [vmem:[%s11196_s5 + $0x3c8] sm:$0xff]  ;;  %v2598_v60 = vsel %vm2470_vm0, 1.0, %v7349_v42 }
 0x1f4   :  { %v9017_v54 = vpop.f32.mrb[64].mxu0  ;;  %v2591_v38 = vsel %vm2463_vm11, 1.0, %v7349_v42 }
 0x1f5   :  { %11239 = vst [vmem:[#allocation30_spill] sm:$0xff] %v9017_v54  ;;  %v2200_v17 = vpop.permute.xlu0 %2199  ;;  %v9021_v30 = vpop.f32.mrb[65].mxu0  ;;  %7138 = vmatprep.mubr.msk.f32.mxu1 %vm815_vm1, %v2591_v38 }
 0x1f6   :  { %11240 = vst [vmem:[#allocation31_spill] sm:$0xff] %v9021_v30  ;;  %2391 = vperm.xlu0 %7298, %v2024_v24   ;;  %v2179_v47 = vpop.permute.xlu1 %2178  ;;  %v2019_v30 = vld [vmem:[%s11196_s5 + $0x390] sm:$0xff]  ;;  %vm2472_vm3 = vcmp.eq.s32.totalorder %v2200_v17, %v7650_v35 }
 0x1f7   :  { %vm2465_vm13 = vcmp.eq.s32.totalorder %v2179_v47, %v7650_v35  ;;  %7139 = vmatmul.mubr.msk.f32.gmra.mrb[46].mxu1 %vm815_vm1, %v2592_v1  ;;  %2370 = vperm.xlu1 %7299, %v2017_v48   ;;  %v2028_v1 = vld [vmem:[%s11196_s5 + $0x3d8] sm:$0xff]  ;;  %v2600_v17 = vsel %vm2472_vm3, 1.0, %v7349_v42 }
 0x1f8   :  { %v9033_v31 = vpop.f32.mrb[66].mxu0  ;;  %v2593_v24 = vsel %vm2465_vm13, 1.0, %v7349_v42 }
 0x1f9   :  { %11241 = vst [vmem:[#allocation32_spill] sm:$0xff] %v9033_v31  ;;  %v2206_v54 = vpop.permute.xlu0 %2205  ;;  %v9037_v38 = vpop.f32.mrb[67].mxu0  ;;  %7141 = vmatprep.mubr.msk.f32.mxu1 %vm815_vm1, %v2593_v24 }
 0x1fa   :  { %11242 = vst [vmem:[#allocation33_spill] sm:$0xff] %v9037_v38  ;;  %2397 = vperm.xlu0 %7298, %v2026_v5   ;;  %v2185_v47 = vpop.permute.xlu1 %2184  ;;  %v2021_v38 = vld [vmem:[%s11196_s5 + $0x3a0] sm:$0xff]  ;;  %vm2474_vm5 = vcmp.eq.s32.totalorder %v2206_v54, %v7650_v35 }
 0x1fb   :  { %vm2467_vm15 = vcmp.eq.s32.totalorder %v2185_v47, %v7650_v35  ;;  %7142 = vmatmul.mubr.msk.f32.gmra.mrb[48].mxu1 %vm815_vm1, %v2594_v11  ;;  %2376 = vperm.xlu1 %7299, %v2019_v30   ;;  %v2030_v11 = vld [vmem:[%s11196_s5 + $0x3e8] sm:$0xff] }
 0x1fc   :  { %v9049_v48 = vpop.f32.mrb[68].mxu0  ;;  %v2595_v5 = vsel %vm2467_vm15, 1.0, %v7349_v42 }
 0x1fd   :  { %11243 = vst [vmem:[#allocation34_spill] sm:$0xff] %v9049_v48  ;;  %v2212_v31 = vpop.permute.xlu0 %2211  ;;  %v9053_v24 = vpop.f32.mrb[69].mxu0  ;;  %7144 = vmatprep.mubr.msk.f32.mxu1 %vm815_vm1, %v2595_v5 }
 0x1fe   :  { %11244 = vst [vmem:[#allocation35_spill] sm:$0xff] %v9053_v24  ;;  %2403 = vperm.xlu0 %7298, %v2028_v1   ;;  %v2191_v47 = vpop.permute.xlu1 %2190  ;;  %v2023_v24 = vld [vmem:[%s11196_s5 + $0x3b0] sm:$0xff]  ;;  %vm2476_vm7 = vcmp.eq.s32.totalorder %v2212_v31, %v7650_v35  ;;  %v11253_v31 = vlaneseq }
 0x1ff   :  { %vm2469_vm2 = vcmp.eq.s32.totalorder %v2191_v47, %v7650_v35  ;;  %7145 = vmatmul.mubr.msk.f32.gmra.mrb[50].mxu1 %vm815_vm1, %v2596_v39  ;;  %2382 = vperm.xlu1 %7299, %v2021_v38   ;;  %v2032_v39 = vld [vmem:[%s11196_s5 + $0x3f8] sm:$0xff] }
 0x200   :  { %v9065_v30 = vpop.f32.mrb[70].mxu0  ;;  %v2597_v1 = vsel %vm2469_vm2, 1.0, %v7349_v42  ;;  %v9118_v51 = vshrl.u32 %v11253_v31, 7 }
 0x201   :  { %11245 = vst [vmem:[#allocation36_spill] sm:$0xff] %v9065_v30  ;;  %v2218_v48 = vpop.permute.xlu0 %2217  ;;  %v9069_v5 = vpop.f32.mrb[71].mxu0  ;;  %7147 = vmatprep.mubr.msk.f32.mxu1 %vm815_vm1, %v2597_v1 }
 0x202   :  { %11246 = vst [vmem:[#allocation37_spill] sm:$0xff] %v9069_v5  ;;  %2409 = vperm.xlu0 %7298, %v2030_v11   ;;  %v2197_v47 = vpop.permute.xlu1 %2196  ;;  %v2025_v5 = vld [vmem:[%s11196_s5 + $0x3c0] sm:$0xff]  ;;  %11254 = vst [vmem:[#allocation44_spill] sm:$0xff] %v9118_v51  ;;  %vm2478_vm9 = vcmp.eq.s32.totalorder %v2218_v48, %v7650_v35 }
 0x203   :  { %vm2471_vm4 = vcmp.eq.s32.totalorder %v2197_v47, %v7650_v35  ;;  %7148 = vmatmul.mubr.msk.f32.gmra.mrb[52].mxu1 %vm815_vm1, %v2598_v60  ;;  %2388 = vperm.xlu1 %7299, %v2023_v24  }
 0x204   :  { %v9081_v38 = vpop.f32.mrb[72].mxu0  ;;  %v2599_v11 = vsel %vm2471_vm4, 1.0, %v7349_v42 }
 0x205   :  { %11247 = vst [vmem:[#allocation38_spill] sm:$0xff] %v9081_v38  ;;  %v2224_v30 = vpop.permute.xlu0 %2223  ;;  %v9085_v1 = vpop.f32.mrb[73].mxu0  ;;  %7150 = vmatprep.mubr.msk.f32.mxu1 %vm815_vm1, %v2599_v11  ;;  %v7350_v11 = vmov 1966171168  }
 0x206   :  { %11248 = vst [vmem:[#allocation39_spill] sm:$0xff] %v9085_v1  ;;  %2415 = vperm.xlu0 %7298, %v2032_v39   ;;  %v2203_v47 = vpop.permute.xlu1 %2202  ;;  %v2027_v39 = vld [vmem:[%s11196_s5 + $0x3d0] sm:$0xff]  ;;  %v3765_v54 = vunpack.c.l.s4 %v7350_v11  ;;  %vm2480_vm11 = vcmp.eq.s32.totalorder %v2224_v30, %v7650_v35 }
 0x207   :  { %vm2473_vm6 = vcmp.eq.s32.totalorder %v2203_v47, %v7650_v35  ;;  %7151 = vmatmul.mubr.msk.f32.gmra.mrb[54].mxu1 %vm815_vm1, %v2600_v17  ;;  %2394 = vperm.xlu1 %7299, %v2025_v5   ;;  %v2602_v47 = vsel %vm2474_vm5, 1.0, %v7349_v42  ;;  %v2608_v30 = vsel %vm2480_vm11, 1.0, %v7349_v42 }
 0x208   :  { %v9094_v24 = vpop.f32.mrb[74].mxu0  ;;  %v2601_v60 = vsel %vm2473_vm6, 1.0, %v7349_v42  ;;  %v3766_v11 = vunpack.c.0.s8 %v3765_v54  ;;  %v2031_v54 = vld [vmem:[%s11196_s5 + $0x3f0] sm:$0xff] }
 0x209   :  { %11249 = vst [vmem:[#allocation40_spill] sm:$0xff] %v9094_v24  ;;  %v2230_v38 = vpop.permute.xlu0 %2229  ;;  %v9098_v1 = vpop.f32.mrb[75].mxu0  ;;  %7153 = vmatprep.mubr.msk.f32.mxu1 %vm815_vm1, %v2601_v60  ;;  %v2029_v60 = vld [vmem:[%s11196_s5 + $0x3e0] sm:$0xff]  ;;  %s7351_s5 = smov [#allocation2]  }
 0x20a   :  { %11250 = vst [vmem:[#allocation41_spill] sm:$0xff] %v9098_v1  ;;  %v2209_v33 = vpop.permute.xlu1 %2208  ;;  %v9134_v48 = vsub.s32 %v3766_v11, %v9118_v51  ;;  %vm2482_vm13 = vcmp.eq.s32.totalorder %v2230_v38, %v7650_v35  ;;  %s6293_s22 = sshll.u32 %s7351_s5, 4  ;;  %s6294_s22 = int_to_ptr.vmem [resolvable:$true] %s6293_s22 }
 0x20b   :  { %vm2475_vm8 = vcmp.eq.s32.totalorder %v2209_v33, %v7650_v35  ;;  %7154 = vmatmul.mubr.msk.f32.gmra.mrb[56].mxu1 %vm815_vm1, %v2602_v47  ;;  %2400 = vperm.xlu1 %7299, %v2027_v39   ;;  %v2604_v33 = vsel %vm2476_vm7, 1.0, %v7349_v42  ;;  %v2610_v38 = vsel %vm2482_vm13, 1.0, %v7349_v42  ;;  %s7300_s23 = scalar_lea.vmem %s6294_s22, 128  ;;  %p7305_p1 = scmp.lt.s32.totalorder %s6294_s22, %s6294_s22 }
 0x20c   :  { %v9107_v5 = vpop.f32.mrb[76].mxu0  ;;  %v2603_v17 = vsel %vm2475_vm8, 1.0, %v7349_v42  ;;  %v9148_v11 = vrot.slane %v7412_v6, %v9134_v48  ;;  %p7301_p0 = scmp.ne.s32.totalorder %s6294_s22, %s7300_s23  ;;  %p7306_p2 = scmp.lt.s32.totalorder %s7300_s23, %s7300_s23 }
 0x20d   :  { %11251 = vst [vmem:[#allocation42_spill] sm:$0xff] %v9107_v5  ;;  %v2236_v24 = vpop.permute.xlu0 %2235  ;;  %v9111_v1 = vpop.f32.mrb[77].mxu0  ;;  %7156 = vmatprep.mubr.msk.f32.mxu1 %vm815_vm1, %v2603_v17 }
 0x20e   :  { %11252 = vst [vmem:[#allocation43_spill] sm:$0xff] %v9111_v1  ;;  %v2215_v5 = vpop.permute.xlu1 %2214  ;;  %vm2484_vm15 = vcmp.eq.s32.totalorder %v2236_v24, %v7650_v35  ;;  %p7307_p3 = por %p7306_p2, %p7305_p1 }
 0x20f   :  { %vm2477_vm10 = vcmp.eq.s32.totalorder %v2215_v5, %v7650_v35  ;;  %7157 = vmatmul.mubr.msk.f32.gmra.mrb[58].mxu1 %vm815_vm1, %v2604_v33  ;;  %2406 = vperm.xlu1 %7299, %v2029_v60   ;;  %v2606_v5 = vsel %vm2478_vm9, 1.0, %v7349_v42  ;;  %v2612_v6 = vsel %vm2484_vm15, 1.0, %v7349_v42 }
 0x210   :  { %v9123_v39 = vpop.f32.mrb[78].mxu0  ;;  %v2605_v47 = vsel %vm2477_vm10, 1.0, %v7349_v42  ;;  %p7308_p4 = pnand %p7307_p3, %p7301_p0 }
 0x211   :  { %11255 = vst [vmem:[#allocation45_spill] sm:$0xff] %v9123_v39  ;;  %v2242_v1 = vpop.permute.xlu0 %2241  ;;  %v9127_v17 = vpop.f32.mrb[79].mxu0  ;;  %7159 = vmatprep.mubr.msk.f32.mxu1 %vm815_vm1, %v2605_v47 }
 0x212   :  { %11256 = vst [vmem:[#allocation46_spill] sm:$0xff] %v9127_v17  ;;  %v2221_v31 = vpop.permute.xlu1 %2220  ;;  %vm2486_vm2 = vcmp.eq.s32.totalorder %v2242_v1, %v7650_v35 }
 0x213   :  { %vm2479_vm12 = vcmp.eq.s32.totalorder %v2221_v31, %v7650_v35  ;;  %7160 = vmatmul.mubr.msk.f32.gmra.mrb[60].mxu1 %vm815_vm1, %v2606_v5  ;;  %2412 = vperm.xlu1 %7299, %v2031_v54   ;;  %v2614_v16 = vsel %vm2486_vm2, 1.0, %v7349_v42 }
 0x214   :  { %v9139_v60 = vpop.f32.mrb[80].mxu0  ;;  %v2607_v33 = vsel %vm2479_vm12, 1.0, %v7349_v42 }
 0x215   :  { %11257 = vst [vmem:[#allocation47_spill] sm:$0xff] %v9139_v60  ;;  %v2248_v39 = vpop.permute.xlu0 %2247  ;;  %v9143_v17 = vpop.f32.mrb[81].mxu0  ;;  %7162 = vmatprep.mubr.msk.f32.mxu1 %vm815_vm1, %v2607_v33  ;;  %v9162_v33 = vrot.slane %v9148_v11, %v9134_v48 }
 0x216   :  { %11258 = vst [vmem:[#allocation48_spill] sm:$0xff] %v9143_v17  ;;  %v2227_v47 = vpop.permute.xlu1 %2226  ;;  %v9165_v17 = vsub.s32 0, %v9118_v51  ;;  %vm2488_vm4 = vcmp.eq.s32.totalorder %v2248_v39, %v7650_v35 }
 0x217   :  { %vm2481_vm14 = vcmp.eq.s32.totalorder %v2227_v47, %v7650_v35  ;;  %7163 = vmatmul.mubr.msk.f32.gmra.mrb[62].mxu1 %vm815_vm1, %v2608_v30 }
 0x218   :  { %v9153_v5 = vpop.f32.mrb[82].mxu0  ;;  %v2609_v54 = vsel %vm2481_vm14, 1.0, %v7349_v42  ;;  %v9179_v51 = vrot.slane %v9162_v33, %v9165_v17 }
 0x219   :  { %11259 = vst [vmem:[#allocation49_spill] sm:$0xff] %v9153_v5  ;;  %v2254_v31 = vpop.permute.xlu0 %2253  ;;  %v9157_v60 = vpop.f32.mrb[83].mxu0  ;;  %7165 = vmatprep.mubr.msk.f32.mxu1 %vm815_vm1, %v2609_v54 }
 0x21a   :  { %11260 = vst [vmem:[#allocation50_spill] sm:$0xff] %v9157_v60  ;;  %v2233_v47 = vpop.permute.xlu1 %2232  ;;  %vm2490_vm6 = vcmp.eq.s32.totalorder %v2254_v31, %v7650_v35 }
 0x21b   :  { %vm2483_vm0 = vcmp.eq.s32.totalorder %v2233_v47, %v7650_v35  ;;  %7166 = vmatmul.mubr.msk.f32.gmra.mrb[64].mxu1 %vm815_vm1, %v2610_v38 }
 0x21c   :  { %v9170_v30 = vpop.f32.mrb[84].mxu0  ;;  %v2611_v54 = vsel %vm2483_vm0, 1.0, %v7349_v42 }
 0x21d   :  { %11261 = vst [vmem:[#allocation51_spill] sm:$0xff] %v9170_v30  ;;  %v2260_v5 = vpop.permute.xlu0 %2259  ;;  %v9174_v60 = vpop.f32.mrb[85].mxu0  ;;  %7168 = vmatprep.mubr.msk.f32.mxu1 %vm815_vm1, %v2611_v54  ;;  %v3853_v54 = vmul.f32 %v8460_v7, %v9179_v51  ;;  %v3854_v7 = vmul.f32 %v9179_v51, %v8486_v18  ;;  %v3856_v18 = vmul.f32 %v9179_v51, %v8505_v26 }
 0x21e   :  { %11262 = vst [vmem:[#allocation52_spill] sm:$0xff] %v9174_v60  ;;  %v2239_v24 = vpop.permute.xlu1 %2238  ;;  %vm2492_vm8 = vcmp.eq.s32.totalorder %v2260_v5, %v7650_v35  ;;  %v3858_v26 = vmul.f32 %v9179_v51, %v8524_v36  ;;  %v3860_v36 = vmul.f32 %v9179_v51, %v8543_v45  ;;  %v3852_v45 = vmul.f32 %v9179_v51, %v8467_v10 }
 0x21f   :  { %vm2485_vm3 = vcmp.eq.s32.totalorder %v2239_v24, %v7650_v35  ;;  %7169 = vmatmul.mubr.msk.f32.gmra.mrb[66].mxu1 %vm815_vm1, %v2612_v6 }
 0x220   :  { %v9184_v47 = vpop.f32.mrb[86].mxu0  ;;  %v2613_v38 = vsel %vm2485_vm3, 1.0, %v7349_v42 }
 0x221   :  { %11263 = vst [vmem:[#allocation53_spill] sm:$0xff] %v9184_v47  ;;  %v2266_v30 = vpop.permute.xlu0 %2265  ;;  %v9188_v60 = vpop.f32.mrb[87].mxu0  ;;  %7171 = vmatprep.mubr.msk.f32.mxu1 %vm815_vm1, %v2613_v38  ;;  %v2616_v38 = vsel %vm2488_vm4, 1.0, %v7349_v42 }
 0x222   :  { %v2245_v21 = vpop.permute.xlu1 %2244  ;;  %vm2494_vm10 = vcmp.eq.s32.totalorder %v2266_v30, %v7650_v35 }
 0x223   :  { %vm2487_vm5 = vcmp.eq.s32.totalorder %v2245_v21, %v7650_v35  ;;  %7172 = vmatmul.mubr.msk.f32.gmra.mrb[68].mxu1 %vm815_vm1, %v2614_v16  ;;  %v2622_v30 = vsel %vm2494_vm10, 1.0, %v7349_v42 }
 0x224   :  { %v9196_v1 = vpop.f32.mrb[88].mxu0  ;;  %v2615_v6 = vsel %vm2487_vm5, 1.0, %v7349_v42 }
 0x225   :  { %11264 = vst [vmem:[#allocation54_spill] sm:$0xff] %v9196_v1  ;;  %v2272_v24 = vpop.permute.xlu0 %2271  ;;  %3982 = vadd.xlane.f32.xlu0 %v3853_v54  ;;  %v9200_v47 = vpop.f32.mrb[89].mxu0  ;;  %7174 = vmatprep.mubr.msk.f32.mxu1 %vm815_vm1, %v2615_v6  ;;  %v2618_v6 = vsel %vm2490_vm6, 1.0, %v7349_v42 }
 0x226   :  { %v2251_v39 = vpop.permute.xlu1 %2250  ;;  %vm2496_vm12 = vcmp.eq.s32.totalorder %v2272_v24, %v7650_v35  ;;  %v3862_v24 = vmul.f32 %v9179_v51, %v8562_v53 }
 0x227   :  { %vm2489_vm7 = vcmp.eq.s32.totalorder %v2251_v39, %v7650_v35  ;;  %7175 = vmatmul.mubr.msk.f32.gmra.mrb[70].mxu1 %vm815_vm1, %v2616_v38 }
 0x228   :  { %v9208_v21 = vpop.f32.mrb[90].mxu0  ;;  %v2617_v16 = vsel %vm2489_vm7, 1.0, %v7349_v42 }
 0x229   :  { %11265 = vst [vmem:[#allocation55_spill] sm:$0xff] %v9208_v21  ;;  %v2278_v54 = vpop.permute.xlu0 %2277  ;;  %3984 = vadd.xlane.f32.xlu0 %v3854_v7  ;;  %v9212_v1 = vpop.f32.mrb[91].mxu0  ;;  %7177 = vmatprep.mubr.msk.f32.mxu1 %vm815_vm1, %v2617_v16  ;;  %v2620_v16 = vsel %vm2492_vm8, 1.0, %v7349_v42 }
 0x22a   :  { %v2257_v31 = vpop.permute.xlu1 %2256  ;;  %vm2498_vm14 = vcmp.eq.s32.totalorder %v2278_v54, %v7650_v35  ;;  %v3864_v54 = vmul.f32 %v9179_v51, %v8581_v61 }
 0x22b   :  { %vm2491_vm9 = vcmp.eq.s32.totalorder %v2257_v31, %v7650_v35  ;;  %7178 = vmatmul.mubr.msk.f32.gmra.mrb[72].mxu1 %vm815_vm1, %v2618_v6 }
 0x22c   :  { %v9220_v39 = vpop.f32.mrb[92].mxu0  ;;  %v2619_v7 = vsel %vm2491_vm9, 1.0, %v7349_v42 }
 0x22d   :  { %11266 = vst [vmem:[#allocation56_spill] sm:$0xff] %v9220_v39  ;;  %v2284_v38 = vpop.permute.xlu0 %2283  ;;  %3988 = vadd.xlane.f32.xlu0 %v3856_v18  ;;  %v9224_v21 = vpop.f32.mrb[93].mxu0  ;;  %7180 = vmatprep.mubr.msk.f32.mxu1 %vm815_vm1, %v2619_v7 }
 0x22e   :  { %v2263_v5 = vpop.permute.xlu1 %2262  ;;  %vm2500_vm0 = vcmp.eq.s32.totalorder %v2284_v38, %v7650_v35  ;;  %v3866_v38 = vmul.f32 %v9179_v51, %v8600_v8 }
 0x22f   :  { %vm2493_vm11 = vcmp.eq.s32.totalorder %v2263_v5, %v7650_v35  ;;  %7181 = vmatmul.mubr.msk.f32.gmra.mrb[74].mxu1 %vm815_vm1, %v2620_v16 }
 0x230   :  { %v9232_v31 = vpop.f32.mrb[94].mxu0  ;;  %v2621_v18 = vsel %vm2493_vm11, 1.0, %v7349_v42 }
 0x231   :  { %v9236_v6 = vpop.permute.xlu0 %2289  ;;  %3992 = vadd.xlane.f32.xlu0 %v3858_v26  ;;  %v9238_v7 = vpop.f32.mrb[95].mxu0  ;;  %7183 = vmatprep.mubr.msk.f32.mxu1 %vm815_vm1, %v2621_v18 }
 0x232   :  { %v2269_v39 = vpop.permute.xlu1 %2268  ;;  %vm2502_vm3 = vcmp.eq.s32.totalorder %v9236_v6, %v7650_v35 }
 0x233   :  { %vm2495_vm13 = vcmp.eq.s32.totalorder %v2269_v39, %v7650_v35  ;;  %7184 = vmatmul.mubr.msk.f32.gmra.mrb[76].mxu1 %vm815_vm1, %v2622_v30  ;;  %v3778_v39 = vcombine.high %v9148_v11, %v9148_v11  ;;  %v2624_v30 = vsel %vm2496_vm12, 1.0, %v7349_v42  ;;  %v3855_v11 = vmul.f32 %v8479_v15, %v9179_v51 }
 0x234   :  { %v9246_v16 = vpop.f32.mrb[96].mxu0  ;;  %v2623_v26 = vsel %vm2495_vm13, 1.0, %v7349_v42 }
 0x235   :  { %11267 = vst [vmem:[#allocation57_spill] sm:$0xff] %v9246_v16  ;;  %v9250_v5 = vpop.permute.xlu0 %2295  ;;  %3996 = vadd.xlane.f32.xlu0 %v3860_v36  ;;  %v9252_v18 = vpop.f32.mrb[97].mxu0  ;;  %7186 = vmatprep.mubr.msk.f32.mxu1 %vm815_vm1, %v2623_v26 }
 0x236   :  { %v2275_v16 = vpop.permute.xlu1 %2274  ;;  %vm2504_vm5 = vcmp.eq.s32.totalorder %v9250_v5, %v7650_v35 }
 0x237   :  { %vm2497_vm15 = vcmp.eq.s32.totalorder %v2275_v16, %v7650_v35  ;;  %7187 = vmatmul.mubr.msk.f32.gmra.mrb[78].mxu1 %vm815_vm1, %v2624_v30  ;;  %3980 = vadd.xlane.f32.xlu1 %v3852_v45  ;;  %v9278_v16 = vrot.slane %v3778_v39, %v9134_v48  ;;  %v2626_v45 = vsel %vm2498_vm14, 1.0, %v7349_v42  ;;  %v3857_v39 = vmul.f32 %v8498_v23, %v9179_v51 }
 0x238   :  { %v9264_v36 = vpop.f32.mrb[98].mxu0  ;;  %v2625_v10 = vsel %vm2497_vm15, 1.0, %v7349_v42 }
 0x239   :  { %v9268_v26 = vpop.permute.xlu0 %2301  ;;  %4000 = vadd.xlane.f32.xlu0 %v3862_v24  ;;  %v9270_v53 = vpop.f32.mrb[99].mxu0  ;;  %7189 = vmatprep.mubr.msk.f32.mxu1 %vm815_vm1, %v2625_v10 }
 0x23a   :  { %v2281_v30 = vpop.permute.xlu1 %2280  ;;  %vm2506_vm7 = vcmp.eq.s32.totalorder %v9268_v26, %v7650_v35 }
 0x23b   :  { %vm2499_vm2 = vcmp.eq.s32.totalorder %v2281_v30, %v7650_v35  ;;  %7190 = vmatmul.mubr.msk.f32.gmra.mrb[80].mxu1 %vm815_vm1, %v2626_v45  ;;  %3986 = vadd.xlane.f32.xlu1 %v3855_v11  ;;  %v9298_v30 = vrot.slane %v9278_v16, %v9165_v17  ;;  %v2628_v11 = vsel %vm2500_vm0, 1.0, %v7349_v42 }
 0x23c   :  { %v9283_v24 = vpop.f32.mrb[100].mxu0  ;;  %v2627_v15 = vsel %vm2499_vm2, 1.0, %v7349_v42 }
 0x23d   :  { %11268 = vst [vmem:[#allocation58_spill] sm:$0xff] %v9283_v24  ;;  %v9287_v10 = vpop.permute.xlu0 %2307  ;;  %4004 = vadd.xlane.f32.xlu0 %v3864_v54  ;;  %v9289_v61 = vpop.f32.mrb[101].mxu0  ;;  %7192 = vmatprep.mubr.msk.f32.mxu1 %vm815_vm1, %v2627_v15  ;;  %v3859_v24 = vmul.f32 %v8517_v32, %v9179_v51  ;;  %v3868_v6 = vmul.f32 %v9298_v30, %v8619_v19 }
 0x23e   :  { %v2287_v45 = vpop.permute.xlu1 %2286  ;;  %v3861_v19 = vmul.f32 %v8536_v41, %v9179_v51  ;;  %v3870_v5 = vmul.f32 %v9298_v30, %v8641_v29  ;;  %v3863_v29 = vmul.f32 %v8555_v50, %v9179_v51  ;;  %v3872_v26 = vmul.f32 %v9298_v30, %v8664_v46 }
 0x23f   :  { %vm2501_vm4 = vcmp.eq.s32.totalorder %v2287_v45, %v7650_v35  ;;  %7193 = vmatmul.mubr.msk.f32.gmra.mrb[82].mxu1 %vm815_vm1, %v2628_v11  ;;  %3990 = vadd.xlane.f32.xlu1 %v3857_v39  ;;  %v2630_v45 = vsel %vm2502_vm3, 1.0, %v7349_v42  ;;  %vm2508_vm9 = vcmp.eq.s32.totalorder %v9287_v10, %v7650_v35  ;;  %v3865_v46 = vmul.f32 %v8574_v58, %v9179_v51 }
 0x240   :  { %v9304_v54 = vpop.f32.mrb[102].mxu0  ;;  %v2629_v23 = vsel %vm2501_vm4, 1.0, %v7349_v42  ;;  %v3874_v10 = vmul.f32 %v9298_v30, %v8682_v56  ;;  %v3867_v56 = vmul.f32 %v8593_v2, %v9179_v51 }
 0x241   :  { %11269 = vst [vmem:[#allocation59_spill] sm:$0xff] %v9304_v54  ;;  %v9308_v8 = vpop.permute.xlu0 %2313  ;;  %4008 = vadd.xlane.f32.xlu0 %v3866_v38  ;;  %v9310_v15 = vpop.f32.mrb[103].mxu0  ;;  %7195 = vmatprep.mubr.msk.f32.mxu1 %vm815_vm1, %v2629_v23 }
 0x242   :  { %v2293_v54 = vpop.permute.xlu1 %2292  ;;  %vm2510_vm11 = vcmp.eq.s32.totalorder %v9308_v8, %v7650_v35  ;;  %v3876_v8 = vmul.f32 %v9298_v30, %v8699_v3  ;;  %v3869_v3 = vmul.f32 %v8612_v14, %v9298_v30 }
 0x243   :  { %vm2503_vm6 = vcmp.eq.s32.totalorder %v2293_v54, %v7650_v35  ;;  %7196 = vmatmul.mubr.msk.f32.gmra.mrb[84].mxu1 %vm815_vm1, %v2630_v45  ;;  %3994 = vadd.xlane.f32.xlu1 %v3859_v24  ;;  %v2632_v54 = vsel %vm2504_vm5, 1.0, %v7349_v42 }
 0x244   :  { %v9321_v39 = vpop.f32.mrb[104].mxu0  ;;  %v2631_v32 = vsel %vm2503_vm6, 1.0, %v7349_v42 }
 0x245   :  { %v9325_v38 = vpop.permute.xlu0 %2319  ;;  %4012 = vadd.xlane.f32.xlu0 %v3868_v6  ;;  %v9327_v11 = vpop.f32.mrb[105].mxu0  ;;  %7198 = vmatprep.mubr.msk.f32.mxu1 %vm815_vm1, %v2631_v32  ;;  %v2634_v32 = vsel %vm2506_vm7, 1.0, %v7349_v42 }
 0x246   :  { %v2299_v23 = vpop.permute.xlu1 %2298  ;;  %vm2512_vm13 = vcmp.eq.s32.totalorder %v9325_v38, %v7650_v35  ;;  %v3878_v38 = vmul.f32 %v9298_v30, %v8716_v20  ;;  %v3871_v20 = vmul.f32 %v8633_v25, %v9298_v30 }
 0x247   :  { %vm2505_vm8 = vcmp.eq.s32.totalorder %v2299_v23, %v7650_v35  ;;  %7199 = vmatmul.mubr.msk.f32.gmra.mrb[86].mxu1 %vm815_vm1, %v2632_v54  ;;  %3998 = vadd.xlane.f32.xlu1 %v3861_v19 }
 0x248   :  { %v9338_v24 = vpop.f32.mrb[106].mxu0  ;;  %v2633_v41 = vsel %vm2505_vm8, 1.0, %v7349_v42 }
 0x249   :  { %v9342_v6 = vpop.permute.xlu0 %2325  ;;  %4016 = vadd.xlane.f32.xlu0 %v3870_v5  ;;  %v9344_v45 = vpop.f32.mrb[107].mxu0  ;;  %7201 = vmatprep.mubr.msk.f32.mxu1 %vm815_vm1, %v2633_v41  ;;  %v2636_v41 = vsel %vm2508_vm9, 1.0, %v7349_v42 }
 0x24a   :  { %v2305_v23 = vpop.permute.xlu1 %2304  ;;  %vm2514_vm15 = vcmp.eq.s32.totalorder %v9342_v6, %v7650_v35  ;;  %v3880_v6 = vmul.f32 %v9298_v30, %v8733_v34 }
 0x24b   :  { %vm2507_vm10 = vcmp.eq.s32.totalorder %v2305_v23, %v7650_v35  ;;  %7202 = vmatmul.mubr.msk.f32.gmra.mrb[88].mxu1 %vm815_vm1, %v2634_v32  ;;  %4002 = vadd.xlane.f32.xlu1 %v3863_v29 }
 0x24c   :  { %v9355_v19 = vpop.f32.mrb[108].mxu0  ;;  %v2635_v50 = vsel %vm2507_vm10, 1.0, %v7349_v42 }
 0x24d   :  { %v9359_v5 = vpop.permute.xlu0 %2331  ;;  %4020 = vadd.xlane.f32.xlu0 %v3872_v26  ;;  %v9361_v54 = vpop.f32.mrb[109].mxu0  ;;  %7204 = vmatprep.mubr.msk.f32.mxu1 %vm815_vm1, %v2635_v50  ;;  %v2638_v50 = vsel %vm2510_vm11, 1.0, %v7349_v42 }
 0x24e   :  { %v2311_v23 = vpop.permute.xlu1 %2310  ;;  %vm2516_vm2 = vcmp.eq.s32.totalorder %v9359_v5, %v7650_v35  ;;  %v3882_v5 = vmul.f32 %v9298_v30, %v8749_v49 }
 0x24f   :  { %vm2509_vm12 = vcmp.eq.s32.totalorder %v2311_v23, %v7650_v35  ;;  %7205 = vmatmul.mubr.msk.f32.gmra.mrb[90].mxu1 %vm815_vm1, %v2636_v41  ;;  %4006 = vadd.xlane.f32.xlu1 %v3865_v46  ;;  %v2640_v41 = vsel %vm2512_vm13, 1.0, %v7349_v42 }
 0x250   :  { %v9372_v29 = vpop.f32.mrb[110].mxu0  ;;  %v2637_v58 = vsel %vm2509_vm12, 1.0, %v7349_v42 }
 0x251   :  { %v9376_v26 = vpop.permute.xlu0 %2337  ;;  %4024 = vadd.xlane.f32.xlu0 %v3874_v10  ;;  %v9378_v32 = vpop.f32.mrb[111].mxu0  ;;  %7207 = vmatprep.mubr.msk.f32.mxu1 %vm815_vm1, %v2637_v58 }
 0x252   :  { %v2317_v23 = vpop.permute.xlu1 %2316  ;;  %vm2518_vm4 = vcmp.eq.s32.totalorder %v9376_v26, %v7650_v35 }
 0x253   :  { %vm2511_vm14 = vcmp.eq.s32.totalorder %v2317_v23, %v7650_v35  ;;  %7208 = vmatmul.mubr.msk.f32.gmra.mrb[92].mxu1 %vm815_vm1, %v2638_v50  ;;  %4010 = vadd.xlane.f32.xlu1 %v3867_v56  ;;  %v3808_v23 = vcombine.high %v9162_v33, %v9162_v33  ;;  %v3873_v33 = vmul.f32 %v8658_v40, %v9298_v30 }
 0x254   :  { %v9389_v46 = vpop.f32.mrb[112].mxu0  ;;  %v2639_v2 = vsel %vm2511_vm14, 1.0, %v7349_v42 }
 0x255   :  { %v9393_v51 = vpop.permute.xlu0 %2343  ;;  %4028 = vadd.xlane.f32.xlu0 %v3876_v8  ;;  %v9395_v10 = vpop.f32.mrb[113].mxu0  ;;  %7210 = vmatprep.mubr.msk.f32.mxu1 %vm815_vm1, %v2639_v2  ;;  %v2642_v2 = vsel %vm2514_vm15, 1.0, %v7349_v42 }
 0x256   :  { %v2323_v58 = vpop.permute.xlu1 %2322  ;;  %vm2520_vm6 = vcmp.eq.s32.totalorder %v9393_v51, %v7650_v35 }
 0x257   :  { %vm2513_vm0 = vcmp.eq.s32.totalorder %v2323_v58, %v7650_v35  ;;  %7211 = vmatmul.mubr.msk.f32.gmra.mrb[94].mxu1 %vm815_vm1, %v2640_v41  ;;  %4014 = vadd.xlane.f32.xlu1 %v3869_v3  ;;  %v9439_v58 = vrot.slane %v3808_v23, %v9165_v17  ;;  %v3875_v23 = vmul.f32 %v8678_v52, %v9298_v30 }
 0x258   :  { %v9406_v56 = vpop.f32.mrb[114].mxu0  ;;  %v2641_v14 = vsel %vm2513_vm0, 1.0, %v7349_v42 }
 0x259   :  { %v9410_v8 = vpop.permute.xlu0 %2349  ;;  %4032 = vadd.xlane.f32.xlu0 %v3878_v38  ;;  %v9412_v50 = vpop.f32.mrb[115].mxu0  ;;  %7213 = vmatprep.mubr.msk.f32.mxu1 %vm815_vm1, %v2641_v14  ;;  %v2644_v14 = vsel %vm2516_vm2, 1.0, %v7349_v42  ;;  %v3884_v26 = vmul.f32 %v9439_v58, %v8765_v0  ;;  %v3877_v0 = vmul.f32 %v8695_v63, %v9298_v30  ;;  %v3886_v51 = vmul.f32 %v9439_v58, %v8781_v22 }
 0x25a   :  { %v2329_v3 = vpop.permute.xlu1 %2328  ;;  %vm2522_vm8 = vcmp.eq.s32.totalorder %v9410_v8, %v7650_v35  ;;  %v3879_v22 = vmul.f32 %v8712_v13, %v9298_v30  ;;  %v3888_v8 = vmul.f32 %v9439_v58, %v8797_v43  ;;  %v3881_v43 = vmul.f32 %v8729_v28, %v9298_v30 }
 0x25b   :  { %vm2515_vm3 = vcmp.eq.s32.totalorder %v2329_v3, %v7650_v35  ;;  %7214 = vmatmul.mubr.msk.f32.gmra.mrb[96].mxu1 %vm815_vm1, %v2642_v2  ;;  %4018 = vadd.xlane.f32.xlu1 %v3871_v20  ;;  %v2646_v3 = vsel %vm2518_vm4, 1.0, %v7349_v42 }
 0x25c   :  { %v9425_v38 = vpop.f32.mrb[116].mxu0  ;;  %v2643_v25 = vsel %vm2515_vm3, 1.0, %v7349_v42 }
 0x25d   :  { %11270 = vst [vmem:[#allocation60_spill] sm:$0xff] %v9425_v38  ;;  %v9429_v41 = vpop.permute.xlu0 %2355  ;;  %4036 = vadd.xlane.f32.xlu0 %v3880_v6  ;;  %v9431_v34 = vpop.f32.mrb[117].mxu0  ;;  %7216 = vmatprep.mubr.msk.f32.mxu1 %vm815_vm1, %v2643_v25 }
 0x25e   :  { %v2335_v20 = vpop.permute.xlu1 %2334  ;;  %vm2524_vm10 = vcmp.eq.s32.totalorder %v9429_v41, %v7650_v35  ;;  %v3890_v41 = vmul.f32 %v9439_v58, %v8813_v4 }
 0x25f   :  { %vm2517_vm5 = vcmp.eq.s32.totalorder %v2335_v20, %v7650_v35  ;;  %7217 = vmatmul.mubr.msk.f32.gmra.mrb[98].mxu1 %vm815_vm1, %v2644_v14  ;;  %4022 = vadd.xlane.f32.xlu1 %v3873_v33  ;;  %v2648_v20 = vsel %vm2520_vm6, 1.0, %v7349_v42 }
 0x260   :  { %v9445_v6 = vpop.f32.mrb[118].mxu0  ;;  %v2645_v40 = vsel %vm2517_vm5, 1.0, %v7349_v42 }
 0x261   :  { %11271 = vst [vmem:[#allocation61_spill] sm:$0xff] %v9445_v6  ;;  %v9449_v2 = vpop.permute.xlu0 %2361  ;;  %4040 = vadd.xlane.f32.xlu0 %v3882_v5  ;;  %v9451_v49 = vpop.f32.mrb[119].mxu0  ;;  %7219 = vmatprep.mubr.msk.f32.mxu1 %vm815_vm1, %v2645_v40 }
 0x262   :  { %v2341_v25 = vpop.permute.xlu1 %2340  ;;  %vm2526_vm12 = vcmp.eq.s32.totalorder %v9449_v2, %v7650_v35  ;;  %v3892_v2 = vmul.f32 %v9439_v58, %v8829_v27  ;;  %v3885_v27 = vmul.f32 %v8761_v59, %v9439_v58 }
 0x263   :  { %vm2519_vm7 = vcmp.eq.s32.totalorder %v2341_v25, %v7650_v35  ;;  %7220 = vmatmul.mubr.msk.f32.gmra.mrb[100].mxu1 %vm815_vm1, %v2646_v3  ;;  %4026 = vadd.xlane.f32.xlu1 %v3875_v23  ;;  %v2650_v25 = vsel %vm2522_vm8, 1.0, %v7349_v42 }
 0x264   :  { %v9462_v33 = vpop.f32.mrb[120].mxu0  ;;  %v2647_v52 = vsel %vm2519_vm7, 1.0, %v7349_v42 }
 0x265   :  { %11272 = vst [vmem:[#allocation62_spill] sm:$0xff] %v9462_v33  ;;  %v9466_v5 = vpop.permute.xlu0 %2367  ;;  %4044 = vadd.xlane.f32.xlu0 %v3884_v26  ;;  %v9468_v14 = vpop.f32.mrb[121].mxu0  ;;  %7222 = vmatprep.mubr.msk.f32.mxu1 %vm815_vm1, %v2647_v52 }
 0x266   :  { %v2347_v40 = vpop.permute.xlu1 %2346  ;;  %vm2528_vm14 = vcmp.eq.s32.totalorder %v9466_v5, %v7650_v35 }
 0x267   :  { %vm2521_vm9 = vcmp.eq.s32.totalorder %v2347_v40, %v7650_v35  ;;  %7223 = vmatmul.mubr.msk.f32.gmra.mrb[102].mxu1 %vm815_vm1, %v2648_v20  ;;  %4030 = vadd.xlane.f32.xlu1 %v3877_v0  ;;  %v2652_v40 = vsel %vm2524_vm10, 1.0, %v7349_v42  ;;  %v2656_v5 = vsel %vm2528_vm14, 1.0, %v7349_v42 }
 0x268   :  { %v9479_v23 = vpop.f32.mrb[122].mxu0  ;;  %v2649_v63 = vsel %vm2521_vm9, 1.0, %v7349_v42 }
 0x269   :  { %11273 = vst [vmem:[#allocation63_spill] sm:$0xff] %v9479_v23  ;;  %v9483_v26 = vpop.permute.xlu0 %2373  ;;  %4048 = vadd.xlane.f32.xlu0 %v3886_v51  ;;  %v9485_v3 = vpop.f32.mrb[123].mxu0  ;;  %7225 = vmatprep.mubr.msk.f32.mxu1 %vm815_vm1, %v2649_v63  ;;  %v4403_v23 = vadd.s32 4294967248, %v7650_v35 }
 0x26a   :  { %v2353_v52 = vpop.permute.xlu1 %2352  ;;  %vm2530_vm0 = vcmp.eq.s32.totalorder %v9483_v26, %v7650_v35  ;;  %v3810_v26 = vcombine.high %v9278_v16, %v9278_v16 }
 0x26b   :  { %vm2523_vm11 = vcmp.eq.s32.totalorder %v2353_v52, %v7650_v35  ;;  %7226 = vmatmul.mubr.msk.f32.gmra.mrb[104].mxu1 %vm815_vm1, %v2650_v25  ;;  %4034 = vadd.xlane.f32.xlu1 %v3879_v22  ;;  %v3883_v52 = vmul.f32 %v8745_v44, %v9298_v30  ;;  %v3894_v30 = vmul.f32 %v9439_v58, %v8845_v57 }
 0x26c   :  { %v9496_v0 = vpop.f32.mrb[124].mxu0  ;;  %v2651_v13 = vsel %vm2523_vm11, 1.0, %v7349_v42  ;;  %v3887_v57 = vmul.f32 %v8777_v12, %v9439_v58 }
 0x26d   :  { %11274 = vst [vmem:[#allocation64_spill] sm:$0xff] %v9496_v0  ;;  %v9500_v51 = vpop.permute.xlu0 %2379  ;;  %4052 = vadd.xlane.f32.xlu0 %v3888_v8  ;;  %v9502_v20 = vpop.f32.mrb[125].mxu0  ;;  %7228 = vmatprep.mubr.msk.f32.mxu1 %vm815_vm1, %v2651_v13 }
 0x26e   :  { %11275 = vst [vmem:[#allocation65_spill] sm:$0xff] %v9502_v20  ;;  %v9510_v63 = vpop.f32.mrb[0].mxu1  ;;  %v2359_v22 = vpop.permute.xlu1 %2358  ;;  %vm2532_vm3 = vcmp.eq.s32.totalorder %v9500_v51, %v7650_v35  ;;  %v9576_v51 = vrot.slane %v3810_v26, %v9165_v17  ;;  %v11288_v26 = vld [vmem:[#allocation15_spill] sm:$0xff] }
 0x26f   :  { %11276 = vst [vmem:[#allocation66_spill] sm:$0xff] %v9510_v63  ;;  %vm2525_vm13 = vcmp.eq.s32.totalorder %v2359_v22, %v7650_v35  ;;  %v9517_v25 = vpop.f32.mrb[1].mxu1  ;;  %7229 = vmatmul.mubr.msk.f32.gmra.mrb[106].mxu1 %vm815_vm1, %v2652_v40  ;;  %4038 = vadd.xlane.f32.xlu1 %v3881_v43  ;;  %v2654_v22 = vsel %vm2526_vm12, 1.0, %v7349_v42 }
 0x270   :  { %v9515_v8 = vpop.f32.mrb[126].mxu0  ;;  %11278 = vst [vmem:[#allocation68_spill] sm:$0xff] %v9517_v25  ;;  %v2653_v28 = vsel %vm2525_vm13, 1.0, %v7349_v42 }
 0x271   :  { %11277 = vst [vmem:[#allocation67_spill] sm:$0xff] %v9515_v8  ;;  %4056 = vadd.xlane.f32.xlu0 %v3890_v41  ;;  %v9521_v4 = vpop.f32.mrb[127].mxu0  ;;  %v2386_v13 = vpop.permute.xlu0 %2385  ;;  %7231 = vmatprep.mubr.msk.f32.mxu1 %vm815_vm1, %v2653_v28 }
 0x272   :  { %11279 = vst [vmem:[#allocation69_spill] sm:$0xff] %v9521_v4  ;;  %v9529_v63 = vpop.f32.mrb[2].mxu1  ;;  %v2365_v40 = vpop.permute.xlu1 %2364  ;;  %vm2534_vm5 = vcmp.eq.s32.totalorder %v2386_v13, %v7650_v35 }
 0x273   :  { %11280 = vst [vmem:[#allocation70_spill] sm:$0xff] %v9529_v63  ;;  %vm2527_vm15 = vcmp.eq.s32.totalorder %v2365_v40, %v7650_v35  ;;  %v9534_v43 = vpop.f32.mrb[3].mxu1  ;;  %7232 = vmatmul.mubr.msk.f32.gmra.mrb[108].mxu1 %vm815_vm1, %v2654_v22  ;;  %4042 = vadd.xlane.f32.xlu1 %v3883_v52  ;;  %v3896_v22 = vmul.f32 %v9439_v58, %v8861_v62  ;;  %v2658_v40 = vsel %vm2530_vm0, 1.0, %v7349_v42  ;;  %v2662_v13 = vsel %vm2534_vm5, 1.0, %v7349_v42 }
 0x274   :  { %11281 = vst [vmem:[#allocation71_spill] sm:$0xff] %v9534_v43  ;;  %v2655_v44 = vsel %vm2527_vm15, 1.0, %v7349_v42  ;;  %v3889_v62 = vmul.f32 %v8793_v37, %v9439_v58  ;;  %vm4401_vm5 = vcmask 392512  }
 0x275   :  { %4060 = vadd.xlane.f32.xlu0 %v3892_v2  ;;  %7234 = vmatprep.mubr.msk.f32.mxu1 %vm815_vm1, %v2655_v44  ;;  %v2392_v52 = vpop.permute.xlu0 %2391 }
 0x276   :  { %v9544_v41 = vpop.f32.mrb[4].mxu1  ;;  %v2371_v28 = vpop.permute.xlu1 %2370  ;;  %vm2536_vm7 = vcmp.eq.s32.totalorder %v2392_v52, %v7650_v35 }
 0x277   :  { %11282 = vst [vmem:[#allocation72_spill] sm:$0xff] %v9544_v41  ;;  %vm2529_vm2 = vcmp.eq.s32.totalorder %v2371_v28, %v7650_v35  ;;  %v9549_v2 = vpop.f32.mrb[5].mxu1  ;;  %7235 = vmatmul.mubr.msk.f32.gmra.mrb[110].mxu1 %vm815_vm1, %v2656_v5  ;;  %4046 = vadd.xlane.f32.xlu1 %v3885_v27  ;;  %v2660_v28 = vsel %vm2532_vm3, 1.0, %v7349_v42  ;;  %v2664_v52 = vsel %vm2536_vm7, 1.0, %v7349_v42  ;;  %vm4387_vm3 = vcmask 261312  }
 0x278   :  { %11283 = vst [vmem:[#allocation73_spill] sm:$0xff] %v9549_v2  ;;  %v2657_v59 = vsel %vm2529_vm2, 1.0, %v7349_v42  ;;  %vm4380_vm2 = vcmask 195712   ;;  %vm4415_vm7 = vcmask 523712  }
 0x279   :  { %4064 = vadd.xlane.f32.xlu0 %v3894_v30  ;;  %7237 = vmatprep.mubr.msk.f32.mxu1 %vm815_vm1, %v2657_v59  ;;  %v2398_v16 = vpop.permute.xlu0 %2397  ;;  %v3898_v30 = vmul.f32 %v9439_v58, %v8877_v9  ;;  %v3891_v9 = vmul.f32 %v8809_v55, %v9439_v58 }
 0x27a   :  { %v9561_v44 = vpop.f32.mrb[6].mxu1  ;;  %v2377_v5 = vpop.permute.xlu1 %2376  ;;  %vm2538_vm9 = vcmp.eq.s32.totalorder %v2398_v16, %v7650_v35 }
 0x27b   :  { %11284 = vst [vmem:[#allocation74_spill] sm:$0xff] %v9561_v44  ;;  %vm2531_vm4 = vcmp.eq.s32.totalorder %v2377_v5, %v7650_v35  ;;  %v9566_v27 = vpop.f32.mrb[7].mxu1  ;;  %7238 = vmatmul.mubr.msk.f32.gmra.mrb[112].mxu1 %vm815_vm1, %v2658_v40  ;;  %4050 = vadd.xlane.f32.xlu1 %v3887_v57  ;;  %v3900_v40 = vmul.f32 %v9576_v51, %v11288_v26  ;;  %v2666_v16 = vsel %vm2538_vm9, 1.0, %v7349_v42  ;;  %vm4429_vm9 = vcmask 654912  }
 0x27c   :  { %11285 = vst [vmem:[#allocation75_spill] sm:$0xff] %v9566_v27  ;;  %v2659_v12 = vsel %vm2531_vm4, 1.0, %v7349_v42  ;;  %vm4394_vm4 = vcmask 326912  }
 0x27d   :  { %4068 = vadd.xlane.f32.xlu0 %v3896_v22  ;;  %7240 = vmatprep.mubr.msk.f32.mxu1 %vm815_vm1, %v2659_v12 }
 0x27e   :  { %v9579_v59 = vpop.f32.mrb[8].mxu1  ;;  %v2383_v57 = vpop.permute.xlu1 %2382 }
 0x27f   :  { %11286 = vst [vmem:[#allocation76_spill] sm:$0xff] %v9579_v59  ;;  %vm2533_vm6 = vcmp.eq.s32.totalorder %v2383_v57, %v7650_v35  ;;  %v9583_v22 = vpop.f32.mrb[9].mxu1  ;;  %7241 = vmatmul.mubr.msk.f32.gmra.mrb[114].mxu1 %vm815_vm1, %v2660_v28  ;;  %4054 = vadd.xlane.f32.xlu1 %v3889_v62  ;;  %v2404_v28 = vpop.permute.xlu0 %2403 }
 0x280   :  { %11287 = vst [vmem:[#allocation77_spill] sm:$0xff] %v9583_v22  ;;  %v2661_v37 = vsel %vm2533_vm6, 1.0, %v7349_v42  ;;  %vm2540_vm11 = vcmp.eq.s32.totalorder %v2404_v28, %v7650_v35  ;;  %v11354_v22 = vld [vmem:[#allocation48_spill] sm:$0xff]  ;;  %vm4408_vm6 = vcmask 458112  }
 0x281   :  { %4072 = vadd.xlane.f32.xlu0 %v3898_v30  ;;  %7243 = vmatprep.mubr.msk.f32.mxu1 %vm815_vm1, %v2661_v37  ;;  %v11291_v30 = vld [vmem:[#allocation10_spill] sm:$0xff]  ;;  %v11292_v37 = vld [vmem:[#allocation17_spill] sm:$0xff]  ;;  %v2668_v28 = vsel %vm2540_vm11, 1.0, %v7349_v42  ;;  %vm4443_vm11 = vcmask 786112  }
 0x282   :  { %v9593_v5 = vpop.f32.mrb[10].mxu1  ;;  %v2389_v12 = vpop.permute.xlu1 %2388  ;;  %v3893_v57 = vmul.f32 %v11291_v30, %v9439_v58  ;;  %v3902_v26 = vmul.f32 %v9576_v51, %v11292_v37  ;;  %v11296_v37 = vld [vmem:[#allocation19_spill] sm:$0xff] }
 0x283   :  { %11289 = vst [vmem:[#allocation15_spill] sm:$0xff] %v9593_v5  ;;  %vm2535_vm8 = vcmp.eq.s32.totalorder %v2389_v12, %v7650_v35  ;;  %v9597_v62 = vpop.f32.mrb[11].mxu1  ;;  %7244 = vmatmul.mubr.msk.f32.gmra.mrb[116].mxu1 %vm815_vm1, %v2662_v13  ;;  %4058 = vadd.xlane.f32.xlu1 %v3891_v9  ;;  %v11295_v13 = vld [vmem:[#allocation11_spill] sm:$0xff]  ;;  %v2410_v30 = vpop.permute.xlu0 %2409 }
 0x284   :  { %11290 = vst [vmem:[#allocation78_spill] sm:$0xff] %v9597_v62  ;;  %v2663_v55 = vsel %vm2535_vm8, 1.0, %v7349_v42  ;;  %vm2542_vm13 = vcmp.eq.s32.totalorder %v2410_v30, %v7650_v35  ;;  %v11305_v30 = vld [vmem:[#allocation9_spill] sm:$0xff]  ;;  %v4382_v62 = vadd.s32 4294967272, %v7650_v35  ;;  %vm4422_vm8 = vcmask 589312  }
 0x285   :  { %4076 = vadd.xlane.f32.xlu0 %v3900_v40  ;;  %7246 = vmatprep.mubr.msk.f32.mxu1 %vm815_vm1, %v2663_v55  ;;  %v3895_v55 = vmul.f32 %v11295_v13, %v9439_v58  ;;  %v11300_v13 = vld [vmem:[#allocation21_spill] sm:$0xff] }
 0x286   :  { %v9607_v5 = vpop.f32.mrb[12].mxu1  ;;  %v2395_v12 = vpop.permute.xlu1 %2394 }
 0x287   :  { %11293 = vst [vmem:[#allocation10_spill] sm:$0xff] %v9607_v5  ;;  %vm2537_vm10 = vcmp.eq.s32.totalorder %v2395_v12, %v7650_v35  ;;  %v9611_v9 = vpop.f32.mrb[13].mxu1  ;;  %7247 = vmatmul.mubr.msk.f32.gmra.mrb[118].mxu1 %vm815_vm1, %v2664_v52  ;;  %4062 = vadd.xlane.f32.xlu1 %v3893_v57  ;;  %v3904_v5 = vmul.f32 %v9576_v51, %v11296_v37  ;;  %v11299_v52 = vld [vmem:[#allocation12_spill] sm:$0xff] }
 0x288   :  { %11294 = vst [vmem:[#allocation17_spill] sm:$0xff] %v9611_v9  ;;  %v2665_v40 = vsel %vm2537_vm10, 1.0, %v7349_v42  ;;  %v3906_v37 = vmul.f32 %v9576_v51, %v11300_v13  ;;  %v11304_v13 = vld [vmem:[#allocation23_spill] sm:$0xff]  ;;  %vm4436_vm10 = vcmask 720512  }
 0x289   :  { %4080 = vadd.xlane.f32.xlu0 %v3902_v26  ;;  %7249 = vmatprep.mubr.msk.f32.mxu1 %vm815_vm1, %v2665_v40  ;;  %v3897_v40 = vmul.f32 %v11299_v52, %v9439_v58 }
 0x28a   :  { %v9621_v12 = vpop.f32.mrb[14].mxu1  ;;  %v2401_v59 = vpop.permute.xlu1 %2400 }
 0x28b   :  { %11297 = vst [vmem:[#allocation11_spill] sm:$0xff] %v9621_v12  ;;  %vm2539_vm12 = vcmp.eq.s32.totalorder %v2401_v59, %v7650_v35  ;;  %v9625_v57 = vpop.f32.mrb[15].mxu1  ;;  %7250 = vmatmul.mubr.msk.f32.gmra.mrb[120].mxu1 %vm815_vm1, %v2666_v16  ;;  %4066 = vadd.xlane.f32.xlu1 %v3895_v55 }
 0x28c   :  { %11298 = vst [vmem:[#allocation19_spill] sm:$0xff] %v9625_v57  ;;  %v2667_v26 = vsel %vm2539_vm12, 1.0, %v7349_v42  ;;  %v11337_v57 = vld [vmem:[#allocation39_spill] sm:$0xff]  ;;  %vm11214_vm12 = vcmask 851712  }
 0x28d   :  { %4084 = vadd.xlane.f32.xlu0 %v3904_v5  ;;  %7252 = vmatprep.mubr.msk.f32.mxu1 %vm815_vm1, %v2667_v26  ;;  %v2416_v5 = vpop.permute.xlu0 %2415  ;;  %v11303_v26 = vld [vmem:[#allocation13_spill] sm:$0xff] }
 0x28e   :  { %v9635_v12 = vpop.f32.mrb[16].mxu1  ;;  %v2407_v59 = vpop.permute.xlu1 %2406  ;;  %v3899_v52 = vmul.f32 %v11303_v26, %v9439_v58  ;;  %vm2544_vm15 = vcmp.eq.s32.totalorder %v2416_v5, %v7650_v35  ;;  %v11309_v26 = vld [vmem:[#allocation25_spill] sm:$0xff] }
 0x28f   :  { %11301 = vst [vmem:[#allocation12_spill] sm:$0xff] %v9635_v12  ;;  %vm2541_vm14 = vcmp.eq.s32.totalorder %v2407_v59, %v7650_v35  ;;  %v9639_v55 = vpop.f32.mrb[17].mxu1  ;;  %7253 = vmatmul.mubr.msk.f32.gmra.mrb[122].mxu1 %vm815_vm1, %v2668_v28  ;;  %4070 = vadd.xlane.f32.xlu1 %v3897_v40  ;;  %v3908_v12 = vmul.f32 %v9576_v51, %v11304_v13  ;;  %v11308_v28 = vld [vmem:[#allocation14_spill] sm:$0xff] }
 0x290   :  { %11302 = vst [vmem:[#allocation21_spill] sm:$0xff] %v9639_v55  ;;  %v2669_v16 = vsel %vm2541_vm14, 1.0, %v7349_v42  ;;  %v3763_v59 = vcombine.high %v11305_v30, %v11305_v30  ;;  %v2670_v55 = vsel %vm2542_vm13, 1.0, %v7349_v42  ;;  %v3910_v13 = vmul.f32 %v9576_v51, %v11309_v26 }
 0x291   :  { %4088 = vadd.xlane.f32.xlu0 %v3906_v37  ;;  %7255 = vmatprep.mubr.msk.f32.mxu1 %vm815_vm1, %v2669_v16  ;;  %v3901_v16 = vmul.f32 %v11308_v28, %v9576_v51  ;;  %v2672_v30 = vsel %vm2544_vm15, 1.0, %v7349_v42  ;;  %vm4457_vm13 = vcmask 917312   ;;  %vm4464_vm14 = vcmask 982912  }
 0x292   :  { %v9651_v44 = vpop.f32.mrb[18].mxu1  ;;  %v2413_v40 = vpop.permute.xlu1 %2412  ;;  %v9665_v5 = vrot.slane %v3763_v59, %v9134_v48  ;;  %vm4471_vm15 = vcmask 1048512  }
 0x293   :  { %11306 = vst [vmem:[#allocation13_spill] sm:$0xff] %v9651_v44  ;;  %vm2543_vm0 = vcmp.eq.s32.totalorder %v2413_v40, %v7650_v35  ;;  %v9655_v37 = vpop.f32.mrb[19].mxu1  ;;  %7256 = vmatmul.mubr.msk.f32.gmra.mrb[124].mxu1 %vm815_vm1, %v2670_v55  ;;  %4074 = vadd.xlane.f32.xlu1 %v3899_v52 }
 0x294   :  { %11307 = vst [vmem:[#allocation23_spill] sm:$0xff] %v9655_v37  ;;  %v2671_v58 = vsel %vm2543_vm0, 1.0, %v7349_v42  ;;  %v9679_v59 = vrot.slane %v9665_v5, %v9134_v48  ;;  %vm11205_vm0 = vcmask 1041409  }
 0x295   :  { %4092 = vadd.xlane.f32.xlu0 %v3908_v12  ;;  %7258 = vmatprep.mubr.msk.f32.mxu1 %vm815_vm1, %v2671_v58  ;;  %v11312_v12 = vld [vmem:[#allocation16_spill] sm:$0xff]  ;;  %v11313_v58 = vld [vmem:[#allocation27_spill] sm:$0xff] }
 0x296   :  { %v9668_v40 = vpop.f32.mrb[20].mxu1  ;;  %v3903_v52 = vmul.f32 %v11312_v12, %v9576_v51  ;;  %v3912_v28 = vmul.f32 %v9576_v51, %v11313_v58  ;;  %v9691_v12 = vrot.slane %v9679_v59, %v9165_v17 }
 0x297   :  { %11310 = vst [vmem:[#allocation9_spill] sm:$0xff] %v9668_v40  ;;  %v9670_v55 = vpop.f32.mrb[21].mxu1  ;;  %7259 = vmatmul.mubr.msk.f32.gmra.mrb[126].mxu1 %vm815_vm1, %v2672_v30  ;;  %4078 = vadd.xlane.f32.xlu1 %v3901_v16  ;;  %v11316_v30 = vld [vmem:[#allocation18_spill] sm:$0xff]  ;;  %vm4373_vm1 = vcmask 130112  }
 0x298   :  { %11311 = vst [vmem:[#allocation14_spill] sm:$0xff] %v9670_v55  ;;  %v3905_v16 = vmul.f32 %v11316_v30, %v9576_v51 }
 0x299   :  { %4096 = vadd.xlane.f32.xlu0 %v3910_v13  ;;  %v11317_v13 = vld [vmem:[#allocation29_spill] sm:$0xff] }
 0x29a   :  { %v9681_v26 = vpop.f32.mrb[22].mxu1  ;;  %v3914_v40 = vmul.f32 %v9576_v51, %v11317_v13  ;;  %v11324_v13 = vld [vmem:[#allocation22_spill] sm:$0xff] }
 0x29b   :  { %11314 = vst [vmem:[#allocation25_spill] sm:$0xff] %v9681_v26  ;;  %v9683_v42 = vpop.f32.mrb[23].mxu1  ;;  %4082 = vadd.xlane.f32.xlu1 %v3903_v52  ;;  %v11320_v26 = vld [vmem:[#allocation20_spill] sm:$0xff]  ;;  %v3909_v37 = vmul.f32 %v11324_v13, %v9576_v51 }
 0x29c   :  { %11315 = vst [vmem:[#allocation16_spill] sm:$0xff] %v9683_v42  ;;  %v3907_v52 = vmul.f32 %v11320_v26, %v9576_v51  ;;  %v11328_v26 = vld [vmem:[#allocation24_spill] sm:$0xff] }
 0x29d   :  { %4100 = vadd.xlane.f32.xlu0 %v3912_v28  ;;  %v11321_v28 = vld [vmem:[#allocation31_spill] sm:$0xff] }
 0x29e   :  { %v9693_v58 = vpop.f32.mrb[24].mxu1  ;;  %v3916_v42 = vmul.f32 %v9691_v12, %v11321_v28  ;;  %v3911_v28 = vmul.f32 %v11328_v26, %v9576_v51 }
 0x29f   :  { %11318 = vst [vmem:[#allocation27_spill] sm:$0xff] %v9693_v58  ;;  %v9695_v44 = vpop.f32.mrb[25].mxu1  ;;  %4086 = vadd.xlane.f32.xlu1 %v3905_v16  ;;  %v11325_v58 = vld [vmem:[#allocation33_spill] sm:$0xff] }
 0x2a0   :  { %11319 = vst [vmem:[#allocation18_spill] sm:$0xff] %v9695_v44  ;;  %v3918_v44 = vmul.f32 %v9691_v12, %v11325_v58  ;;  %v11332_v58 = vld [vmem:[#allocation26_spill] sm:$0xff] }
 0x2a1   :  { %4104 = vadd.xlane.f32.xlu0 %v3914_v40  ;;  %v3913_v13 = vmul.f32 %v11332_v58, %v9576_v51 }
 0x2a2   :  { %v9701_v30 = vpop.f32.mrb[26].mxu1 }
 0x2a3   :  { %11322 = vst [vmem:[#allocation29_spill] sm:$0xff] %v9701_v30  ;;  %v9703_v55 = vpop.f32.mrb[27].mxu1  ;;  %4090 = vadd.xlane.f32.xlu1 %v3907_v52  ;;  %v11329_v30 = vld [vmem:[#allocation35_spill] sm:$0xff] }
 0x2a4   :  { %11323 = vst [vmem:[#allocation20_spill] sm:$0xff] %v9703_v55  ;;  %v3920_v55 = vmul.f32 %v9691_v12, %v11329_v30  ;;  %v11336_v30 = vld [vmem:[#allocation28_spill] sm:$0xff] }
 0x2a5   :  { %4108 = vadd.xlane.f32.xlu0 %v3916_v42  ;;  %v3915_v26 = vmul.f32 %v11336_v30, %v9576_v51  ;;  %v3779_v51 = vcombine.high %v9665_v5, %v9665_v5 }
 0x2a6   :  { %v9709_v16 = vpop.f32.mrb[28].mxu1 }
 0x2a7   :  { %11326 = vst [vmem:[#allocation31_spill] sm:$0xff] %v9709_v16  ;;  %v9711_v40 = vpop.f32.mrb[29].mxu1  ;;  %4094 = vadd.xlane.f32.xlu1 %v3909_v37  ;;  %v11333_v16 = vld [vmem:[#allocation37_spill] sm:$0xff] }
 0x2a8   :  { %11327 = vst [vmem:[#allocation22_spill] sm:$0xff] %v9711_v40  ;;  %v3922_v40 = vmul.f32 %v9691_v12, %v11333_v16  ;;  %v11340_v16 = vld [vmem:[#allocation30_spill] sm:$0xff] }
 0x2a9   :  { %4112 = vadd.xlane.f32.xlu0 %v3918_v44  ;;  %v3917_v58 = vmul.f32 %v11340_v16, %v9691_v12 }
 0x2aa   :  { %v9717_v52 = vpop.f32.mrb[30].mxu1 }
 0x2ab   :  { %11330 = vst [vmem:[#allocation33_spill] sm:$0xff] %v9717_v52  ;;  %v9719_v42 = vpop.f32.mrb[31].mxu1  ;;  %4098 = vadd.xlane.f32.xlu1 %v3911_v28  ;;  %v3924_v28 = vmul.f32 %v9691_v12, %v11337_v57  ;;  %v11344_v57 = vld [vmem:[#allocation32_spill] sm:$0xff] }
 0x2ac   :  { %11331 = vst [vmem:[#allocation24_spill] sm:$0xff] %v9719_v42 }
 0x2ad   :  { %4116 = vadd.xlane.f32.xlu0 %v3920_v55 }
 0x2ae   :  { %v9725_v37 = vpop.f32.mrb[32].mxu1 }
 0x2af   :  { %11334 = vst [vmem:[#allocation35_spill] sm:$0xff] %v9725_v37  ;;  %v9727_v44 = vpop.f32.mrb[33].mxu1  ;;  %4102 = vadd.xlane.f32.xlu1 %v3913_v13 }
 0x2b0   :  { %11335 = vst [vmem:[#allocation26_spill] sm:$0xff] %v9727_v44  ;;  %v11341_v44 = vld [vmem:[#allocation41_spill] sm:$0xff] }
 0x2b1   :  { %4120 = vadd.xlane.f32.xlu0 %v3922_v40  ;;  %v3926_v40 = vmul.f32 %v9691_v12, %v11341_v44 }
 0x2b2   :  { %v3983_v52 = vpop.xlane.xlu0 %3982  ;;  %v9733_v55 = vpop.f32.mrb[34].mxu1 }
 0x2b3   :  { %11338 = vst [vmem:[#allocation37_spill] sm:$0xff] %v9733_v55  ;;  %v9735_v42 = vpop.f32.mrb[35].mxu1  ;;  %4106 = vadd.xlane.f32.xlu1 %v3915_v26  ;;  %v3919_v26 = vmul.f32 %v11344_v57, %v9691_v12  ;;  %v11345_v55 = vld [vmem:[#allocation43_spill] sm:$0xff] }
 0x2b4   :  { %11339 = vst [vmem:[#allocation28_spill] sm:$0xff] %v9735_v42  ;;  %v3928_v16 = vmul.f32 %v9691_v12, %v11345_v55  ;;  %v9754_v42 = vrot.slane %v3779_v51, %v9134_v48  ;;  %v4375_v51 = vadd.s32 4294967280, %v7650_v35 }
 0x2b5   :  { %4124 = vadd.xlane.f32.xlu0 %v3924_v28 }
 0x2b6   :  { %v3985_v37 = vpop.xlane.xlu0 %3984  ;;  %v9743_v13 = vpop.f32.mrb[36].mxu1  ;;  %v9769_v55 = vrot.slane %v9754_v42, %v9165_v17 }
 0x2b7   :  { %11342 = vst [vmem:[#allocation39_spill] sm:$0xff] %v9743_v13  ;;  %v9745_v30 = vpop.f32.mrb[37].mxu1  ;;  %4110 = vadd.xlane.f32.xlu1 %v3917_v58  ;;  %v11348_v58 = vld [vmem:[#allocation34_spill] sm:$0xff]  ;;  %v4368_v13 = vadd.s32 4294967288, %v7650_v35 }
 0x2b8   :  { %11343 = vst [vmem:[#allocation30_spill] sm:$0xff] %v9745_v30  ;;  %v11349_v30 = vld [vmem:[#allocation46_spill] sm:$0xff] }
 0x2b9   :  { %4128 = vadd.xlane.f32.xlu0 %v3926_v40  ;;  %v3921_v40 = vmul.f32 %v11348_v58, %v9691_v12  ;;  %v3930_v41 = vmul.f32 %v9691_v12, %v11349_v30 }
 0x2ba   :  { %v9749_v28 = vpop.xlane.xlu0 %3988  ;;  %v9756_v44 = vpop.f32.mrb[38].mxu1 }
 0x2bb   :  { %11346 = vst [vmem:[#allocation41_spill] sm:$0xff] %v9756_v44  ;;  %v9758_v5 = vpop.f32.mrb[39].mxu1  ;;  %4114 = vadd.xlane.f32.xlu1 %v3919_v26 }
 0x2bc   :  { %11347 = vst [vmem:[#allocation32_spill] sm:$0xff] %v9758_v5  ;;  %v11353_v5 = vld [vmem:[#allocation44_spill] sm:$0xff] }
 0x2bd   :  { %4132 = vadd.xlane.f32.xlu0 %v3928_v16  ;;  %v11352_v16 = vld [vmem:[#allocation36_spill] sm:$0xff]  ;;  %v9779_v9 = vsub.s32 %v4368_v13, %v11353_v5  ;;  %v9785_v30 = vsub.s32 %v7650_v35, %v11353_v5  ;;  %v9805_v2 = vsub.s32 %v4382_v62, %v11353_v5 }
 0x2be   :  { %v9763_v57 = vpop.xlane.xlu0 %3992  ;;  %v9772_v44 = vpop.f32.mrb[40].mxu1  ;;  %v3923_v58 = vmul.f32 %v11352_v16, %v9691_v12  ;;  %v11361_v62 = vld [vmem:[#allocation40_spill] sm:$0xff] }
 0x2bf   :  { %11350 = vst [vmem:[#allocation43_spill] sm:$0xff] %v9772_v44  ;;  %v9774_v26 = vpop.f32.mrb[41].mxu1  ;;  %4118 = vadd.xlane.f32.xlu1 %v3921_v40  ;;  %v3932_v44 = vmul.f32 %v9769_v55, %v11354_v22  ;;  %v9791_v40 = vsub.s32 %v4375_v51, %v11353_v5  ;;  %v4372_v0 = vrot.slane %v3983_v52, %v9779_v9 }
 0x2c0   :  { %11351 = vst [vmem:[#allocation34_spill] sm:$0xff] %v9774_v26  ;;  %v11357_v26 = vld [vmem:[#allocation38_spill] sm:$0xff]  ;;  %v3927_v33 = vmul.f32 %v11361_v62, %v9691_v12  ;;  %v9835_v62 = vsub.s32 %v4403_v23, %v11353_v5 }
 0x2c1   :  { %4136 = vadd.xlane.f32.xlu0 %v3930_v41  ;;  %v4389_v41 = vadd.s32 4294967264, %v7650_v35  ;;  %v3925_v8 = vmul.f32 %v11357_v26, %v9691_v12  ;;  %v4379_v26 = vrot.slane %v3985_v37, %v9791_v40 }
 0x2c2   :  { %v9781_v63 = vpop.xlane.xlu0 %3996  ;;  %v9794_v16 = vpop.f32.mrb[42].mxu1 }
 0x2c3   :  { %11355 = vst [vmem:[#allocation46_spill] sm:$0xff] %v9794_v16  ;;  %v9796_v13 = vpop.f32.mrb[43].mxu1  ;;  %4122 = vadd.xlane.f32.xlu1 %v3923_v58  ;;  %v4396_v16 = vadd.s32 4294967256, %v7650_v35 }
 0x2c4   :  { %11356 = vst [vmem:[#allocation36_spill] sm:$0xff] %v9796_v13  ;;  %v3981_v27 = vpop.xlane.xlu1 %3980  ;;  %v11358_v13 = vld [vmem:[#allocation50_spill] sm:$0xff] }
 0x2c5   :  { %4140 = vadd.xlane.f32.xlu0 %v3932_v44  ;;  %v4367_v22 = vrot.slane %v3981_v27, %v9785_v30  ;;  %v3934_v58 = vmul.f32 %v9769_v55, %v11358_v13  ;;  %v9812_v44 = vsub.s32 %v4389_v41, %v11353_v5 }
 0x2c6   :  { %v9802_v51 = vpop.xlane.xlu0 %4000  ;;  %v9815_v52 = vpop.f32.mrb[44].mxu1 }
 0x2c7   :  { %11359 = vst [vmem:[#allocation44_spill] sm:$0xff] %v9815_v52  ;;  %v4374_v27 = vsel %vm4373_vm1, %v4372_v0, %v4367_v22  ;;  %v9818_v43 = vpop.f32.mrb[45].mxu1  ;;  %4126 = vadd.xlane.f32.xlu1 %v3925_v8  ;;  %v9827_v52 = vsub.s32 %v4396_v16, %v11353_v5  ;;  %v4410_v0 = vadd.s32 4294967240, %v7650_v35  ;;  %v11362_v22 = vld [vmem:[#allocation52_spill] sm:$0xff]  ;;  %v11365_v16 = vld [vmem:[#allocation42_spill] sm:$0xff] }
 0x2c8   :  { %11360 = vst [vmem:[#allocation48_spill] sm:$0xff] %v9818_v43  ;;  %v3987_v13 = vpop.xlane.xlu1 %3986  ;;  %v4381_v37 = vsel %vm4380_vm2, %v4379_v26, %v4374_v27  ;;  %v3936_v8 = vmul.f32 %v9769_v55, %v11362_v22  ;;  %v4417_v26 = vadd.s32 4294967232, %v7650_v35  ;;  %v3929_v6 = vmul.f32 %v11365_v16, %v9691_v12 }
 0x2c9   :  { %4144 = vadd.xlane.f32.xlu0 %v3934_v58  ;;  %v4386_v41 = vrot.slane %v3987_v13, %v9805_v2  ;;  %v4393_v58 = vrot.slane %v9749_v28, %v9812_v44 }
 0x2ca   :  { %v9824_v25 = vpop.xlane.xlu0 %4004  ;;  %v9838_v27 = vpop.f32.mrb[46].mxu1 }
 0x2cb   :  { %11363 = vst [vmem:[#allocation38_spill] sm:$0xff] %v9838_v27  ;;  %v4388_v13 = vsel %vm4387_vm3, %v4386_v41, %v4381_v37  ;;  %v9841_v43 = vpop.f32.mrb[47].mxu1  ;;  %4130 = vadd.xlane.f32.xlu1 %v3927_v33  ;;  %v9850_v27 = vsub.s32 %v4410_v0, %v11353_v5  ;;  %v4424_v37 = vadd.s32 4294967224, %v7650_v35  ;;  %v3938_v33 = vmul.f32 %v9769_v55, %v9188_v60  ;;  %v11368_v0 = vld [vmem:[#allocation45_spill] sm:$0xff] }
 0x2cc   :  { %11364 = vst [vmem:[#allocation50_spill] sm:$0xff] %v9841_v43  ;;  %v3991_v22 = vpop.xlane.xlu1 %3990  ;;  %v4395_v28 = vsel %vm4394_vm4, %v4393_v58, %v4388_v13  ;;  %v4407_v41 = vrot.slane %v9763_v57, %v9835_v62  ;;  %v4431_v58 = vadd.s32 4294967216, %v7650_v35  ;;  %v3931_v43 = vmul.f32 %v11368_v0, %v9691_v12 }
 0x2cd   :  { %4148 = vadd.xlane.f32.xlu0 %v3936_v8  ;;  %v4400_v23 = vrot.slane %v3991_v22, %v9827_v52  ;;  %v9858_v8 = vsub.s32 %v4417_v26, %v11353_v5 }
 0x2ce   :  { %v9847_v4 = vpop.xlane.xlu0 %4008  ;;  %v9861_v13 = vpop.f32.mrb[48].mxu1 }
 0x2cf   :  { %11366 = vst [vmem:[#allocation40_spill] sm:$0xff] %v9861_v13  ;;  %v4402_v16 = vsel %vm4401_vm5, %v4400_v23, %v4395_v28  ;;  %v9864_v22 = vpop.f32.mrb[49].mxu1  ;;  %4134 = vadd.xlane.f32.xlu1 %v3929_v6  ;;  %v9873_v13 = vsub.s32 %v4424_v37, %v11353_v5  ;;  %v4438_v28 = vadd.s32 4294967208, %v7650_v35  ;;  %v3940_v6 = vmul.f32 %v9769_v55, %v9200_v47  ;;  %v11371_v37 = vld [vmem:[#allocation47_spill] sm:$0xff] }
 0x2d0   :  { %11367 = vst [vmem:[#allocation52_spill] sm:$0xff] %v9864_v22  ;;  %v3995_v60 = vpop.xlane.xlu1 %3994  ;;  %v4409_v57 = vsel %vm4408_vm6, %v4407_v41, %v4402_v16  ;;  %v4421_v12 = vrot.slane %v9781_v63, %v9858_v8  ;;  %v9881_v23 = vsub.s32 %v4431_v58, %v11353_v5 }
 0x2d1   :  { %4152 = vadd.xlane.f32.xlu0 %v3938_v33  ;;  %v4414_v26 = vrot.slane %v3995_v60, %v9850_v27  ;;  %v4445_v33 = vadd.s32 4294967200, %v7650_v35  ;;  %v3933_v60 = vmul.f32 %v11371_v37, %v9769_v55 }
 0x2d2   :  { %v9870_v38 = vpop.xlane.xlu0 %4012  ;;  %v9884_v41 = vpop.f32.mrb[50].mxu1 }
 0x2d3   :  { %11369 = vst [vmem:[#allocation42_spill] sm:$0xff] %v9884_v41  ;;  %v4416_v16 = vsel %vm4415_vm7, %v4414_v26, %v4409_v57  ;;  %v9887_v0 = vpop.f32.mrb[51].mxu1  ;;  %4138 = vadd.xlane.f32.xlu1 %v3931_v43  ;;  %v9896_v41 = vsub.s32 %v4438_v28, %v11353_v5  ;;  %v4452_v57 = vadd.s32 4294967192, %v7650_v35  ;;  %v3942_v43 = vmul.f32 %v9769_v55, %v9212_v1  ;;  %v11374_v28 = vld [vmem:[#allocation49_spill] sm:$0xff] }
 0x2d4   :  { %11370 = vst [vmem:[#allocation45_spill] sm:$0xff] %v9887_v0  ;;  %v3999_v47 = vpop.xlane.xlu1 %3998  ;;  %v4423_v63 = vsel %vm4422_vm8, %v4421_v12, %v4416_v16  ;;  %v4435_v26 = vrot.slane %v9802_v51, %v9881_v23  ;;  %v4459_v12 = vadd.s32 4294967184, %v7650_v35  ;;  %v3935_v0 = vmul.f32 %v11374_v28, %v9769_v55 }
 0x2d5   :  { %4156 = vadd.xlane.f32.xlu0 %v3940_v6  ;;  %v4428_v58 = vrot.slane %v3999_v47, %v9873_v13  ;;  %v9904_v6 = vsub.s32 %v4445_v33, %v11353_v5 }
 0x2d6   :  { %v9893_v22 = vpop.xlane.xlu0 %4016  ;;  %v9907_v16 = vpop.f32.mrb[52].mxu1 }
 0x2d7   :  { %11372 = vst [vmem:[#allocation47_spill] sm:$0xff] %v9907_v16  ;;  %v4430_v37 = vsel %vm4429_vm9, %v4428_v58, %v4423_v63  ;;  %v9910_v47 = vpop.f32.mrb[53].mxu1  ;;  %4142 = vadd.xlane.f32.xlu1 %v3933_v60  ;;  %v9919_v16 = vsub.s32 %v4452_v57, %v11353_v5  ;;  %v4466_v63 = vadd.s32 4294967176, %v7650_v35  ;;  %v3944_v60 = vmul.f32 %v9769_v55, %v9224_v21 }
 0x2d8   :  { %11373 = vst [vmem:[#allocation79_spill] sm:$0xff] %v9910_v47  ;;  %v4003_v1 = vpop.xlane.xlu1 %4002  ;;  %v4437_v51 = vsel %vm4436_vm10, %v4435_v26, %v4430_v37  ;;  %v3809_v58 = vcombine.high %v9679_v59, %v9679_v59  ;;  %v9929_v26 = vsub.s32 %v4459_v12, %v11353_v5  ;;  %v11376_v59 = vld [vmem:[#allocation51_spill] sm:$0xff] }
 0x2d9   :  { %4160 = vadd.xlane.f32.xlu0 %v3942_v43  ;;  %v4442_v33 = vrot.slane %v4003_v1, %v9896_v41  ;;  %v4449_v43 = vrot.slane %v9824_v25, %v9904_v6  ;;  %v3937_v1 = vmul.f32 %v11376_v59, %v9769_v55  ;;  %v9941_v12 = vsub.s32 %v4466_v63, %v11353_v5 }
 0x2da   :  { %v9916_v20 = vpop.xlane.xlu0 %4020  ;;  %v9931_v37 = vpop.f32.mrb[54].mxu1 }
 0x2db   :  { %11375 = vst [vmem:[#allocation49_spill] sm:$0xff] %v9931_v37  ;;  %v4444_v28 = vsel %vm4443_vm11, %v4442_v33, %v4437_v51  ;;  %v9934_v57 = vpop.f32.mrb[55].mxu1  ;;  %4146 = vadd.xlane.f32.xlu1 %v3935_v0  ;;  %v3946_v51 = vmul.f32 %v9769_v55, %v9238_v7  ;;  %v9946_v0 = vrot.slane %v3809_v58, %v9165_v17  ;;  %v11378_v7 = vld [vmem:[#allocation53_spill] sm:$0xff] }
 0x2dc   :  { %v4007_v35 = vpop.xlane.xlu1 %4006  ;;  %v4451_v21 = vsel %vm11214_vm12, %v4449_v43, %v4444_v28  ;;  %v4463_v33 = vrot.slane %v9847_v4, %v9929_v26 }
 0x2dd   :  { %4164 = vadd.xlane.f32.xlu0 %v3944_v60  ;;  %v4456_v25 = vrot.slane %v4007_v35, %v9919_v16  ;;  %v3939_v35 = vmul.f32 %v11378_v7, %v9769_v55  ;;  %v3948_v4 = vmul.f32 %v9946_v0, %v9252_v18  ;;  %v3950_v18 = vmul.f32 %v9946_v0, %v9270_v53 }
 0x2de   :  { %v4025_v47 = vpop.xlane.xlu0 %4024  ;;  %v9950_v60 = vpop.f32.mrb[56].mxu1 }
 0x2df   :  { %11377 = vst [vmem:[#allocation51_spill] sm:$0xff] %v9950_v60  ;;  %v4458_v43 = vsel %vm4457_vm13, %v4456_v25, %v4451_v21  ;;  %v9953_v28 = vpop.f32.mrb[57].mxu1  ;;  %4150 = vadd.xlane.f32.xlu1 %v3937_v1 }
 0x2e0   :  { %v4011_v5 = vpop.xlane.xlu1 %4010  ;;  %v4465_v63 = vsel %vm4464_vm14, %v4463_v33, %v4458_v43  ;;  %v4476_v43 = vrot.slane %v9870_v38, %v9785_v30 }
 0x2e1   :  { %4168 = vadd.xlane.f32.xlu0 %v3946_v51  ;;  %v4470_v58 = vrot.slane %v4011_v5, %v9941_v12  ;;  %v11380_v51 = vld [vmem:[#allocation54_spill] sm:$0xff] }
 0x2e2   :  { %v4029_v59 = vpop.xlane.xlu0 %4028  ;;  %v9961_v60 = vpop.f32.mrb[58].mxu1  ;;  %v3941_v33 = vmul.f32 %v11380_v51, %v9769_v55 }
 0x2e3   :  { %11379 = vst [vmem:[#allocation53_spill] sm:$0xff] %v9961_v60  ;;  %v9964_v21 = vsel %vm4471_vm15, %v4470_v58, %v4465_v63  ;;  %v9966_v1 = vpop.f32.mrb[59].mxu1  ;;  %4154 = vadd.xlane.f32.xlu1 %v3939_v35  ;;  %v4485_v63 = vrot.slane %v9893_v22, %v9791_v40  ;;  %v3952_v22 = vmul.f32 %v9946_v0, %v9289_v61 }
 0x2e4   :  { %v4015_v25 = vpop.xlane.xlu1 %4014 }
 0x2e5   :  { %4172 = vadd.xlane.f32.xlu0 %v3948_v4  ;;  %v4480_v5 = vrot.slane %v4015_v25, %v9779_v9  ;;  %v11383_v25 = vld [vmem:[#allocation55_spill] sm:$0xff] }
 0x2e6   :  { %v4033_v7 = vpop.xlane.xlu0 %4032  ;;  %v9977_v58 = vpop.f32.mrb[60].mxu1  ;;  %v3943_v60 = vmul.f32 %v11383_v25, %v9769_v55 }
 0x2e7   :  { %11381 = vst [vmem:[#allocation54_spill] sm:$0xff] %v9977_v58  ;;  %v4481_v35 = vsel %vm4373_vm1, %v4480_v5, %v4476_v43  ;;  %v9980_v4 = vpop.f32.mrb[61].mxu1  ;;  %4158 = vadd.xlane.f32.xlu1 %v3941_v33  ;;  %v4495_v58 = vrot.slane %v9916_v20, %v9812_v44  ;;  %v3954_v20 = vmul.f32 %v9946_v0, %v9310_v15 }
 0x2e8   :  { %11382 = vst [vmem:[#allocation80_spill] sm:$0xff] %v9980_v4  ;;  %v4019_v51 = vpop.xlane.xlu1 %4018  ;;  %v4486_v38 = vsel %vm4380_vm2, %v4485_v63, %v4481_v35  ;;  %v11385_v35 = vld [vmem:[#allocation56_spill] sm:$0xff]  ;;  %v3956_v15 = vmul.f32 %v9946_v0, %v9327_v11  ;;  %v3958_v11 = vmul.f32 %v9946_v0, %v9344_v45  ;;  %v3960_v45 = vmul.f32 %v9946_v0, %v9361_v54 }
 0x2e9   :  { %4176 = vadd.xlane.f32.xlu0 %v3950_v18  ;;  %v4490_v37 = vrot.slane %v4019_v51, %v9805_v2  ;;  %v3945_v51 = vmul.f32 %v11385_v35, %v9769_v55 }
 0x2ea   :  { %v4037_v53 = vpop.xlane.xlu0 %4036  ;;  %v9990_v43 = vpop.f32.mrb[62].mxu1 }
 0x2eb   :  { %11384 = vst [vmem:[#allocation55_spill] sm:$0xff] %v9990_v43  ;;  %v4491_v33 = vsel %vm4387_vm3, %v4490_v37, %v4486_v38  ;;  %v9993_v5 = vpop.f32.mrb[63].mxu1  ;;  %4162 = vadd.xlane.f32.xlu1 %v3943_v60  ;;  %v4505_v43 = vrot.slane %v4025_v47, %v9835_v62  ;;  %v4515_v47 = vrot.slane %v4029_v59, %v9858_v8 }
 0x2ec   :  { %v4023_v18 = vpop.xlane.xlu1 %4022  ;;  %v4496_v63 = vsel %vm4394_vm4, %v4495_v58, %v4491_v33  ;;  %v4525_v59 = vrot.slane %v4033_v7, %v9881_v23  ;;  %v3811_v7 = vcombine.high %v9754_v42, %v9754_v42  ;;  %v3962_v42 = vmul.f32 %v9946_v0, %v9378_v32 }
 0x2ed   :  { %4180 = vadd.xlane.f32.xlu0 %v3952_v22  ;;  %v4500_v25 = vrot.slane %v4023_v18, %v9827_v52  ;;  %v3947_v22 = vmul.f32 %v9232_v31, %v9769_v55  ;;  %v11386_v55 = vld [vmem:[#allocation57_spill] sm:$0xff] }
 0x2ee   :  { %v4041_v61 = vpop.xlane.xlu0 %4040  ;;  %v10002_v4 = vpop.f32.mrb[64].mxu1 }
 0x2ef   :  { %v4501_v37 = vsel %vm4401_vm5, %v4500_v25, %v4496_v63  ;;  %v10005_v60 = vpop.f32.mrb[65].mxu1  ;;  %4166 = vadd.xlane.f32.xlu1 %v3945_v51  ;;  %v3949_v25 = vmul.f32 %v11386_v55, %v9946_v0 }
 0x2f0   :  { %v4027_v58 = vpop.xlane.xlu1 %4026  ;;  %v4506_v38 = vsel %vm4408_vm6, %v4505_v43, %v4501_v37 }
 0x2f1   :  { %4184 = vadd.xlane.f32.xlu0 %v3954_v20  ;;  %v4510_v33 = vrot.slane %v4027_v58, %v9850_v27 }
 0x2f2   :  { %v10011_v18 = vpop.xlane.xlu0 %4044  ;;  %v10016_v63 = vpop.f32.mrb[66].mxu1 }
 0x2f3   :  { %v4511_v35 = vsel %vm4415_vm7, %v4510_v33, %v4506_v38  ;;  %v10019_v51 = vpop.f32.mrb[67].mxu1  ;;  %4170 = vadd.xlane.f32.xlu1 %v3947_v22 }
 0x2f4   :  { %v4031_v43 = vpop.xlane.xlu1 %4030  ;;  %v4516_v31 = vsel %vm4422_vm8, %v4515_v47, %v4511_v35  ;;  %v3951_v47 = vmul.f32 %v9264_v36, %v9946_v0 }
 0x2f5   :  { %4188 = vadd.xlane.f32.xlu0 %v3956_v15  ;;  %v4520_v20 = vrot.slane %v4031_v43, %v9873_v13 }
 0x2f6   :  { %v4049_v37 = vpop.xlane.xlu0 %4048  ;;  %v10028_v58 = vpop.f32.mrb[68].mxu1 }
 0x2f7   :  { %v4521_v38 = vsel %vm4429_vm9, %v4520_v20, %v4516_v31  ;;  %v10031_v22 = vpop.f32.mrb[69].mxu1  ;;  %4174 = vadd.xlane.f32.xlu1 %v3949_v25  ;;  %v4535_v31 = vrot.slane %v4037_v53, %v9904_v6  ;;  %v10054_v53 = vrot.slane %v3811_v7, %v9165_v17 }
 0x2f8   :  { %v4035_v33 = vpop.xlane.xlu1 %4034  ;;  %v4526_v15 = vsel %vm4436_vm10, %v4525_v59, %v4521_v38  ;;  %v11387_v59 = vld [vmem:[#allocation58_spill] sm:$0xff] }
 0x2f9   :  { %4192 = vadd.xlane.f32.xlu0 %v3958_v11  ;;  %v4530_v35 = vrot.slane %v4035_v33, %v9896_v41  ;;  %v3953_v38 = vmul.f32 %v11387_v59, %v9946_v0 }
 0x2fa   :  { %v4053_v43 = vpop.xlane.xlu0 %4052  ;;  %v10042_v55 = vpop.f32.mrb[70].mxu1 }
 0x2fb   :  { %v4531_v25 = vsel %vm4443_vm11, %v4530_v35, %v4526_v15  ;;  %v10045_v20 = vpop.f32.mrb[71].mxu1  ;;  %4178 = vadd.xlane.f32.xlu1 %v3951_v47  ;;  %v4545_v15 = vrot.slane %v4041_v61, %v9929_v26  ;;  %v3964_v61 = vmul.f32 %v10054_v53, %v9395_v10 }
 0x2fc   :  { %v4039_v36 = vpop.xlane.xlu1 %4038  ;;  %v4536_v11 = vsel %vm11214_vm12, %v4535_v31, %v4531_v25 }
 0x2fd   :  { %4196 = vadd.xlane.f32.xlu0 %v3960_v45  ;;  %v4540_v54 = vrot.slane %v4039_v36, %v9919_v16  ;;  %v11389_v36 = vld [vmem:[#allocation59_spill] sm:$0xff] }
 0x2fe   :  { %v4057_v33 = vpop.xlane.xlu0 %4056  ;;  %v10057_v35 = vpop.f32.mrb[72].mxu1  ;;  %v3955_v59 = vmul.f32 %v11389_v36, %v9946_v0  ;;  %v4564_v36 = vrot.slane %v4049_v37, %v9791_v40  ;;  %v4574_v37 = vrot.slane %v4053_v43, %v9812_v44 }
 0x2ff   :  { %11388 = vst [vmem:[#allocation56_spill] sm:$0xff] %v10057_v35  ;;  %v4541_v47 = vsel %vm4457_vm13, %v4540_v54, %v4536_v11  ;;  %v10060_v45 = vpop.f32.mrb[73].mxu1  ;;  %4182 = vadd.xlane.f32.xlu1 %v3953_v38  ;;  %v4584_v43 = vrot.slane %v4057_v33, %v9835_v62 }
 0x300   :  { %v4043_v31 = vpop.xlane.xlu1 %4042  ;;  %v4546_v25 = vsel %vm4464_vm14, %v4545_v15, %v4541_v47  ;;  %v3957_v15 = vmul.f32 %v9321_v39, %v9946_v0  ;;  %v4555_v47 = vrot.slane %v10011_v18, %v9785_v30  ;;  %v3959_v18 = vmul.f32 %v9338_v24, %v9946_v0 }
 0x301   :  { %4200 = vadd.xlane.f32.xlu0 %v3962_v42  ;;  %v4550_v32 = vrot.slane %v4043_v31, %v9941_v12 }
 0x302   :  { %v4061_v7 = vpop.xlane.xlu0 %4060  ;;  %v10068_v35 = vpop.f32.mrb[74].mxu1 }
 0x303   :  { %11390 = vst [vmem:[#allocation57_spill] sm:$0xff] %v10068_v35  ;;  %v4551_v11 = vsel %vm4471_vm15, %v4550_v32, %v4546_v25  ;;  %v10071_v54 = vpop.f32.mrb[75].mxu1  ;;  %4186 = vadd.xlane.f32.xlu1 %v3955_v59  ;;  %v3966_v25 = vmul.f32 %v10054_v53, %v9412_v50  ;;  %v3968_v50 = vmul.f32 %v10054_v53, %v9431_v34 }
 0x304   :  { %v10075_v38 = vsel %vm11205_vm0, %v4551_v11, %v9964_v21  ;;  %v4047_v42 = vpop.xlane.xlu1 %4046  ;;  %v3970_v34 = vmul.f32 %v10054_v53, %v9451_v49  ;;  %v3972_v49 = vmul.f32 %v10054_v53, %v9468_v14  ;;  %v4594_v33 = vrot.slane %v4061_v7, %v9858_v8 }
 0x305   :  { %4204 = vadd.xlane.f32.xlu0 %v3964_v61  ;;  %v4559_v10 = vrot.slane %v4047_v42, %v9779_v9  ;;  %vm11206_vm0 = vcmask 1042434  }
 0x306   :  { %v4065_v31 = vpop.xlane.xlu0 %4064  ;;  %v10085_v59 = vpop.f32.mrb[76].mxu1 }
 0x307   :  { %11391 = vst [vmem:[#allocation58_spill] sm:$0xff] %v10085_v59  ;;  %v4560_v21 = vsel %vm4373_vm1, %v4559_v10, %v4555_v47  ;;  %v10088_v32 = vpop.f32.mrb[77].mxu1  ;;  %4190 = vadd.xlane.f32.xlu1 %v3957_v15 }
 0x308   :  { %v4051_v39 = vpop.xlane.xlu1 %4050  ;;  %v4565_v61 = vsel %vm4380_vm2, %v4564_v36, %v4560_v21  ;;  %v3961_v36 = vmul.f32 %v9355_v19, %v9946_v0 }
 0x309   :  { %4208 = vadd.xlane.f32.xlu0 %v3966_v25  ;;  %v4569_v11 = vrot.slane %v4051_v39, %v9805_v2 }
 0x30a   :  { %v10094_v42 = vpop.xlane.xlu0 %4068  ;;  %v10099_v47 = vpop.f32.mrb[78].mxu1 }
 0x30b   :  { %11392 = vst [vmem:[#allocation59_spill] sm:$0xff] %v10099_v47  ;;  %v4570_v15 = vsel %vm4387_vm3, %v4569_v11, %v4565_v61  ;;  %v10102_v10 = vpop.f32.mrb[79].mxu1  ;;  %4194 = vadd.xlane.f32.xlu1 %v3959_v18 }
 0x30c   :  { %v4055_v25 = vpop.xlane.xlu1 %4054  ;;  %v4575_v24 = vsel %vm4394_vm4, %v4574_v37, %v4570_v15  ;;  %v3963_v37 = vmul.f32 %v9372_v29, %v9946_v0 }
 0x30d   :  { %4212 = vadd.xlane.f32.xlu0 %v3968_v50  ;;  %v4579_v21 = vrot.slane %v4055_v25, %v9827_v52 }
 0x30e   :  { %v10108_v39 = vpop.xlane.xlu0 %4072  ;;  %v10113_v61 = vpop.f32.mrb[80].mxu1 }
 0x30f   :  { %11393 = vst [vmem:[#allocation81_spill] sm:$0xff] %v10113_v61  ;;  %v4580_v18 = vsel %vm4401_vm5, %v4579_v21, %v4575_v24  ;;  %v10116_v11 = vpop.f32.mrb[81].mxu1  ;;  %4198 = vadd.xlane.f32.xlu1 %v3961_v36 }
 0x310   :  { %v4059_v50 = vpop.xlane.xlu1 %4058  ;;  %v4585_v19 = vsel %vm4408_vm6, %v4584_v43, %v4580_v18  ;;  %v3965_v18 = vmul.f32 %v9389_v46, %v10054_v53 }
 0x311   :  { %4216 = vadd.xlane.f32.xlu0 %v3970_v34  ;;  %v4589_v15 = vrot.slane %v4059_v50, %v9850_v27  ;;  %v11396_v34 = vld [vmem:[#allocation8_spill] sm:$0xff]  ;;  %v3974_v50 = vmul.f32 %v10054_v53, %v9485_v3 }
 0x312   :  { %v10122_v25 = vpop.xlane.xlu0 %4076  ;;  %v10127_v24 = vpop.f32.mrb[82].mxu1  ;;  %v5043_v43 = vcombine.high %v11396_v34, %v11396_v34 }
 0x313   :  { %11394 = vst [vmem:[#allocation82_spill] sm:$0xff] %v10127_v24  ;;  %v4590_v36 = vsel %vm4415_vm7, %v4589_v15, %v4585_v19  ;;  %v10130_v21 = vpop.f32.mrb[83].mxu1  ;;  %4202 = vadd.xlane.f32.xlu1 %v3963_v37  ;;  %v10144_v19 = vrot.slane %v11396_v34, %v9134_v48  ;;  %v4604_v37 = vrot.slane %v4065_v31, %v9881_v23  ;;  %v11399_v24 = vld [vmem:[#allocation65_spill] sm:$0xff] }
 0x314   :  { %11395 = vst [vmem:[#allocation83_spill] sm:$0xff] %v10130_v21  ;;  %v4063_v29 = vpop.xlane.xlu1 %4062  ;;  %v4595_v0 = vsel %vm4422_vm8, %v4594_v33, %v4590_v36  ;;  %v10153_v46 = vrot.slane %v5043_v43, %v9134_v48  ;;  %v3967_v34 = vmul.f32 %v9406_v56, %v10054_v53  ;;  %v4614_v43 = vrot.slane %v10094_v42, %v9904_v6  ;;  %v11448_v21 = vld [vmem:[#allocation14_spill] sm:$0xff] }
 0x315   :  { %4220 = vadd.xlane.f32.xlu0 %v3972_v49  ;;  %v4599_v14 = vrot.slane %v4063_v29, %v9873_v13 }
 0x316   :  { %v10138_v7 = vpop.xlane.xlu0 %4080  ;;  %v10147_v15 = vpop.f32.mrb[84].mxu1 }
 0x317   :  { %11397 = vst [vmem:[#allocation8_spill] sm:$0xff] %v10147_v15  ;;  %v4600_v49 = vsel %vm4429_vm9, %v4599_v14, %v4595_v0  ;;  %v10150_v33 = vpop.f32.mrb[85].mxu1  ;;  %4206 = vadd.xlane.f32.xlu1 %v3965_v18  ;;  %v3976_v0 = vmul.f32 %v10054_v53, %v11399_v24  ;;  %v10165_v18 = vrot.slane %v10144_v19, %v9134_v48 }
 0x318   :  { %11398 = vst [vmem:[#allocation84_spill] sm:$0xff] %v10150_v33  ;;  %v4067_v36 = vpop.xlane.xlu1 %4066  ;;  %v4605_v3 = vsel %vm4436_vm10, %v4604_v37, %v4600_v49  ;;  %v5059_v14 = vcombine.high %v10153_v46, %v10153_v46 }
 0x319   :  { %4224 = vadd.xlane.f32.xlu0 %v3974_v50  ;;  %v4609_v29 = vrot.slane %v4067_v36, %v9896_v41  ;;  %v11402_v36 = vld [vmem:[#allocation60_spill] sm:$0xff]  ;;  %v10184_v61 = vrot.slane %v10165_v18, %v9165_v17 }
 0x31a   :  { %v10159_v31 = vpop.xlane.xlu0 %4084  ;;  %v10171_v50 = vpop.f32.mrb[86].mxu1  ;;  %v3969_v33 = vmul.f32 %v11402_v36, %v10054_v53 }
 0x31b   :  { %11400 = vst [vmem:[#allocation65_spill] sm:$0xff] %v10171_v50  ;;  %v4610_v56 = vsel %vm4443_vm11, %v4609_v29, %v4605_v3  ;;  %v10174_v37 = vpop.f32.mrb[87].mxu1  ;;  %4210 = vadd.xlane.f32.xlu1 %v3967_v34  ;;  %v11403_v50 = vld [vmem:[#allocation69_spill] sm:$0xff]  ;;  %v4624_v34 = vrot.slane %v10108_v39, %v9929_v26  ;;  %v10191_v29 = vrot.slane %v5059_v14, %v9134_v48  ;;  %v11407_v14 = vld [vmem:[#allocation68_spill] sm:$0xff] }
 0x31c   :  { %11401 = vst [vmem:[#allocation85_spill] sm:$0xff] %v10174_v37  ;;  %v4071_v49 = vpop.xlane.xlu1 %4070  ;;  %v4615_v24 = vsel %vm11214_vm12, %v4614_v43, %v4610_v56  ;;  %v3978_v3 = vmul.f32 %v10054_v53, %v11403_v50  ;;  %v11406_v37 = vld [vmem:[#allocation61_spill] sm:$0xff] }
 0x31d   :  { %4228 = vadd.xlane.f32.xlu0 %v3976_v0  ;;  %v4619_v15 = vrot.slane %v4071_v49, %v9919_v16  ;;  %v3971_v50 = vmul.f32 %v11406_v37, %v10054_v53 }
 0x31e   :  { %v10180_v42 = vpop.xlane.xlu0 %4088  ;;  %v10193_v0 = vpop.f32.mrb[88].mxu1 }
 0x31f   :  { %11404 = vst [vmem:[#allocation60_spill] sm:$0xff] %v10193_v0  ;;  %v4620_v43 = vsel %vm4457_vm13, %v4619_v15, %v4615_v24  ;;  %v10196_v56 = vpop.f32.mrb[89].mxu1  ;;  %4214 = vadd.xlane.f32.xlu1 %v3969_v33  ;;  %v5132_v0 = vmul.f32 %v10184_v61, %v11407_v14  ;;  %v10208_v15 = vrot.slane %v10191_v29, %v9165_v17 }
 0x320   :  { %11405 = vst [vmem:[#allocation69_spill] sm:$0xff] %v10196_v56  ;;  %v4075_v49 = vpop.xlane.xlu1 %4074  ;;  %v4625_v36 = vsel %vm4464_vm14, %v4624_v34, %v4620_v43  ;;  %v4634_v56 = vrot.slane %v10122_v25, %v9785_v30 }
 0x321   :  { %4232 = vadd.xlane.f32.xlu0 %v3978_v3  ;;  %v4629_v39 = vrot.slane %v4075_v49, %v9941_v12  ;;  %v11410_v49 = vld [vmem:[#allocation62_spill] sm:$0xff] }
 0x322   :  { %v10202_v47 = vpop.xlane.xlu0 %4092  ;;  %v10210_v33 = vpop.f32.mrb[90].mxu1  ;;  %v3973_v14 = vmul.f32 %v11410_v49, %v10054_v53 }
 0x323   :  { %11408 = vst [vmem:[#allocation61_spill] sm:$0xff] %v10210_v33  ;;  %v4630_v24 = vsel %vm4471_vm15, %v4629_v39, %v4625_v36  ;;  %v3573_v3 = vpop.f32.mrb[91].mxu1  ;;  %4218 = vadd.xlane.f32.xlu1 %v3971_v50  ;;  %v11411_v50 = vld [vmem:[#allocation71_spill] sm:$0xff] }
 0x324   :  { %v10215_v37 = vsel %vm11206_vm0, %v4630_v24, %v10075_v38  ;;  %v10218_v34 = vmul.f32 %v10208_v15, %v3573_v3  ;;  %v4079_v43 = vpop.xlane.xlu1 %4078  ;;  %v5134_v39 = vmul.f32 %v10184_v61, %v11411_v50  ;;  %v4643_v38 = vrot.slane %v10138_v7, %v9791_v40  ;;  %v11414_v50 = vld [vmem:[#allocation63_spill] sm:$0xff] }
 0x325   :  { %5260 = vadd.xlane.f32.xlu0 %v5132_v0  ;;  %v4638_v33 = vrot.slane %v4079_v43, %v9779_v9  ;;  %v3975_v59 = vmul.f32 %v11414_v50, %v10054_v53  ;;  %vm11207_vm0 = vcmask 1043459  }
 0x326   :  { %11409 = vst [vmem:[#allocation68_spill] sm:$0xff] %v10218_v34  ;;  %v10225_v36 = vpop.xlane.xlu0 %4096  ;;  %v7209_v24 = vpop.f32.mrb[92].mxu1 }
 0x327   :  { %v4639_v0 = vsel %vm4373_vm1, %v4638_v33, %v4634_v56  ;;  %v10233_v3 = vmul.f32 %v7209_v24, %v10208_v15  ;;  %v3583_v49 = vpop.f32.mrb[93].mxu1  ;;  %4222 = vadd.xlane.f32.xlu1 %v3973_v14  ;;  %v11415_v56 = vld [vmem:[#allocation73_spill] sm:$0xff]  ;;  %v4653_v14 = vrot.slane %v10159_v31, %v9812_v44 }
 0x328   :  { %v10236_v25 = vmul.f32 %v10208_v15, %v3583_v49  ;;  %v4083_v43 = vpop.xlane.xlu1 %4082  ;;  %v4644_v34 = vsel %vm4380_vm2, %v4643_v38, %v4639_v0  ;;  %v5136_v33 = vmul.f32 %v10184_v61, %v11415_v56  ;;  %v11418_v56 = vld [vmem:[#allocation64_spill] sm:$0xff] }
 0x329   :  { %11412 = vst [vmem:[#allocation62_spill] sm:$0xff] %v10233_v3  ;;  %5264 = vadd.xlane.f32.xlu0 %v5134_v39  ;;  %v4648_v7 = vrot.slane %v4083_v43, %v9805_v2 }
 0x32a   :  { %11413 = vst [vmem:[#allocation71_spill] sm:$0xff] %v10236_v25  ;;  %v10242_v35 = vpop.xlane.xlu0 %4100  ;;  %v7212_v24 = vpop.f32.mrb[94].mxu1  ;;  %v3977_v25 = vmul.f32 %v11418_v56, %v10054_v53 }
 0x32b   :  { %v4649_v49 = vsel %vm4387_vm3, %v4648_v7, %v4644_v34  ;;  %v10250_v39 = vmul.f32 %v7212_v24, %v10208_v15  ;;  %v3593_v38 = vpop.f32.mrb[95].mxu1  ;;  %4226 = vadd.xlane.f32.xlu1 %v3975_v59  ;;  %v11419_v34 = vld [vmem:[#allocation75_spill] sm:$0xff]  ;;  %v4663_v59 = vrot.slane %v10180_v42, %v9835_v62 }
 0x32c   :  { %v10253_v0 = vmul.f32 %v10208_v15, %v3593_v38  ;;  %v4087_v43 = vpop.xlane.xlu1 %4086  ;;  %v4654_v50 = vsel %vm4394_vm4, %v4653_v14, %v4649_v49  ;;  %v5138_v7 = vmul.f32 %v10184_v61, %v11419_v34 }
 0x32d   :  { %11416 = vst [vmem:[#allocation63_spill] sm:$0xff] %v10250_v39  ;;  %5268 = vadd.xlane.f32.xlu0 %v5136_v33  ;;  %v4658_v31 = vrot.slane %v4087_v43, %v9827_v52  ;;  %v11422_v43 = vld [vmem:[#allocation67_spill] sm:$0xff]  ;;  %v11423_v39 = vld [vmem:[#allocation77_spill] sm:$0xff] }
 0x32e   :  { %11417 = vst [vmem:[#allocation73_spill] sm:$0xff] %v10253_v0  ;;  %v10259_v3 = vpop.xlane.xlu0 %4104  ;;  %v10265_v24 = vpop.f32.mrb[96].mxu1  ;;  %v3979_v56 = vmul.f32 %v11422_v43, %v10054_v53  ;;  %v5140_v42 = vmul.f32 %v10184_v61, %v11423_v39 }
 0x32f   :  { %11420 = vst [vmem:[#allocation64_spill] sm:$0xff] %v10265_v24  ;;  %v4659_v33 = vsel %vm4401_vm5, %v4658_v31, %v4654_v50  ;;  %v10268_v38 = vpop.f32.mrb[97].mxu1  ;;  %4230 = vadd.xlane.f32.xlu1 %v3977_v25  ;;  %v4673_v50 = vrot.slane %v10202_v47, %v9858_v8 }
 0x330   :  { %11421 = vst [vmem:[#allocation75_spill] sm:$0xff] %v10268_v38  ;;  %v4091_v14 = vpop.xlane.xlu1 %4090  ;;  %v4664_v49 = vsel %vm4408_vm6, %v4663_v59, %v4659_v33  ;;  %v11426_v33 = vld [vmem:[#allocation66_spill] sm:$0xff] }
 0x331   :  { %5272 = vadd.xlane.f32.xlu0 %v5138_v7  ;;  %v4668_v0 = vrot.slane %v4091_v14, %v9850_v27  ;;  %v5133_v14 = vmul.f32 %v11426_v33, %v10184_v61  ;;  %v11427_v38 = vld [vmem:[#allocation78_spill] sm:$0xff] }
 0x332   :  { %v10274_v34 = vpop.xlane.xlu0 %4108  ;;  %v10280_v31 = vpop.f32.mrb[98].mxu1  ;;  %v5142_v47 = vmul.f32 %v10184_v61, %v11427_v38  ;;  %v11430_v33 = vld [vmem:[#allocation70_spill] sm:$0xff] }
 0x333   :  { %11424 = vst [vmem:[#allocation67_spill] sm:$0xff] %v10280_v31  ;;  %v4669_v25 = vsel %vm4415_vm7, %v4668_v0, %v4664_v49  ;;  %v10283_v7 = vpop.f32.mrb[99].mxu1  ;;  %4234 = vadd.xlane.f32.xlu1 %v3979_v56  ;;  %v5058_v0 = vcombine.high %v10144_v19, %v10144_v19  ;;  %v4683_v49 = vrot.slane %v10225_v36, %v9881_v23 }
 0x334   :  { %11425 = vst [vmem:[#allocation77_spill] sm:$0xff] %v10283_v7  ;;  %v4095_v59 = vpop.xlane.xlu1 %4094  ;;  %v4674_v53 = vsel %vm4422_vm8, %v4673_v50, %v4669_v25  ;;  %v5135_v38 = vmul.f32 %v11430_v33, %v10184_v61  ;;  %v11431_v7 = vld [vmem:[#allocation17_spill] sm:$0xff] }
 0x335   :  { %5276 = vadd.xlane.f32.xlu0 %v5140_v42  ;;  %v4678_v43 = vrot.slane %v4095_v59, %v9873_v13  ;;  %v5144_v36 = vmul.f32 %v10184_v61, %v11431_v7 }
 0x336   :  { %v10289_v39 = vpop.xlane.xlu0 %4112  ;;  %v10297_v56 = vpop.f32.mrb[100].mxu1 }
 0x337   :  { %11428 = vst [vmem:[#allocation66_spill] sm:$0xff] %v10297_v56  ;;  %v4679_v42 = vsel %vm4429_vm9, %v4678_v43, %v4674_v53  ;;  %v10300_v50 = vpop.f32.mrb[101].mxu1  ;;  %5262 = vadd.xlane.f32.xlu1 %v5133_v14  ;;  %v10311_v56 = vrot.slane %v5058_v0, %v9134_v48  ;;  %v4693_v53 = vrot.slane %v10242_v35, %v9904_v6  ;;  %v11434_v0 = vld [vmem:[#allocation72_spill] sm:$0xff] }
 0x338   :  { %11429 = vst [vmem:[#allocation78_spill] sm:$0xff] %v10300_v50  ;;  %v4099_v25 = vpop.xlane.xlu1 %4098  ;;  %v4684_v59 = vsel %vm4436_vm10, %v4683_v49, %v4679_v42  ;;  %v10322_v49 = vrot.slane %v10153_v46, %v9134_v48  ;;  %v4703_v48 = vrot.slane %v10259_v3, %v9929_v26  ;;  %v11439_v50 = vld [vmem:[#allocation21_spill] sm:$0xff] }
 0x339   :  { %5280 = vadd.xlane.f32.xlu0 %v5142_v47  ;;  %v4688_v31 = vrot.slane %v4099_v25, %v9896_v41  ;;  %v5137_v25 = vmul.f32 %v11434_v0, %v10184_v61 }
 0x33a   :  { %v10306_v19 = vpop.xlane.xlu0 %4116  ;;  %v10315_v14 = vpop.f32.mrb[102].mxu1  ;;  %v5089_v46 = vcombine.high %v10322_v49, %v10322_v49 }
 0x33b   :  { %11432 = vst [vmem:[#allocation70_spill] sm:$0xff] %v10315_v14  ;;  %v4689_v43 = vsel %vm4443_vm11, %v4688_v31, %v4684_v59  ;;  %v10318_v47 = vpop.f32.mrb[103].mxu1  ;;  %5266 = vadd.xlane.f32.xlu1 %v5135_v38  ;;  %v11435_v14 = vld [vmem:[#allocation19_spill] sm:$0xff]  ;;  %v10334_v59 = vrot.slane %v10311_v56, %v9165_v17 }
 0x33c   :  { %11433 = vst [vmem:[#allocation17_spill] sm:$0xff] %v10318_v47  ;;  %v4103_v42 = vpop.xlane.xlu1 %4102  ;;  %v4694_v7 = vsel %vm11214_vm12, %v4693_v53, %v4689_v43  ;;  %v5146_v31 = vmul.f32 %v10184_v61, %v11435_v14 }
 0x33d   :  { %5284 = vadd.xlane.f32.xlu0 %v5144_v36  ;;  %v4698_v35 = vrot.slane %v4103_v42, %v9919_v16  ;;  %v11438_v42 = vld [vmem:[#allocation74_spill] sm:$0xff] }
 0x33e   :  { %v10328_v33 = vpop.xlane.xlu0 %4120  ;;  %v10340_v38 = vpop.f32.mrb[104].mxu1  ;;  %v5139_v0 = vmul.f32 %v11438_v42, %v10184_v61 }
 0x33f   :  { %11436 = vst [vmem:[#allocation72_spill] sm:$0xff] %v10340_v38  ;;  %v4699_v36 = vsel %vm4457_vm13, %v4698_v35, %v4694_v7  ;;  %v10343_v53 = vpop.f32.mrb[105].mxu1  ;;  %5270 = vadd.xlane.f32.xlu1 %v5137_v25  ;;  %v5148_v38 = vmul.f32 %v10334_v59, %v11439_v50  ;;  %v10354_v7 = vrot.slane %v5089_v46, %v9165_v17  ;;  %v11443_v50 = vld [vmem:[#allocation76_spill] sm:$0xff] }
 0x340   :  { %11437 = vst [vmem:[#allocation19_spill] sm:$0xff] %v10343_v53  ;;  %v4107_v43 = vpop.xlane.xlu1 %4106  ;;  %v4704_v14 = vsel %vm4464_vm14, %v4703_v48, %v4699_v36  ;;  %v5141_v42 = vmul.f32 %v11443_v50, %v10184_v61  ;;  %v4713_v46 = vrot.slane %v10274_v34, %v9785_v30 }
 0x341   :  { %5288 = vadd.xlane.f32.xlu0 %v5146_v31  ;;  %v4708_v3 = vrot.slane %v4107_v43, %v9941_v12  ;;  %11440 = vst [vmem:[#allocation74_spill] sm:$0xff] %v10354_v7 }
 0x342   :  { %v10349_v47 = vpop.xlane.xlu0 %4124  ;;  %v10356_v35 = vpop.f32.mrb[106].mxu1 }
 0x343   :  { %11441 = vst [vmem:[#allocation21_spill] sm:$0xff] %v10356_v35  ;;  %v4709_v25 = vsel %vm4471_vm15, %v4708_v3, %v4704_v14  ;;  %v3653_v31 = vpop.f32.mrb[107].mxu1  ;;  %5274 = vadd.xlane.f32.xlu1 %v5139_v0  ;;  %v11444_v0 = vld [vmem:[#allocation23_spill] sm:$0xff] }
 0x344   :  { %v10361_v48 = vsel %vm11207_vm0, %v4709_v25, %v10215_v37  ;;  %v10364_v36 = vmul.f32 %v10354_v7, %v3653_v31  ;;  %v4111_v43 = vpop.xlane.xlu1 %4110  ;;  %v5150_v3 = vmul.f32 %v10334_v59, %v11444_v0  ;;  %v4722_v37 = vrot.slane %v10289_v39, %v9791_v40  ;;  %v11447_v0 = vld [vmem:[#allocation15_spill] sm:$0xff] }
 0x345   :  { %5292 = vadd.xlane.f32.xlu0 %v5148_v38  ;;  %v4717_v35 = vrot.slane %v4111_v43, %v9779_v9  ;;  %v5143_v53 = vmul.f32 %v11447_v0, %v10184_v61  ;;  %vm11208_vm0 = vcmask 1044484  }
 0x346   :  { %11442 = vst [vmem:[#allocation86_spill] sm:$0xff] %v10364_v36  ;;  %v10371_v14 = vpop.xlane.xlu0 %4128  ;;  %v7233_v25 = vpop.f32.mrb[108].mxu1 }
 0x347   :  { %v4718_v38 = vsel %vm4373_vm1, %v4717_v35, %v4713_v46  ;;  %v10379_v31 = vmul.f32 %v7233_v25, %v10354_v7  ;;  %v3663_v50 = vpop.f32.mrb[109].mxu1  ;;  %5278 = vadd.xlane.f32.xlu1 %v5141_v42  ;;  %v5152_v35 = vmul.f32 %v10334_v59, %v11448_v21  ;;  %v4732_v46 = vrot.slane %v10306_v19, %v9812_v44  ;;  %v11451_v21 = vld [vmem:[#allocation10_spill] sm:$0xff] }
 0x348   :  { %v10382_v34 = vmul.f32 %v10354_v7, %v3663_v50  ;;  %v4115_v43 = vpop.xlane.xlu1 %4114  ;;  %v4723_v36 = vsel %vm4380_vm2, %v4722_v37, %v4718_v38  ;;  %v5145_v0 = vmul.f32 %v11451_v21, %v10184_v61 }
 0x349   :  { %11445 = vst [vmem:[#allocation76_spill] sm:$0xff] %v10379_v31  ;;  %5296 = vadd.xlane.f32.xlu0 %v5150_v3  ;;  %v4727_v39 = vrot.slane %v4115_v43, %v9805_v2  ;;  %v11452_v31 = vld [vmem:[#allocation16_spill] sm:$0xff] }
 0x34a   :  { %11446 = vst [vmem:[#allocation23_spill] sm:$0xff] %v10382_v34  ;;  %v4133_v24 = vpop.xlane.xlu0 %4132  ;;  %v7236_v42 = vpop.f32.mrb[110].mxu1 }
 0x34b   :  { %v4728_v25 = vsel %vm4387_vm3, %v4727_v39, %v4723_v36  ;;  %v10394_v3 = vmul.f32 %v7236_v42, %v10354_v7  ;;  %v3673_v50 = vpop.f32.mrb[111].mxu1  ;;  %5282 = vadd.xlane.f32.xlu1 %v5143_v53  ;;  %v5154_v36 = vmul.f32 %v10334_v59, %v11452_v31  ;;  %v4742_v39 = vrot.slane %v10328_v33, %v9835_v62 }
 0x34c   :  { %v10397_v37 = vmul.f32 %v10354_v7, %v3673_v50  ;;  %v4119_v38 = vpop.xlane.xlu1 %4118  ;;  %v4733_v43 = vsel %vm4394_vm4, %v4732_v46, %v4728_v25  ;;  %v11455_v50 = vld [vmem:[#allocation11_spill] sm:$0xff] }
 0x34d   :  { %11449 = vst [vmem:[#allocation15_spill] sm:$0xff] %v10394_v3  ;;  %5300 = vadd.xlane.f32.xlu0 %v5152_v35  ;;  %v4737_v19 = vrot.slane %v4119_v38, %v9827_v52  ;;  %v5147_v38 = vmul.f32 %v11455_v50, %v10184_v61  ;;  %v11456_v3 = vld [vmem:[#allocation18_spill] sm:$0xff] }
 0x34e   :  { %11450 = vst [vmem:[#allocation14_spill] sm:$0xff] %v10397_v37  ;;  %v4137_v34 = vpop.xlane.xlu0 %4136  ;;  %v10407_v53 = vpop.f32.mrb[112].mxu1  ;;  %v5156_v33 = vmul.f32 %v10334_v59, %v11456_v3  ;;  %v11460_v37 = vld [vmem:[#allocation20_spill] sm:$0xff] }
 0x34f   :  { %11453 = vst [vmem:[#allocation10_spill] sm:$0xff] %v10407_v53  ;;  %v4738_v42 = vsel %vm4401_vm5, %v4737_v19, %v4733_v43  ;;  %v10410_v35 = vpop.f32.mrb[113].mxu1  ;;  %5286 = vadd.xlane.f32.xlu1 %v5145_v0  ;;  %v4752_v43 = vrot.slane %v10349_v47, %v9858_v8  ;;  %v5158_v47 = vmul.f32 %v10334_v59, %v11460_v37 }
 0x350   :  { %11454 = vst [vmem:[#allocation16_spill] sm:$0xff] %v10410_v35  ;;  %v4123_v46 = vpop.xlane.xlu1 %4122  ;;  %v4743_v25 = vsel %vm4408_vm6, %v4742_v39, %v4738_v42  ;;  %v11459_v42 = vld [vmem:[#allocation12_spill] sm:$0xff]  ;;  %v11464_v35 = vld [vmem:[#allocation22_spill] sm:$0xff] }
 0x351   :  { %5304 = vadd.xlane.f32.xlu0 %v5154_v36  ;;  %v4747_v21 = vrot.slane %v4123_v46, %v9850_v27  ;;  %v5149_v46 = vmul.f32 %v11459_v42, %v10334_v59 }
 0x352   :  { %v10416_v31 = vpop.xlane.xlu0 %4140  ;;  %v10422_v19 = vpop.f32.mrb[114].mxu1 }
 0x353   :  { %11457 = vst [vmem:[#allocation11_spill] sm:$0xff] %v10422_v19  ;;  %v4748_v0 = vsel %vm4415_vm7, %v4747_v21, %v4743_v25  ;;  %v10425_v36 = vpop.f32.mrb[115].mxu1  ;;  %5290 = vadd.xlane.f32.xlu1 %v5147_v38  ;;  %v4762_v25 = vrot.slane %v10371_v14, %v9881_v23  ;;  %v5160_v14 = vmul.f32 %v10334_v59, %v11464_v35  ;;  %v11481_v19 = vld [vmem:[#allocation30_spill] sm:$0xff] }
 0x354   :  { %11458 = vst [vmem:[#allocation18_spill] sm:$0xff] %v10425_v36  ;;  %v4127_v39 = vpop.xlane.xlu1 %4126  ;;  %v4753_v61 = vsel %vm4422_vm8, %v4752_v43, %v4748_v0 }
 0x355   :  { %5308 = vadd.xlane.f32.xlu0 %v5156_v33  ;;  %v4757_v50 = vrot.slane %v4127_v39, %v9873_v13  ;;  %v11463_v39 = vld [vmem:[#allocation13_spill] sm:$0xff] }
 0x356   :  { %v10431_v3 = vpop.xlane.xlu0 %4144  ;;  %v10437_v21 = vpop.f32.mrb[116].mxu1  ;;  %v5151_v42 = vmul.f32 %v11463_v39, %v10334_v59  ;;  %v11467_v39 = vld [vmem:[#allocation9_spill] sm:$0xff] }
 0x357   :  { %11461 = vst [vmem:[#allocation12_spill] sm:$0xff] %v10437_v21  ;;  %v4758_v38 = vsel %vm4429_vm9, %v4757_v50, %v4753_v61  ;;  %v10440_v33 = vpop.f32.mrb[117].mxu1  ;;  %5294 = vadd.xlane.f32.xlu1 %v5149_v46  ;;  %v5088_v61 = vcombine.high %v10165_v18, %v10165_v18  ;;  %v4772_v50 = vrot.slane %v4133_v24, %v9904_v6  ;;  %v11468_v18 = vld [vmem:[#allocation24_spill] sm:$0xff] }
 0x358   :  { %11462 = vst [vmem:[#allocation20_spill] sm:$0xff] %v10440_v33  ;;  %v4131_v43 = vpop.xlane.xlu1 %4130  ;;  %v4763_v0 = vsel %vm4436_vm10, %v4762_v25, %v4758_v38  ;;  %v5153_v33 = vmul.f32 %v11467_v39, %v10334_v59  ;;  %v5162_v24 = vmul.f32 %v10334_v59, %v11468_v18  ;;  %v11471_v39 = vld [vmem:[#allocation25_spill] sm:$0xff] }
 0x359   :  { %5312 = vadd.xlane.f32.xlu0 %v5158_v47  ;;  %v4767_v36 = vrot.slane %v4131_v43, %v9896_v41 }
 0x35a   :  { %v10446_v37 = vpop.xlane.xlu0 %4148  ;;  %v10453_v46 = vpop.f32.mrb[118].mxu1 }
 0x35b   :  { %11465 = vst [vmem:[#allocation13_spill] sm:$0xff] %v10453_v46  ;;  %v4768_v47 = vsel %vm4443_vm11, %v4767_v36, %v4763_v0  ;;  %v10456_v25 = vpop.f32.mrb[119].mxu1  ;;  %5298 = vadd.xlane.f32.xlu1 %v5151_v42  ;;  %v10467_v46 = vrot.slane %v5088_v61, %v9165_v17  ;;  %v4782_v36 = vrot.slane %v4137_v34, %v9929_v26 }
 0x35c   :  { %11466 = vst [vmem:[#allocation22_spill] sm:$0xff] %v10456_v25  ;;  %v4135_v38 = vpop.xlane.xlu1 %4134  ;;  %v4773_v43 = vsel %vm11214_vm12, %v4772_v50, %v4768_v47  ;;  %v5091_v0 = vcombine.high %v10191_v29, %v10191_v29  ;;  %v5155_v61 = vmul.f32 %v11471_v39, %v10334_v59  ;;  %v11472_v25 = vld [vmem:[#allocation26_spill] sm:$0xff] }
 0x35d   :  { %5316 = vadd.xlane.f32.xlu0 %v5160_v14  ;;  %v4777_v35 = vrot.slane %v4135_v38, %v9919_v16  ;;  %v5164_v29 = vmul.f32 %v10467_v46, %v11472_v25  ;;  %v11476_v25 = vld [vmem:[#allocation27_spill] sm:$0xff] }
 0x35e   :  { %v10462_v21 = vpop.xlane.xlu0 %4152  ;;  %v10472_v42 = vpop.f32.mrb[120].mxu1 }
 0x35f   :  { %11469 = vst [vmem:[#allocation9_spill] sm:$0xff] %v10472_v42  ;;  %v4778_v14 = vsel %vm4457_vm13, %v4777_v35, %v4773_v43  ;;  %v10475_v50 = vpop.f32.mrb[121].mxu1  ;;  %5302 = vadd.xlane.f32.xlu1 %v5153_v33  ;;  %v10484_v42 = vrot.slane %v5091_v0, %v9165_v17  ;;  %v4792_v0 = vrot.slane %v10416_v31, %v9785_v30 }
 0x360   :  { %11470 = vst [vmem:[#allocation24_spill] sm:$0xff] %v10475_v50  ;;  %v4139_v47 = vpop.xlane.xlu1 %4138  ;;  %v4783_v38 = vsel %vm4464_vm14, %v4782_v36, %v4778_v14 }
 0x361   :  { %5320 = vadd.xlane.f32.xlu0 %v5162_v24  ;;  %v4787_v18 = vrot.slane %v4139_v47, %v9941_v12  ;;  %11473 = vst [vmem:[#allocation25_spill] sm:$0xff] %v10484_v42  ;;  %v5157_v47 = vmul.f32 %v11476_v25, %v10334_v59 }
 0x362   :  { %v4157_v34 = vpop.xlane.xlu0 %4156  ;;  %v10486_v43 = vpop.f32.mrb[122].mxu1 }
 0x363   :  { %11474 = vst [vmem:[#allocation26_spill] sm:$0xff] %v10486_v43  ;;  %v4788_v33 = vsel %vm4471_vm15, %v4787_v18, %v4783_v38  ;;  %v3733_v35 = vpop.f32.mrb[123].mxu1  ;;  %5306 = vadd.xlane.f32.xlu1 %v5155_v61  ;;  %v11477_v18 = vld [vmem:[#allocation28_spill] sm:$0xff] }
 0x364   :  { %v10490_v24 = vmul.f32 %v10484_v42, %v3733_v35  ;;  %v4143_v36 = vpop.xlane.xlu1 %4142  ;;  %v10494_v14 = vsel %vm11208_vm0, %v4788_v33, %v10361_v48  ;;  %v5166_v61 = vmul.f32 %v10467_v46, %v11477_v18  ;;  %v11480_v18 = vld [vmem:[#allocation29_spill] sm:$0xff]  ;;  %vm11213_vm0 = vcmask 1045509  }
 0x365   :  { %5324 = vadd.xlane.f32.xlu0 %v5164_v29  ;;  %v4796_v39 = vrot.slane %v4143_v36, %v9779_v9  ;;  %v4801_v29 = vrot.slane %v10431_v3, %v9791_v40  ;;  %v5159_v43 = vmul.f32 %v11480_v18, %v10334_v59 }
 0x366   :  { %11475 = vst [vmem:[#allocation87_spill] sm:$0xff] %v10490_v24  ;;  %v4161_v38 = vpop.xlane.xlu0 %4160  ;;  %v7257_v35 = vpop.f32.mrb[124].mxu1 }
 0x367   :  { %v4797_v24 = vsel %vm4373_vm1, %v4796_v39, %v4792_v0  ;;  %v10507_v48 = vmul.f32 %v7257_v35, %v10484_v42  ;;  %v3743_v33 = vpop.f32.mrb[125].mxu1  ;;  %5310 = vadd.xlane.f32.xlu1 %v5157_v47  ;;  %v5168_v0 = vmul.f32 %v10467_v46, %v11481_v19  ;;  %v4811_v39 = vrot.slane %v10446_v37, %v9812_v44  ;;  %v11484_v19 = vld [vmem:[#allocation31_spill] sm:$0xff] }
 0x368   :  { %v10510_v25 = vmul.f32 %v10484_v42, %v3743_v33  ;;  %v4147_v31 = vpop.xlane.xlu1 %4146  ;;  %v4802_v36 = vsel %vm4380_vm2, %v4801_v29, %v4797_v24  ;;  %v5161_v18 = vmul.f32 %v11484_v19, %v10334_v59  ;;  %v11487_v19 = vld [vmem:[#allocation34_spill] sm:$0xff] }
 0x369   :  { %11478 = vst [vmem:[#allocation27_spill] sm:$0xff] %v10507_v48  ;;  %5328 = vadd.xlane.f32.xlu0 %v5166_v61  ;;  %v4806_v3 = vrot.slane %v4147_v31, %v9805_v2  ;;  %v11485_v48 = vld [vmem:[#allocation32_spill] sm:$0xff] }
 0x36a   :  { %11479 = vst [vmem:[#allocation28_spill] sm:$0xff] %v10510_v25  ;;  %v4165_v50 = vpop.xlane.xlu0 %4164  ;;  %v7260_v47 = vpop.f32.mrb[126].mxu1 }
 0x36b   :  { %v4807_v35 = vsel %vm4387_vm3, %v4806_v3, %v4802_v36  ;;  %v10522_v61 = vmul.f32 %v7260_v47, %v10484_v42  ;;  %v3753_v33 = vpop.f32.mrb[127].mxu1  ;;  %5314 = vadd.xlane.f32.xlu1 %v5159_v43  ;;  %v5170_v36 = vmul.f32 %v10467_v46, %v11485_v48  ;;  %v4821_v3 = vrot.slane %v10462_v21, %v9835_v62 }
 0x36c   :  { %v10525_v24 = vmul.f32 %v10484_v42, %v3753_v33  ;;  %v4151_v29 = vpop.xlane.xlu1 %4150  ;;  %v4812_v31 = vsel %vm4394_vm4, %v4811_v39, %v4807_v35  ;;  %v11486_v39 = vld [vmem:[#allocation33_spill] sm:$0xff]  ;;  %v5172_v48 = vmul.f32 %v10467_v46, %v11487_v19 }
 0x36d   :  { %11482 = vst [vmem:[#allocation29_spill] sm:$0xff] %v10522_v61  ;;  %5332 = vadd.xlane.f32.xlu0 %v5168_v0  ;;  %v4816_v37 = vrot.slane %v4151_v29, %v9827_v52  ;;  %v5163_v35 = vmul.f32 %v11486_v39, %v10334_v59  ;;  %v4831_v61 = vrot.slane %v4157_v34, %v9858_v8 }
 0x36e   :  { %11483 = vst [vmem:[#allocation30_spill] sm:$0xff] %v10525_v24  ;;  %v4169_v25 = vpop.xlane.xlu0 %4168  ;;  %v4841_v39 = vrot.slane %v4161_v38, %v9881_v23  ;;  %v5090_v38 = vcombine.high %v10311_v56, %v10311_v56 }
 0x36f   :  { %v4817_v43 = vsel %vm4401_vm5, %v4816_v37, %v4812_v31  ;;  %5318 = vadd.xlane.f32.xlu1 %v5161_v18  ;;  %v11488_v37 = vld [vmem:[#allocation35_spill] sm:$0xff] }
 0x370   :  { %v4155_v0 = vpop.xlane.xlu1 %4154  ;;  %v4822_v47 = vsel %vm4408_vm6, %v4821_v3, %v4817_v43  ;;  %v11489_v43 = vld [vmem:[#allocation36_spill] sm:$0xff]  ;;  %v10577_v56 = vrot.slane %v5090_v38, %v9165_v17 }
 0x371   :  { %5336 = vadd.xlane.f32.xlu0 %v5170_v36  ;;  %v4826_v33 = vrot.slane %v4155_v0, %v9850_v27  ;;  %v5165_v36 = vmul.f32 %v11488_v37, %v10467_v46  ;;  %v5174_v0 = vmul.f32 %v10467_v46, %v11489_v43  ;;  %v11492_v43 = vld [vmem:[#allocation39_spill] sm:$0xff] }
 0x372   :  { %v10540_v29 = vpop.xlane.xlu0 %4172 }
 0x373   :  { %v4827_v21 = vsel %vm4415_vm7, %v4826_v33, %v4822_v47  ;;  %5322 = vadd.xlane.f32.xlu1 %v5163_v35 }
 0x374   :  { %v4159_v31 = vpop.xlane.xlu1 %4158  ;;  %v4832_v18 = vsel %vm4422_vm8, %v4831_v61, %v4827_v21  ;;  %v11490_v61 = vld [vmem:[#allocation37_spill] sm:$0xff]  ;;  %v11491_v21 = vld [vmem:[#allocation48_spill] sm:$0xff] }
 0x375   :  { %5340 = vadd.xlane.f32.xlu0 %v5172_v48  ;;  %v4836_v59 = vrot.slane %v4159_v31, %v9873_v13  ;;  %v5167_v33 = vmul.f32 %v11490_v61, %v10467_v46  ;;  %v5176_v31 = vmul.f32 %v10467_v46, %v11491_v21 }
 0x376   :  { %v10550_v3 = vpop.xlane.xlu0 %4176 }
 0x377   :  { %v4837_v34 = vsel %vm4429_vm9, %v4836_v59, %v4832_v18  ;;  %5326 = vadd.xlane.f32.xlu1 %v5165_v36  ;;  %v4851_v18 = vrot.slane %v4165_v50, %v9904_v6 }
 0x378   :  { %v4163_v47 = vpop.xlane.xlu1 %4162  ;;  %v4842_v35 = vsel %vm4436_vm10, %v4841_v39, %v4837_v34 }
 0x379   :  { %5344 = vadd.xlane.f32.xlu0 %v5174_v0  ;;  %v4846_v19 = vrot.slane %v4163_v47, %v9896_v41  ;;  %v5169_v0 = vmul.f32 %v11492_v43, %v10467_v46  ;;  %v11493_v47 = vld [vmem:[#allocation50_spill] sm:$0xff] }
 0x37a   :  { %v10560_v48 = vpop.xlane.xlu0 %4180  ;;  %v5178_v61 = vmul.f32 %v10467_v46, %v11493_v47 }
 0x37b   :  { %v4847_v37 = vsel %vm4443_vm11, %v4846_v19, %v4842_v35  ;;  %5330 = vadd.xlane.f32.xlu1 %v5167_v33  ;;  %v4861_v35 = vrot.slane %v4169_v25, %v9929_v26  ;;  %v11494_v19 = vld [vmem:[#allocation41_spill] sm:$0xff] }
 0x37c   :  { %v4167_v36 = vpop.xlane.xlu1 %4166  ;;  %v4852_v59 = vsel %vm11214_vm12, %v4851_v18, %v4847_v37  ;;  %v5171_v21 = vmul.f32 %v11494_v19, %v10467_v46  ;;  %v11495_v37 = vld [vmem:[#allocation52_spill] sm:$0xff] }
 0x37d   :  { %5348 = vadd.xlane.f32.xlu0 %v5176_v31  ;;  %v4856_v39 = vrot.slane %v4167_v36, %v9919_v16  ;;  %v5180_v36 = vmul.f32 %v10577_v56, %v11495_v37 }
 0x37e   :  { %v10572_v34 = vpop.xlane.xlu0 %4184 }
 0x37f   :  { %v4857_v50 = vsel %vm4457_vm13, %v4856_v39, %v4852_v59  ;;  %5334 = vadd.xlane.f32.xlu1 %v5169_v0  ;;  %v11497_v0 = vld [vmem:[#allocation43_spill] sm:$0xff] }
 0x380   :  { %v4171_v33 = vpop.xlane.xlu1 %4170  ;;  %v4862_v38 = vsel %vm4464_vm14, %v4861_v35, %v4857_v50  ;;  %v5173_v39 = vmul.f32 %v11497_v0, %v10467_v46  ;;  %v11499_v35 = vld [vmem:[#allocation46_spill] sm:$0xff]  ;;  %v5186_v0 = vmul.f32 %v10577_v56, %v9934_v57  ;;  %v5190_v57 = vmul.f32 %v10577_v56, %v9966_v1 }
 0x381   :  { %5352 = vadd.xlane.f32.xlu0 %v5178_v61  ;;  %v4866_v31 = vrot.slane %v4171_v33, %v9941_v12  ;;  %v11498_v61 = vld [vmem:[#allocation45_spill] sm:$0xff]  ;;  %v5175_v19 = vmul.f32 %v11499_v35, %v10467_v46  ;;  %v5194_v1 = vmul.f32 %v10577_v56, %v9993_v5  ;;  %v4871_v5 = vrot.slane %v10540_v29, %v9785_v30 }
 0x382   :  { %v10584_v18 = vpop.xlane.xlu0 %4188  ;;  %v5182_v33 = vmul.f32 %v10577_v56, %v11498_v61  ;;  %v11502_v61 = vld [vmem:[#allocation38_spill] sm:$0xff] }
 0x383   :  { %v4867_v59 = vsel %vm4471_vm15, %v4866_v31, %v4862_v38  ;;  %5338 = vadd.xlane.f32.xlu1 %v5171_v21  ;;  %v11500_v31 = vld [vmem:[#allocation79_spill] sm:$0xff] }
 0x384   :  { %v4175_v25 = vpop.xlane.xlu1 %4174  ;;  %v10592_v43 = vsel %vm11213_vm0, %v4867_v59, %v10494_v14  ;;  %v5184_v14 = vmul.f32 %v10577_v56, %v11500_v31  ;;  %vm11216_vm0 = vcmask 1046534  }
 0x385   :  { %5356 = vadd.xlane.f32.xlu0 %v5180_v36  ;;  %11496 = vst [vmem:[#allocation31_spill] sm:$0xff] %v10592_v43  ;;  %v11501_v36 = vld [vmem:[#allocation44_spill] sm:$0xff] }
 0x386   :  { %v10596_v47 = vpop.xlane.xlu0 %4192  ;;  %v5177_v38 = vmul.f32 %v11501_v36, %v10467_v46 }
 0x387   :  { %5342 = vadd.xlane.f32.xlu1 %v5173_v39 }
 0x388   :  { %v4179_v50 = vpop.xlane.xlu1 %4178 }
 0x389   :  { %5360 = vadd.xlane.f32.xlu0 %v5182_v33  ;;  %v5179_v33 = vmul.f32 %v11502_v61, %v10467_v46  ;;  %v11504_v46 = vld [vmem:[#allocation42_spill] sm:$0xff] }
 0x38a   :  { %v10602_v21 = vpop.xlane.xlu0 %4196 }
 0x38b   :  { %5346 = vadd.xlane.f32.xlu1 %v5175_v19  ;;  %v5188_v19 = vmul.f32 %v10577_v56, %v9953_v28  ;;  %v11505_v28 = vld [vmem:[#allocation80_spill] sm:$0xff] }
 0x38c   :  { %v10606_v37 = vpop.xlane.xlu1 %4182 }
 0x38d   :  { %5364 = vadd.xlane.f32.xlu0 %v5184_v14  ;;  %v11503_v14 = vld [vmem:[#allocation40_spill] sm:$0xff] }
 0x38e   :  { %v10610_v59 = vpop.xlane.xlu0 %4200  ;;  %v5181_v36 = vmul.f32 %v11503_v14, %v10577_v56  ;;  %v11506_v14 = vld [vmem:[#allocation47_spill] sm:$0xff] }
 0x38f   :  { %5350 = vadd.xlane.f32.xlu1 %v5177_v38  ;;  %v5185_v53 = vmul.f32 %v11506_v14, %v10577_v56 }
 0x390   :  { %v10614_v39 = vpop.xlane.xlu1 %4186 }
 0x391   :  { %5368 = vadd.xlane.f32.xlu0 %v5186_v0  ;;  %v5183_v0 = vmul.f32 %v11504_v46, %v10577_v56 }
 0x392   :  { %v4205_v35 = vpop.xlane.xlu0 %4204 }
 0x393   :  { %5354 = vadd.xlane.f32.xlu1 %v5179_v33  ;;  %v5192_v33 = vmul.f32 %v10577_v56, %v11505_v28  ;;  %v4950_v7 = vrot.slane %v4205_v35, %v9785_v30 }
 0x394   :  { %v10620_v31 = vpop.xlane.xlu1 %4190 }
 0x395   :  { %5372 = vadd.xlane.f32.xlu0 %v5188_v19 }
 0x396   :  { %v4209_v24 = vpop.xlane.xlu0 %4208 }
 0x397   :  { %5358 = vadd.xlane.f32.xlu1 %v5181_v36  ;;  %v10642_v36 = vrot.slane %v10322_v49, %v9165_v17  ;;  %v4885_v49 = vrot.slane %v4179_v50, %v9805_v2 }
 0x398   :  { %v10626_v38 = vpop.xlane.xlu1 %4194 }
 0x399   :  { %5376 = vadd.xlane.f32.xlu0 %v5190_v57  ;;  %v4875_v57 = vrot.slane %v4175_v25, %v9779_v9  ;;  %v5196_v14 = vmul.f32 %v10642_v36, %v10005_v60  ;;  %v11508_v25 = vld [vmem:[#allocation51_spill] sm:$0xff]  ;;  %v5198_v29 = vmul.f32 %v10642_v36, %v10019_v51  ;;  %v4890_v51 = vrot.slane %v10560_v48, %v9812_v44 }
 0x39a   :  { %v4213_v61 = vpop.xlane.xlu0 %4212 }
 0x39b   :  { %5362 = vadd.xlane.f32.xlu1 %v5183_v0  ;;  %v11507_v0 = vld [vmem:[#allocation49_spill] sm:$0xff]  ;;  %v4876_v17 = vsel %vm4373_vm1, %v4875_v57, %v4871_v5  ;;  %v4969_v48 = vrot.slane %v4213_v61, %v9812_v44 }
 0x39c   :  { %v10632_v19 = vpop.xlane.xlu1 %4198  ;;  %v5187_v28 = vmul.f32 %v11507_v0, %v10577_v56  ;;  %v4880_v0 = vrot.slane %v10550_v3, %v9791_v40  ;;  %v4959_v3 = vrot.slane %v4209_v24, %v9791_v40  ;;  %v11509_v5 = vld [vmem:[#allocation53_spill] sm:$0xff] }
 0x39d   :  { %5380 = vadd.xlane.f32.xlu0 %v5192_v33 }
 0x39e   :  { %v10636_v42 = vpop.xlane.xlu0 %4216  ;;  %v4881_v57 = vsel %vm4380_vm2, %v4880_v0, %v4876_v17  ;;  %v4905_v0 = vrot.slane %v10614_v39, %v9850_v27 }
 0x39f   :  { %5366 = vadd.xlane.f32.xlu1 %v5185_v53 }
 0x3a0   :  { %v10645_v46 = vpop.xlane.xlu1 %4202 }
 0x3a1   :  { %5384 = vadd.xlane.f32.xlu0 %v5194_v1  ;;  %v5189_v1 = vmul.f32 %v11508_v25, %v10577_v56 }
 0x3a2   :  { %v10649_v33 = vpop.xlane.xlu0 %4220 }
 0x3a3   :  { %5370 = vadd.xlane.f32.xlu1 %v5187_v28  ;;  %v4886_v28 = vsel %vm4387_vm3, %v4885_v49, %v4881_v57 }
 0x3a4   :  { %v4207_v53 = vpop.xlane.xlu1 %4206 }
 0x3a5   :  { %5388 = vadd.xlane.f32.xlu0 %v5196_v14  ;;  %v4954_v60 = vrot.slane %v4207_v53, %v9779_v9  ;;  %v4895_v14 = vrot.slane %v10606_v37, %v9827_v52  ;;  %v5191_v53 = vmul.f32 %v11509_v5, %v10577_v56  ;;  %v4891_v37 = vsel %vm4394_vm4, %v4890_v51, %v4886_v28  ;;  %v11511_v51 = vld [vmem:[#allocation55_spill] sm:$0xff] }
 0x3a6   :  { %v10663_v43 = vpop.xlane.xlu0 %4224  ;;  %v4915_v5 = vrot.slane %v10620_v31, %v9873_v13 }
 0x3a7   :  { %v4955_v50 = vsel %vm4373_vm1, %v4954_v60, %v4950_v7  ;;  %5374 = vadd.xlane.f32.xlu1 %v5189_v1  ;;  %v5200_v7 = vmul.f32 %v10642_v36, %v10031_v22  ;;  %v4896_v1 = vsel %vm4401_vm5, %v4895_v14, %v4891_v37  ;;  %v4900_v22 = vrot.slane %v10572_v34, %v9835_v62 }
 0x3a8   :  { %v4211_v35 = vpop.xlane.xlu1 %4210  ;;  %v4960_v49 = vsel %vm4380_vm2, %v4959_v3, %v4955_v50  ;;  %v5202_v14 = vmul.f32 %v10642_v36, %v10045_v20  ;;  %v4979_v34 = vrot.slane %v10636_v42, %v9835_v62  ;;  %v5195_v20 = vmul.f32 %v11511_v51, %v10577_v56 }
 0x3a9   :  { %5392 = vadd.xlane.f32.xlu0 %v5198_v29  ;;  %v4964_v17 = vrot.slane %v4211_v35, %v9805_v2  ;;  %v11510_v29 = vld [vmem:[#allocation54_spill] sm:$0xff]  ;;  %v4901_v39 = vsel %vm4408_vm6, %v4900_v22, %v4896_v1  ;;  %v5204_v37 = vmul.f32 %v10642_v36, %v10060_v45  ;;  %v5197_v45 = vmul.f32 %v10002_v4, %v10642_v36 }
 0x3aa   :  { %v10678_v25 = vpop.xlane.xlu0 %4228  ;;  %v5193_v57 = vmul.f32 %v11510_v29, %v10577_v56  ;;  %v4906_v35 = vsel %vm4415_vm7, %v4905_v0, %v4901_v39  ;;  %v4925_v56 = vrot.slane %v10626_v38, %v9896_v41  ;;  %v4935_v4 = vrot.slane %v10632_v19, %v9919_v16 }
 0x3ab   :  { %v4965_v24 = vsel %vm4387_vm3, %v4964_v17, %v4960_v49  ;;  %5378 = vadd.xlane.f32.xlu1 %v5191_v53  ;;  %v4910_v17 = vrot.slane %v10584_v18, %v9858_v8  ;;  %v4989_v18 = vrot.slane %v10649_v33, %v9858_v8  ;;  %v4940_v51 = vrot.slane %v10610_v59, %v9929_v26 }
 0x3ac   :  { %v4215_v60 = vpop.xlane.xlu1 %4214  ;;  %v4970_v3 = vsel %vm4394_vm4, %v4969_v48, %v4965_v24  ;;  %v4920_v48 = vrot.slane %v10596_v47, %v9881_v23  ;;  %v4999_v47 = vrot.slane %v10663_v43, %v9881_v23 }
 0x3ad   :  { %5396 = vadd.xlane.f32.xlu0 %v5200_v7  ;;  %v4974_v50 = vrot.slane %v4215_v60, %v9827_v52  ;;  %v4911_v24 = vsel %vm4422_vm8, %v4910_v17, %v4906_v35  ;;  %v5208_v35 = vmul.f32 %v10642_v36, %v10088_v32  ;;  %v5201_v32 = vmul.f32 %v10028_v58, %v10642_v36 }
 0x3ae   :  { %v10694_v28 = vpop.xlane.xlu0 %4232  ;;  %v4916_v1 = vsel %vm4429_vm9, %v4915_v5, %v4911_v24  ;;  %v5203_v24 = vmul.f32 %v10042_v55, %v10642_v36  ;;  %v11513_v55 = vld [vmem:[#allocation56_spill] sm:$0xff] }
 0x3af   :  { %v4975_v61 = vsel %vm4401_vm5, %v4974_v50, %v4970_v3  ;;  %5382 = vadd.xlane.f32.xlu1 %v5193_v57  ;;  %v5206_v57 = vmul.f32 %v10642_v36, %v10071_v54  ;;  %v4921_v22 = vsel %vm4436_vm10, %v4920_v48, %v4916_v1  ;;  %v5199_v54 = vmul.f32 %v10016_v63, %v10642_v36 }
 0x3b0   :  { %v4219_v53 = vpop.xlane.xlu1 %4218  ;;  %v4980_v31 = vsel %vm4408_vm6, %v4979_v34, %v4975_v61  ;;  %v4926_v50 = vsel %vm4443_vm11, %v4925_v56, %v4921_v22  ;;  %v4930_v3 = vrot.slane %v10602_v21, %v9904_v6  ;;  %v4945_v63 = vrot.slane %v10645_v46, %v9941_v12  ;;  %v11514_v22 = vld [vmem:[#allocation83_spill] sm:$0xff] }
 0x3b1   :  { %5400 = vadd.xlane.f32.xlu0 %v5202_v14  ;;  %v4984_v7 = vrot.slane %v4219_v53, %v9850_v27  ;;  %v5009_v21 = vrot.slane %v10678_v25, %v9904_v6  ;;  %v5212_v1 = vmul.f32 %v10208_v15, %v10116_v11 }
 0x3b2   :  { %v10711_v49 = vpop.xlane.xlu0 %5260  ;;  %v4931_v19 = vsel %vm11214_vm12, %v4930_v3, %v4926_v50 }
 0x3b3   :  { %v4985_v42 = vsel %vm4415_vm7, %v4984_v7, %v4980_v31  ;;  %5386 = vadd.xlane.f32.xlu1 %v5195_v20  ;;  %v4936_v34 = vsel %vm4457_vm13, %v4935_v4, %v4931_v19  ;;  %v5210_v7 = vmul.f32 %v10642_v36, %v10102_v10  ;;  %v5019_v31 = vrot.slane %v10694_v28, %v9929_v26 }
 0x3b4   :  { %v4223_v0 = vpop.xlane.xlu1 %4222  ;;  %v4990_v38 = vsel %vm4422_vm8, %v4989_v18, %v4985_v42  ;;  %v4941_v25 = vsel %vm4464_vm14, %v4940_v51, %v4936_v34  ;;  %v11512_v18 = vld [vmem:[#allocation31_spill] sm:$0xff] }
 0x3b5   :  { %5404 = vadd.xlane.f32.xlu0 %v5204_v37  ;;  %v4994_v60 = vrot.slane %v4223_v0, %v9873_v13  ;;  %v4946_v59 = vsel %vm4471_vm15, %v4945_v63, %v4941_v25 }
 0x3b6   :  { %v10728_v29 = vpop.xlane.xlu0 %5264  ;;  %v5037_v0 = vsel %vm11216_vm0, %v4946_v59, %v11512_v18  ;;  %vm11571_vm0 = vcmask 1043459  }
 0x3b7   :  { %v4995_v33 = vsel %vm4429_vm9, %v4994_v60, %v4990_v38  ;;  %5390 = vadd.xlane.f32.xlu1 %v5197_v45  ;;  %v5205_v60 = vmul.f32 %v11513_v55, %v10642_v36  ;;  %v5656_v50 = vrot.slane %v10728_v29, %v9791_v40 }
 0x3b8   :  { %v4227_v14 = vpop.xlane.xlu1 %4226  ;;  %v5000_v5 = vsel %vm4436_vm10, %v4999_v47, %v4995_v33  ;;  %v5214_v33 = vmul.f32 %v10208_v15, %v11514_v22 }
 0x3b9   :  { %5408 = vadd.xlane.f32.xlu0 %v5206_v57  ;;  %v5004_v39 = vrot.slane %v4227_v14, %v9896_v41  ;;  %v5647_v57 = vrot.slane %v10711_v49, %v9785_v30 }
 0x3ba   :  { %v5269_v61 = vpop.xlane.xlu0 %5268 }
 0x3bb   :  { %v5005_v43 = vsel %vm4443_vm11, %v5004_v39, %v5000_v5  ;;  %5394 = vadd.xlane.f32.xlu1 %v5199_v54  ;;  %v11515_v54 = vld [vmem:[#allocation57_spill] sm:$0xff]  ;;  %v11517_v5 = vld [vmem:[#allocation64_spill] sm:$0xff] }
 0x3bc   :  { %v4231_v53 = vpop.xlane.xlu1 %4230  ;;  %v5010_v37 = vsel %vm11214_vm12, %v5009_v21, %v5005_v43  ;;  %vm11215_vm12 = vcmask 1047559   ;;  %v5207_v49 = vmul.f32 %v11515_v54, %v10642_v36  ;;  %v5666_v43 = vrot.slane %v5269_v61, %v9812_v44  ;;  %v11518_v21 = vld [vmem:[#allocation58_spill] sm:$0xff]  ;;  %v11526_v54 = vld [vmem:[#allocation8_spill] sm:$0xff] }
 0x3bd   :  { %5412 = vadd.xlane.f32.xlu0 %v5208_v35  ;;  %v5014_v20 = vrot.slane %v4231_v53, %v9919_v16  ;;  %v11516_v35 = vld [vmem:[#allocation74_spill] sm:$0xff]  ;;  %v5209_v53 = vmul.f32 %v11518_v21, %v10642_v36  ;;  %v11529_v21 = vld [vmem:[#allocation11_spill] sm:$0xff] }
 0x3be   :  { %v5273_v17 = vpop.xlane.xlu0 %5272  ;;  %v5229_v19 = vmul.f32 %v11517_v5, %v11516_v35 }
 0x3bf   :  { %v5015_v46 = vsel %vm4457_vm13, %v5014_v20, %v5010_v37  ;;  %5398 = vadd.xlane.f32.xlu1 %v5201_v32  ;;  %v11519_v20 = vld [vmem:[#allocation77_spill] sm:$0xff]  ;;  %v5676_v37 = vrot.slane %v5273_v17, %v9835_v62 }
 0x3c0   :  { %v4235_v58 = vpop.xlane.xlu1 %4234  ;;  %v5020_v56 = vsel %vm4464_vm14, %v5019_v31, %v5015_v46  ;;  %v11520_v31 = vld [vmem:[#allocation59_spill] sm:$0xff] }
 0x3c1   :  { %5416 = vadd.xlane.f32.xlu0 %v5210_v7  ;;  %v5024_v10 = vrot.slane %v4235_v58, %v9941_v12  ;;  %v5230_v7 = vmul.f32 %v11516_v35, %v11519_v20  ;;  %v5211_v58 = vmul.f32 %v11520_v31, %v10642_v36  ;;  %v11531_v31 = vld [vmem:[#allocation66_spill] sm:$0xff] }
 0x3c2   :  { %v5277_v42 = vpop.xlane.xlu0 %5276 }
 0x3c3   :  { %5402 = vadd.xlane.f32.xlu1 %v5203_v24  ;;  %v5025_v28 = vsel %vm4471_vm15, %v5024_v10, %v5020_v56  ;;  %v11521_v10 = vld [vmem:[#allocation25_spill] sm:$0xff] }
 0x3c4   :  { %v5263_v45 = vpop.xlane.xlu1 %5262  ;;  %v5039_v48 = vsel %vm11215_vm12, %v5025_v28, %v5037_v0  ;;  %v5686_v28 = vrot.slane %v5277_v42, %v9858_v8  ;;  %vm11527_vm12 = vcmask 851712  }
 0x3c5   :  { %5420 = vadd.xlane.f32.xlu0 %v5212_v1  ;;  %v5651_v11 = vrot.slane %v5263_v45, %v9779_v9  ;;  %5041 = vst [vmem:[#allocation2] sm:$0xff] %v5039_v48  ;;  %v11522_v1 = vld [vmem:[#allocation10_spill] sm:$0xff]  ;;  %v11523_v45 = vld [vmem:[#allocation81_spill] sm:$0xff] }
 0x3c6   :  { %v5281_v38 = vpop.xlane.xlu0 %5280  ;;  %v5245_v56 = vmul.f32 %v11522_v1, %v11521_v10  ;;  %v5213_v48 = vmul.f32 %v11523_v45, %v10208_v15  ;;  %v11532_v1 = vld [vmem:[#allocation84_spill] sm:$0xff] }
 0x3c7   :  { %v5652_v4 = vsel %vm4373_vm1, %v5651_v11, %v5647_v57  ;;  %5406 = vadd.xlane.f32.xlu1 %v5205_v60  ;;  %v11524_v60 = vld [vmem:[#allocation67_spill] sm:$0xff]  ;;  %v5696_v11 = vrot.slane %v5281_v38, %v9881_v23 }
 0x3c8   :  { %v5267_v47 = vpop.xlane.xlu1 %5266  ;;  %v5657_v14 = vsel %vm4380_vm2, %v5656_v50, %v5652_v4  ;;  %v5231_v57 = vmul.f32 %v11524_v60, %v11516_v35  ;;  %v11525_v50 = vld [vmem:[#allocation75_spill] sm:$0xff] }
 0x3c9   :  { %5424 = vadd.xlane.f32.xlu0 %v5214_v33  ;;  %v5661_v3 = vrot.slane %v5267_v47, %v9805_v2  ;;  %v5228_v4 = vmul.f32 %v11516_v35, %v11525_v50 }
 0x3ca   :  { %v5285_v39 = vpop.xlane.xlu0 %5284 }
 0x3cb   :  { %v5662_v29 = vsel %vm4387_vm3, %v5661_v3, %v5657_v14  ;;  %5410 = vadd.xlane.f32.xlu1 %v5207_v49  ;;  %v5217_v49 = vmul.f32 %v11526_v54, %v10208_v15  ;;  %v5706_v3 = vrot.slane %v5285_v39, %v9904_v6 }
 0x3cc   :  { %v5271_v34 = vpop.xlane.xlu1 %5270  ;;  %v5667_v63 = vsel %vm4394_vm4, %v5666_v43, %v5662_v29  ;;  %v11528_v43 = vld [vmem:[#allocation82_spill] sm:$0xff] }
 0x3cd   :  { %5454 = vadd.xlane.f32.xlu0 %v5229_v19  ;;  %v5671_v32 = vrot.slane %v5271_v34, %v9827_v52  ;;  %v5215_v29 = vmul.f32 %v11528_v43, %v10208_v15 }
 0x3ce   :  { %v5289_v51 = vpop.xlane.xlu0 %5288 }
 0x3cf   :  { %v5672_v61 = vsel %vm4401_vm5, %v5671_v32, %v5667_v63  ;;  %5414 = vadd.xlane.f32.xlu1 %v5209_v53  ;;  %v5247_v53 = vmul.f32 %v11529_v21, %v11521_v10  ;;  %v5716_v32 = vrot.slane %v5289_v51, %v9929_v26 }
 0x3d0   :  { %v5275_v46 = vpop.xlane.xlu1 %5274  ;;  %v5677_v25 = vsel %vm4408_vm6, %v5676_v37, %v5672_v61  ;;  %v11530_v37 = vld [vmem:[#allocation16_spill] sm:$0xff] }
 0x3d1   :  { %5456 = vadd.xlane.f32.xlu0 %v5230_v7  ;;  %v5681_v59 = vrot.slane %v5275_v46, %v9850_v27  ;;  %v5244_v61 = vmul.f32 %v11521_v10, %v11530_v37 }
 0x3d2   :  { %v5293_v24 = vpop.xlane.xlu0 %5292 }
 0x3d3   :  { %v5682_v17 = vsel %vm4415_vm7, %v5681_v59, %v5677_v25  ;;  %5418 = vadd.xlane.f32.xlu1 %v5211_v58  ;;  %v5233_v58 = vmul.f32 %v11531_v31, %v11516_v35 }
 0x3d4   :  { %v5279_v18 = vpop.xlane.xlu1 %5278  ;;  %v5687_v0 = vsel %vm4422_vm8, %v5686_v28, %v5682_v17  ;;  %v5726_v28 = vrot.slane %v5293_v24, %v9785_v30 }
 0x3d5   :  { %5486 = vadd.xlane.f32.xlu0 %v5245_v56  ;;  %v5691_v36 = vrot.slane %v5279_v18, %v9873_v13  ;;  %v5216_v56 = vmul.f32 %v10208_v15, %v11532_v1 }
 0x3d6   :  { %v5297_v55 = vpop.xlane.xlu0 %5296 }
 0x3d7   :  { %v5692_v42 = vsel %vm4429_vm9, %v5691_v36, %v5687_v0  ;;  %5422 = vadd.xlane.f32.xlu1 %v5213_v48  ;;  %v11533_v0 = vld [vmem:[#allocation65_spill] sm:$0xff]  ;;  %v5735_v48 = vrot.slane %v5297_v55, %v9791_v40 }
 0x3d8   :  { %v5283_v22 = vpop.xlane.xlu1 %5282  ;;  %v5697_v33 = vsel %vm4436_vm10, %v5696_v11, %v5692_v42  ;;  %v5219_v45 = vmul.f32 %v11533_v0, %v10208_v15  ;;  %v11534_v11 = vld [vmem:[#allocation18_spill] sm:$0xff] }
 0x3d9   :  { %5458 = vadd.xlane.f32.xlu0 %v5231_v57  ;;  %v5701_v47 = vrot.slane %v5283_v22, %v9896_v41  ;;  %v5246_v42 = vmul.f32 %v11521_v10, %v11534_v11 }
 0x3da   :  { %v5301_v14 = vpop.xlane.xlu0 %5300 }
 0x3db   :  { %v5702_v38 = vsel %vm4443_vm11, %v5701_v47, %v5697_v33  ;;  %5452 = vadd.xlane.f32.xlu1 %v5228_v4  ;;  %v11535_v33 = vld [vmem:[#allocation12_spill] sm:$0xff]  ;;  %v5745_v4 = vrot.slane %v5301_v14, %v9812_v44 }
 0x3dc   :  { %v5287_v5 = vpop.xlane.xlu1 %5286  ;;  %v5707_v19 = vsel %vm11527_vm12, %v5706_v3, %v5702_v38  ;;  %v5249_v50 = vmul.f32 %v11535_v33, %v11521_v10 }
 0x3dd   :  { %5430 = vadd.xlane.f32.xlu0 %v5217_v49  ;;  %v5711_v34 = vrot.slane %v5287_v5, %v9919_v16  ;;  %v11536_v49 = vld [vmem:[#allocation78_spill] sm:$0xff] }
 0x3de   :  { %v5305_v63 = vpop.xlane.xlu0 %5304  ;;  %v5232_v3 = vmul.f32 %v11516_v35, %v11536_v49 }
 0x3df   :  { %v5712_v39 = vsel %vm4457_vm13, %v5711_v34, %v5707_v19  ;;  %5426 = vadd.xlane.f32.xlu1 %v5215_v29  ;;  %v11537_v19 = vld [vmem:[#allocation70_spill] sm:$0xff]  ;;  %v5755_v29 = vrot.slane %v5305_v63, %v9835_v62 }
 0x3e0   :  { %v5291_v20 = vpop.xlane.xlu1 %5290  ;;  %v5717_v7 = vsel %vm4464_vm14, %v5716_v32, %v5712_v39  ;;  %v5235_v43 = vmul.f32 %v11537_v19, %v11516_v35 }
 0x3e1   :  { %5490 = vadd.xlane.f32.xlu0 %v5247_v53  ;;  %v5721_v46 = vrot.slane %v5291_v20, %v9941_v12  ;;  %v11538_v53 = vld [vmem:[#allocation85_spill] sm:$0xff] }
 0x3e2   :  { %v5309_v25 = vpop.xlane.xlu0 %5308  ;;  %v5218_v32 = vmul.f32 %v10208_v15, %v11538_v53 }
 0x3e3   :  { %v10843_v59 = vsel %vm4471_vm15, %v5721_v46, %v5717_v7  ;;  %5484 = vadd.xlane.f32.xlu1 %v5244_v61  ;;  %v11539_v7 = vld [vmem:[#allocation60_spill] sm:$0xff]  ;;  %v5765_v61 = vrot.slane %v5309_v25, %v9858_v8 }
 0x3e4   :  { %v5295_v51 = vpop.xlane.xlu1 %5294  ;;  %v5221_v37 = vmul.f32 %v11539_v7, %v10208_v15 }
 0x3e5   :  { %5462 = vadd.xlane.f32.xlu0 %v5233_v58  ;;  %v5730_v17 = vrot.slane %v5295_v51, %v9779_v9  ;;  %v11540_v58 = vld [vmem:[#allocation20_spill] sm:$0xff] }
 0x3e6   :  { %v5313_v18 = vpop.xlane.xlu0 %5312  ;;  %v5248_v51 = vmul.f32 %v11521_v10, %v11540_v58  ;;  %v11550_v58 = vld [vmem:[#allocation21_spill] sm:$0xff] }
 0x3e7   :  { %v5731_v36 = vsel %vm4373_vm1, %v5730_v17, %v5726_v28  ;;  %5428 = vadd.xlane.f32.xlu1 %v5216_v56  ;;  %v11541_v28 = vld [vmem:[#allocation13_spill] sm:$0xff]  ;;  %v5775_v0 = vrot.slane %v5313_v18, %v9881_v23 }
 0x3e8   :  { %v5299_v60 = vpop.xlane.xlu1 %5298  ;;  %v5736_v57 = vsel %vm4380_vm2, %v5735_v48, %v5731_v36  ;;  %v5251_v17 = vmul.f32 %v11541_v28, %v11521_v10  ;;  %v11542_v36 = vld [vmem:[#allocation17_spill] sm:$0xff] }
 0x3e9   :  { %5434 = vadd.xlane.f32.xlu0 %v5219_v45  ;;  %v5740_v24 = vrot.slane %v5299_v60, %v9805_v2  ;;  %v5234_v60 = vmul.f32 %v11516_v35, %v11542_v36  ;;  %v11552_v36 = vld [vmem:[#allocation62_spill] sm:$0xff] }
 0x3ea   :  { %v5317_v22 = vpop.xlane.xlu0 %5316 }
 0x3eb   :  { %v5741_v55 = vsel %vm4387_vm3, %v5740_v24, %v5736_v57  ;;  %5488 = vadd.xlane.f32.xlu1 %v5246_v42  ;;  %v11543_v42 = vld [vmem:[#allocation72_spill] sm:$0xff]  ;;  %v5785_v33 = vrot.slane %v5317_v22, %v9904_v6 }
 0x3ec   :  { %v5303_v47 = vpop.xlane.xlu1 %5302  ;;  %v5746_v54 = vsel %vm4394_vm4, %v5745_v4, %v5741_v55  ;;  %v5237_v24 = vmul.f32 %v11543_v42, %v11516_v35  ;;  %v11544_v55 = vld [vmem:[#allocation69_spill] sm:$0xff] }
 0x3ed   :  { %5494 = vadd.xlane.f32.xlu0 %v5249_v50  ;;  %v5750_v38 = vrot.slane %v5303_v47, %v9827_v52  ;;  %v5220_v47 = vmul.f32 %v10208_v15, %v11544_v55 }
 0x3ee   :  { %v5321_v5 = vpop.xlane.xlu0 %5320 }
 0x3ef   :  { %v5751_v14 = vsel %vm4401_vm5, %v5750_v38, %v5746_v54  ;;  %5460 = vadd.xlane.f32.xlu1 %v5232_v3  ;;  %v11545_v3 = vld [vmem:[#allocation61_spill] sm:$0xff]  ;;  %v5795_v19 = vrot.slane %v5321_v5, %v9929_v26 }
 0x3f0   :  { %v5307_v34 = vpop.xlane.xlu1 %5306  ;;  %v5756_v21 = vsel %vm4408_vm6, %v5755_v29, %v5751_v14  ;;  %v5223_v38 = vmul.f32 %v11545_v3, %v10208_v15  ;;  %v11546_v14 = vld [vmem:[#allocation22_spill] sm:$0xff] }
 0x3f1   :  { %5466 = vadd.xlane.f32.xlu0 %v5235_v43  ;;  %v5760_v39 = vrot.slane %v5307_v34, %v9850_v27  ;;  %v5250_v34 = vmul.f32 %v11521_v10, %v11546_v14 }
 0x3f2   :  { %v5325_v20 = vpop.xlane.xlu0 %5324 }
 0x3f3   :  { %v5761_v63 = vsel %vm4415_vm7, %v5760_v39, %v5756_v21  ;;  %5432 = vadd.xlane.f32.xlu1 %v5218_v32  ;;  %v11547_v32 = vld [vmem:[#allocation9_spill] sm:$0xff] }
 0x3f4   :  { %v5311_v46 = vpop.xlane.xlu1 %5310  ;;  %v5766_v31 = vsel %vm4422_vm8, %v5765_v61, %v5761_v63  ;;  %v5253_v39 = vmul.f32 %v11547_v32, %v11521_v10  ;;  %v5805_v63 = vrot.slane %v5325_v20, %v9785_v30  ;;  %v11558_v32 = vld [vmem:[#allocation63_spill] sm:$0xff] }
 0x3f5   :  { %5438 = vadd.xlane.f32.xlu0 %v5221_v37  ;;  %v5770_v1 = vrot.slane %v5311_v46, %v9873_v13  ;;  %v11549_v37 = vld [vmem:[#allocation19_spill] sm:$0xff] }
 0x3f6   :  { %v5329_v56 = vpop.xlane.xlu0 %5328  ;;  %v5236_v61 = vmul.f32 %v11516_v35, %v11549_v37 }
 0x3f7   :  { %v5771_v25 = vsel %vm4429_vm9, %v5770_v1, %v5766_v31  ;;  %5492 = vadd.xlane.f32.xlu1 %v5248_v51  ;;  %v5239_v51 = vmul.f32 %v11550_v58, %v11516_v35  ;;  %v5814_v1 = vrot.slane %v5329_v56, %v9791_v40 }
 0x3f8   :  { %v5315_v45 = vpop.xlane.xlu1 %5314  ;;  %v5776_v48 = vsel %vm4436_vm10, %v5775_v0, %v5771_v25 }
 0x3f9   :  { %5498 = vadd.xlane.f32.xlu0 %v5251_v17  ;;  %v5780_v57 = vrot.slane %v5315_v45, %v9896_v41 }
 0x3fa   :  { %v5333_v11 = vpop.xlane.xlu0 %5332 }
 0x3fb   :  { %v5781_v18 = vsel %vm4443_vm11, %v5780_v57, %v5776_v48  ;;  %5464 = vadd.xlane.f32.xlu1 %v5234_v60  ;;  %v5824_v20 = vrot.slane %v5333_v11, %v9812_v44  ;;  %v11551_v48 = vld [vmem:[#allocation68_spill] sm:$0xff] }
 0x3fc   :  { %v5319_v50 = vpop.xlane.xlu1 %5318  ;;  %v5786_v4 = vsel %vm11527_vm12, %v5785_v33, %v5781_v18  ;;  %vm11548_vm12 = vcmask 1041409   ;;  %v11553_v60 = vld [vmem:[#allocation24_spill] sm:$0xff]  ;;  %v11554_v33 = vld [vmem:[#allocation26_spill] sm:$0xff] }
 0x3fd   :  { %5470 = vadd.xlane.f32.xlu0 %v5237_v24  ;;  %v5790_v54 = vrot.slane %v5319_v50, %v9919_v16  ;;  %v5252_v57 = vmul.f32 %v11521_v10, %v11553_v60  ;;  %v5255_v18 = vmul.f32 %v11554_v33, %v11521_v10 }
 0x3fe   :  { %v5337_v49 = vpop.xlane.xlu0 %5336 }
 0x3ff   :  { %v5791_v22 = vsel %vm4457_vm13, %v5790_v54, %v5786_v4  ;;  %5436 = vadd.xlane.f32.xlu1 %v5220_v47  ;;  %v5834_v11 = vrot.slane %v5337_v49, %v9835_v62 }
 0x400   :  { %v5323_v43 = vpop.xlane.xlu1 %5322  ;;  %v5796_v29 = vsel %vm4464_vm14, %v5795_v19, %v5791_v22  ;;  %v11555_v19 = vld [vmem:[#allocation86_spill] sm:$0xff]  ;;  %v11556_v22 = vld [vmem:[#allocation76_spill] sm:$0xff] }
 0x401   :  { %5442 = vadd.xlane.f32.xlu0 %v5223_v38  ;;  %v5800_v21 = vrot.slane %v5323_v43, %v9941_v12 }
 0x402   :  { %v5341_v53 = vpop.xlane.xlu0 %5340 }
 0x403   :  { %v5801_v15 = vsel %vm4471_vm15, %v5800_v21, %v5796_v29  ;;  %5496 = vadd.xlane.f32.xlu1 %v5250_v34  ;;  %v5844_v3 = vrot.slane %v5341_v53, %v9858_v8  ;;  %v11557_v21 = vld [vmem:[#allocation71_spill] sm:$0xff] }
 0x404   :  { %v10910_v5 = vsel %vm11548_vm12, %v5801_v15, %v10843_v59  ;;  %v5327_v7 = vpop.xlane.xlu1 %5326  ;;  %vm11561_vm12 = vcmask 851712  }
 0x405   :  { %5502 = vadd.xlane.f32.xlu0 %v5253_v39  ;;  %v5809_v46 = vrot.slane %v5327_v7, %v9779_v9 }
 0x406   :  { %v5345_v31 = vpop.xlane.xlu0 %5344 }
 0x407   :  { %v5810_v28 = vsel %vm4373_vm1, %v5809_v46, %v5805_v63  ;;  %5468 = vadd.xlane.f32.xlu1 %v5236_v61  ;;  %v5854_v14 = vrot.slane %v5345_v31, %v9881_v23  ;;  %v11559_v63 = vld [vmem:[#allocation87_spill] sm:$0xff] }
 0x408   :  { %v5331_v59 = vpop.xlane.xlu1 %5330  ;;  %v5815_v17 = vsel %vm4380_vm2, %v5814_v1, %v5810_v28  ;;  %v11560_v46 = vld [vmem:[#allocation27_spill] sm:$0xff] }
 0x409   :  { %5474 = vadd.xlane.f32.xlu0 %v5239_v51  ;;  %v5819_v0 = vrot.slane %v5331_v59, %v9805_v2 }
 0x40a   :  { %v5349_v25 = vpop.xlane.xlu0 %5348 }
 0x40b   :  { %v5820_v45 = vsel %vm4387_vm3, %v5819_v0, %v5815_v17  ;;  %5440 = vadd.xlane.f32.xlu1 %v11551_v48  ;;  %v5864_v37 = vrot.slane %v5349_v25, %v9904_v6  ;;  %v11562_v17 = vld [vmem:[#allocation23_spill] sm:$0xff]  ;;  %v11563_v0 = vld [vmem:[#allocation30_spill] sm:$0xff] }
 0x40c   :  { %v5335_v35 = vpop.xlane.xlu1 %5334  ;;  %v5825_v56 = vsel %vm4394_vm4, %v5824_v20, %v5820_v45 }
 0x40d   :  { %5446 = vadd.xlane.f32.xlu0 %v11552_v36  ;;  %v5829_v42 = vrot.slane %v5335_v35, %v9827_v52  ;;  %v11564_v35 = vld [vmem:[#allocation73_spill] sm:$0xff] }
 0x40e   :  { %v5353_v24 = vpop.xlane.xlu0 %5352 }
 0x40f   :  { %v5830_v50 = vsel %vm4401_vm5, %v5829_v42, %v5825_v56  ;;  %5500 = vadd.xlane.f32.xlu1 %v5252_v57  ;;  %v5874_v28 = vrot.slane %v5353_v24, %v9929_v26 }
 0x410   :  { %v5339_v4 = vpop.xlane.xlu1 %5338  ;;  %v5835_v55 = vsel %vm4408_vm6, %v5834_v11, %v5830_v50  ;;  %v11566_v11 = vld [vmem:[#allocation28_spill] sm:$0xff] }
 0x411   :  { %5506 = vadd.xlane.f32.xlu0 %v5255_v18  ;;  %v5839_v47 = vrot.slane %v5339_v4, %v9850_v27 }
 0x412   :  { %v5357_v54 = vpop.xlane.xlu0 %5356 }
 0x413   :  { %v5840_v38 = vsel %vm4415_vm7, %v5839_v47, %v5835_v55  ;;  %5472 = vadd.xlane.f32.xlu1 %v11555_v19  ;;  %v5884_v57 = vrot.slane %v5357_v54, %v9785_v30  ;;  %v11567_v54 = vld [vmem:[#allocation14_spill] sm:$0xff] }
 0x414   :  { %v5343_v10 = vpop.xlane.xlu1 %5342  ;;  %v5845_v49 = vsel %vm4422_vm8, %v5844_v3, %v5840_v38 }
 0x415   :  { %5478 = vadd.xlane.f32.xlu0 %v11556_v22  ;;  %v5849_v43 = vrot.slane %v5343_v10, %v9873_v13 }
 0x416   :  { %v5361_v29 = vpop.xlane.xlu0 %5360 }
 0x417   :  { %v5850_v34 = vsel %vm4429_vm9, %v5849_v43, %v5845_v49  ;;  %5444 = vadd.xlane.f32.xlu1 %v11557_v21  ;;  %v5893_v33 = vrot.slane %v5361_v29, %v9791_v40  ;;  %v11568_v29 = vld [vmem:[#allocation15_spill] sm:$0xff] }
 0x418   :  { %v5347_v53 = vpop.xlane.xlu1 %5346  ;;  %v5855_v39 = vsel %vm4436_vm10, %v5854_v14, %v5850_v34 }
 0x419   :  { %5450 = vadd.xlane.f32.xlu0 %v11558_v32  ;;  %v5859_v15 = vrot.slane %v5347_v53, %v9896_v41 }
 0x41a   :  { %v5365_v7 = vpop.xlane.xlu0 %5364 }
 0x41b   :  { %v5860_v61 = vsel %vm4443_vm11, %v5859_v15, %v5855_v39  ;;  %5504 = vadd.xlane.f32.xlu1 %v11559_v63  ;;  %v11569_v15 = vld [vmem:[#allocation29_spill] sm:$0xff] }
 0x41c   :  { %v5351_v31 = vpop.xlane.xlu1 %5350  ;;  %v5865_v58 = vsel %vm11561_vm12, %v5864_v37, %v5860_v61  ;;  %vm11565_vm12 = vcmask 1042434  }
 0x41d   :  { %5510 = vadd.xlane.f32.xlu0 %v11560_v46  ;;  %v5869_v51 = vrot.slane %v5351_v31, %v9919_v16 }
 0x41e   :  { %v5369_v1 = vpop.xlane.xlu0 %5368 }
 0x41f   :  { %v5870_v59 = vsel %vm4457_vm13, %v5869_v51, %v5865_v58  ;;  %5476 = vadd.xlane.f32.xlu1 %v11562_v17  ;;  %v5913_v49 = vrot.slane %v5369_v1, %v9835_v62 }
 0x420   :  { %v5355_v25 = vpop.xlane.xlu1 %5354  ;;  %v5875_v20 = vsel %vm4464_vm14, %v5874_v28, %v5870_v59 }
 0x421   :  { %5512 = vadd.xlane.f32.xlu0 %v11563_v0  ;;  %v5879_v45 = vrot.slane %v5355_v25, %v9941_v12 }
 0x422   :  { %v5373_v48 = vpop.xlane.xlu0 %5372 }
 0x423   :  { %v5880_v36 = vsel %vm4471_vm15, %v5879_v45, %v5875_v20  ;;  %5448 = vadd.xlane.f32.xlu1 %v11564_v35  ;;  %v5923_v53 = vrot.slane %v5373_v48, %v9858_v8 }
 0x424   :  { %v6277_v56 = vsel %vm11565_vm12, %v5880_v36, %v10910_v5  ;;  %v5359_v60 = vpop.xlane.xlu1 %5358  ;;  %v5903_v5 = vrot.slane %v5365_v7, %v9812_v44  ;;  %vm11570_vm12 = vcmask 851712  }
 0x425   :  { %v5888_v42 = vrot.slane %v5359_v60, %v9779_v9 }
 0x426   :  { %v5377_v24 = vpop.xlane.xlu0 %5376 }
 0x427   :  { %v5889_v18 = vsel %vm4373_vm1, %v5888_v42, %v5884_v57  ;;  %5508 = vadd.xlane.f32.xlu1 %v11566_v11  ;;  %v5933_v46 = vrot.slane %v5377_v24, %v9881_v23 }
 0x428   :  { %v5363_v50 = vpop.xlane.xlu1 %5362  ;;  %v5894_v4 = vsel %vm4380_vm2, %v5893_v33, %v5889_v18 }
 0x429   :  { %v5898_v55 = vrot.slane %v5363_v50, %v9805_v2 }
 0x42a   :  { %v5381_v47 = vpop.xlane.xlu0 %5380 }
 0x42b   :  { %v5899_v3 = vsel %vm4387_vm3, %v5898_v55, %v5894_v4  ;;  %5480 = vadd.xlane.f32.xlu1 %v11567_v54  ;;  %v5943_v59 = vrot.slane %v5381_v47, %v9904_v6 }
 0x42c   :  { %v5367_v38 = vpop.xlane.xlu1 %5366  ;;  %v5904_v19 = vsel %vm4394_vm4, %v5903_v5, %v5899_v3 }
 0x42d   :  { %v5908_v22 = vrot.slane %v5367_v38, %v9827_v52 }
 0x42e   :  { %v5385_v10 = vpop.xlane.xlu0 %5384 }
 0x42f   :  { %v5909_v43 = vsel %vm4401_vm5, %v5908_v22, %v5904_v19  ;;  %5482 = vadd.xlane.f32.xlu1 %v11568_v29  ;;  %v5953_v48 = vrot.slane %v5385_v10, %v9929_v26 }
 0x430   :  { %v5371_v14 = vpop.xlane.xlu1 %5370  ;;  %v5914_v34 = vsel %vm4408_vm6, %v5913_v49, %v5909_v43 }
 0x431   :  { %v5918_v21 = vrot.slane %v5371_v14, %v9850_v27 }
 0x432   :  { %v5389_v32 = vpop.xlane.xlu0 %5388 }
 0x433   :  { %v5919_v39 = vsel %vm4415_vm7, %v5918_v21, %v5914_v34  ;;  %5514 = vadd.xlane.f32.xlu1 %v11569_v15 }
 0x434   :  { %v5375_v7 = vpop.xlane.xlu1 %5374  ;;  %v5924_v37 = vsel %vm4422_vm8, %v5923_v53, %v5919_v39 }
 0x435   :  { %v5928_v61 = vrot.slane %v5375_v7, %v9873_v13 }
 0x436   :  { %v5393_v63 = vpop.xlane.xlu0 %5392 }
 0x437   :  { %v5929_v31 = vsel %vm4429_vm9, %v5928_v61, %v5924_v37 }
 0x438   :  { %v5379_v58 = vpop.xlane.xlu1 %5378  ;;  %v5934_v51 = vsel %vm4436_vm10, %v5933_v46, %v5929_v31 }
 0x439   :  { %v5938_v1 = vrot.slane %v5379_v58, %v9896_v41 }
 0x43a   :  { %v5397_v28 = vpop.xlane.xlu0 %5396 }
 0x43b   :  { %v5939_v17 = vsel %vm4443_vm11, %v5938_v1, %v5934_v51 }
 0x43c   :  { %v5383_v0 = vpop.xlane.xlu1 %5382  ;;  %v5944_v25 = vsel %vm11570_vm12, %v5943_v59, %v5939_v17 }
 0x43d   :  { %v5948_v20 = vrot.slane %v5383_v0, %v9919_v16 }
 0x43e   :  { %v5401_v45 = vpop.xlane.xlu0 %5400 }
 0x43f   :  { %v5949_v36 = vsel %vm4457_vm13, %v5948_v20, %v5944_v25 }
 0x440   :  { %v5387_v35 = vpop.xlane.xlu1 %5386  ;;  %v5954_v60 = vsel %vm4464_vm14, %v5953_v48, %v5949_v36 }
 0x441   :  { %v5958_v57 = vrot.slane %v5387_v35, %v9941_v12 }
 0x442   :  { %v5405_v42 = vpop.xlane.xlu0 %5404 }
 0x443   :  { %v5959_v24 = vsel %vm4471_vm15, %v5958_v57, %v5954_v60 }
 0x444   :  { %v6278_v33 = vsel %vm11571_vm0, %v5959_v24, %v6277_v56  ;;  %v5391_v18 = vpop.xlane.xlu1 %5390 }
 0x445   :  { %7311 = shalt.err (!%p7308_p4)
}
 0x446   :  { %s7312_s4 = scalar_lea.hbm %s11198_s7, 128 }
 0x447   :  { %p7313_p5 = scmp.ne.s32.totalorder %s11198_s7, %s7312_s4  ;;  %p7316_p6 = scmp.lt.u32.totalorder %s7312_s4, %s11198_s7 }
 0x449   :  { %p7318_p7 = pnand %p7316_p6, %p7313_p5 }
 0x44b   :  { %7321 = shalt.err (!%p7318_p7)
}
 0x44c   :  { %6296 = dma.vmem_to_hbm [thread:$0]  %s6294_s22, 128, %s11198_s7, [#allocation3]   ;;  %v5963_v56 = vrot.slane %v5389_v32, %v9785_v30  ;;  %v5967_v11 = vrot.slane %v5391_v18, %v9779_v9  ;;  %v5409_v50 = vpop.xlane.xlu0 %5408  ;;  %v5972_v4 = vrot.slane %v5393_v63, %v9791_v40  ;;  %v5395_v47 = vpop.xlane.xlu1 %5394  ;;  %v5982_v38 = vrot.slane %v5397_v28, %v9812_v44  ;;  %vm11572_vm0 = vmmov %vm11570_vm12 }
 0x44d   :  { %v5977_v3 = vrot.slane %v5395_v47, %v9805_v2  ;;  %v5992_v29 = vrot.slane %v5401_v45, %v9835_v62  ;;  %v6002_v39 = vrot.slane %v5405_v42, %v9858_v8  ;;  %v6012_v46 = vrot.slane %v5409_v50, %v9881_v23  ;;  %s7352_s7 = smov [#allocation4]  }
 0x44e   :  { %v5968_v55 = vsel %vm4373_vm1, %v5967_v11, %v5963_v56  ;;  %vm11573_vm12 = vcmask 1044484   ;;  %s6303_s9 = sshll.u32 %s7352_s7, 4  ;;  %s6304_s9 = int_to_ptr.vmem [resolvable:$true] %s6303_s9 }
 0x44f   :  { %v5973_v5 = vsel %vm4380_vm2, %v5972_v4, %v5968_v55  ;;  %s7322_s10 = scalar_lea.vmem %s6304_s9, 128  ;;  %p7327_p9 = scmp.lt.s32.totalorder %s6304_s9, %s6304_s9 }
 0x450   :  { %v5413_v54 = vpop.xlane.xlu0 %5412  ;;  %v5978_v19 = vsel %vm4387_vm3, %v5977_v3, %v5973_v5  ;;  %v5399_v22 = vpop.xlane.xlu1 %5398  ;;  %p7323_p8 = scmp.ne.s32.totalorder %s6304_s9, %s7322_s10  ;;  %p7328_p10 = scmp.lt.s32.totalorder %s7322_s10, %s7322_s10 }
 0x451   :  { %v5983_v10 = vsel %vm4394_vm4, %v5982_v38, %v5978_v19  ;;  %v5987_v49 = vrot.slane %v5399_v22, %v9827_v52  ;;  %v6022_v59 = vrot.slane %v5413_v54, %v9904_v6 }
 0x452   :  { %p7329_p11 = por %p7328_p10, %p7327_p9 }
 0x453   :  { %v5988_v14 = vsel %vm4401_vm5, %v5987_v49, %v5983_v10 }
 0x454   :  { %v5417_v43 = vpop.xlane.xlu0 %5416  ;;  %v5403_v34 = vpop.xlane.xlu1 %5402  ;;  %v5993_v21 = vsel %vm4408_vm6, %v5992_v29, %v5988_v14  ;;  %p7330_p12 = pnand %p7329_p11, %p7323_p8 }
 0x455   :  { %v5997_v32 = vrot.slane %v5403_v34, %v9850_v27  ;;  %v6032_v48 = vrot.slane %v5417_v43, %v9929_v26 }
 0x457   :  { %v5998_v15 = vsel %vm4415_vm7, %v5997_v32, %v5993_v21 }
 0x458   :  { %v5421_v53 = vpop.xlane.xlu0 %5420  ;;  %v5407_v7 = vpop.xlane.xlu1 %5406  ;;  %v6003_v37 = vsel %vm4422_vm8, %v6002_v39, %v5998_v15 }
 0x459   :  { %v6007_v61 = vrot.slane %v5407_v7, %v9873_v13  ;;  %v6042_v11 = vrot.slane %v5421_v53, %v9785_v30 }
 0x45b   :  { %v6008_v31 = vsel %vm4429_vm9, %v6007_v61, %v6003_v37 }
 0x45c   :  { %v5425_v63 = vpop.xlane.xlu0 %5424  ;;  %v5411_v58 = vpop.xlane.xlu1 %5410  ;;  %v6013_v51 = vsel %vm4436_vm10, %v6012_v46, %v6008_v31 }
 0x45d   :  { %v6017_v1 = vrot.slane %v5411_v58, %v9896_v41  ;;  %v6051_v55 = vrot.slane %v5425_v63, %v9791_v40 }
 0x45f   :  { %v6018_v17 = vsel %vm4443_vm11, %v6017_v1, %v6013_v51 }
 0x460   :  { %v5455_v28 = vpop.xlane.xlu0 %5454  ;;  %v5415_v0 = vpop.xlane.xlu1 %5414  ;;  %v6023_v25 = vsel %vm11572_vm0, %v6022_v59, %v6018_v17 }
 0x461   :  { %v6027_v20 = vrot.slane %v5415_v0, %v9919_v16  ;;  %v6125_v54 = vrot.slane %v5455_v28, %v9779_v9 }
 0x463   :  { %v6028_v36 = vsel %vm4457_vm13, %v6027_v20, %v6023_v25 }
 0x464   :  { %v5457_v45 = vpop.xlane.xlu0 %5456  ;;  %v5419_v35 = vpop.xlane.xlu1 %5418  ;;  %v6033_v60 = vsel %vm4464_vm14, %v6032_v48, %v6028_v36 }
 0x465   :  { %v6037_v57 = vrot.slane %v5419_v35, %v9941_v12  ;;  %v6130_v19 = vrot.slane %v5457_v45, %v9791_v40 }
 0x467   :  { %v6038_v24 = vsel %vm4471_vm15, %v6037_v57, %v6033_v60 }
 0x468   :  { %v11042_v42 = vpop.xlane.xlu0 %5486  ;;  %v11046_v18 = vsel %vm11573_vm12, %v6038_v24, %v6278_v33  ;;  %v5423_v56 = vpop.xlane.xlu1 %5422 }
 0x469   :  { %v6046_v50 = vrot.slane %v5423_v56, %v9779_v9 }
 0x46b   :  { %v6047_v47 = vsel %vm4373_vm1, %v6046_v50, %v6042_v11 }
 0x46c   :  { %v11050_v4 = vpop.xlane.xlu0 %5458  ;;  %v5453_v5 = vpop.xlane.xlu1 %5452  ;;  %v6052_v3 = vsel %vm4380_vm2, %v6051_v55, %v6047_v47 }
 0x46d   :  { %v6121_v38 = vrot.slane %v5453_v5, %v9785_v30 }
 0x46f   :  { %v6126_v22 = vsel %vm4373_vm1, %v6125_v54, %v6121_v38  ;;  %v6204_v38 = vrot.slane %v11042_v42, %v9779_v9 }
 0x470   :  { %v5431_v33 = vpop.xlane.xlu0 %5430  ;;  %v6131_v10 = vsel %vm4380_vm2, %v6130_v19, %v6126_v22  ;;  %v5427_v49 = vpop.xlane.xlu1 %5426 }
 0x471   :  { %v6056_v43 = vrot.slane %v5427_v49, %v9805_v2  ;;  %v6066_v57 = vrot.slane %v5431_v33, %v9827_v52 }
 0x473   :  { %v6057_v14 = vsel %vm4387_vm3, %v6056_v43, %v6052_v3 }
 0x474   :  { %v5491_v29 = vpop.xlane.xlu0 %5490  ;;  %v5485_v34 = vpop.xlane.xlu1 %5484 }
 0x475   :  { %v6200_v11 = vrot.slane %v5485_v34, %v9785_v30  ;;  %v6135_v30 = vrot.slane %v11050_v4, %v9805_v2  ;;  %v6214_v42 = vrot.slane %v5491_v29, %v9805_v2 }
 0x477   :  { %v6205_v22 = vsel %vm4373_vm1, %v6204_v38, %v6200_v11  ;;  %vm11574_vm1 = vmmov %vm11572_vm0 }
 0x478   :  { %v11062_v21 = vpop.xlane.xlu0 %5462  ;;  %v5429_v32 = vpop.xlane.xlu1 %5428 }
 0x479   :  { %v6061_v45 = vrot.slane %v5429_v32, %v9812_v44  ;;  %v6136_v32 = vsel %vm4387_vm3, %v6135_v30, %v6131_v10 }
 0x47b   :  { %v6062_v35 = vsel %vm4394_vm4, %v6061_v45, %v6057_v14 }
 0x47c   :  { %v5435_v53 = vpop.xlane.xlu0 %5434  ;;  %v5489_v39 = vpop.xlane.xlu1 %5488  ;;  %v6067_v56 = vsel %vm4401_vm5, %v6066_v57, %v6062_v35 }
 0x47d   :  { %v6076_v5 = vrot.slane %v5435_v53, %v9850_v27  ;;  %v6209_v3 = vrot.slane %v5489_v39, %v9791_v40 }
 0x47f   :  { %v6210_v14 = vsel %vm4380_vm2, %v6209_v3, %v6205_v22  ;;  %vm11575_vm2 = vcmask 1045509  }
 0x480   :  { %v11064_v15 = vpop.xlane.xlu0 %5494  ;;  %v5461_v7 = vpop.xlane.xlu1 %5460 }
 0x481   :  { %v6140_v33 = vrot.slane %v5461_v7, %v9812_v44 }
 0x483   :  { %v6141_v4 = vsel %vm4394_vm4, %v6140_v33, %v6136_v32 }
 0x484   :  { %v11066_v37 = vpop.xlane.xlu0 %5466  ;;  %v5433_v61 = vpop.xlane.xlu1 %5432 }
 0x485   :  { %v6071_v60 = vrot.slane %v5433_v61, %v9835_v62  ;;  %v6145_v61 = vrot.slane %v11062_v21, %v9827_v52 }
 0x487   :  { %v6072_v50 = vsel %vm4408_vm6, %v6071_v60, %v6067_v56  ;;  %v6155_v60 = vrot.slane %v11066_v37, %v9850_v27 }
 0x488   :  { %v5439_v63 = vpop.xlane.xlu0 %5438  ;;  %v5493_v46 = vpop.xlane.xlu1 %5492  ;;  %v6077_v19 = vsel %vm4415_vm7, %v6076_v5, %v6072_v50 }
 0x489   :  { %v6086_v40 = vrot.slane %v5439_v63, %v9873_v13  ;;  %v6219_v34 = vrot.slane %v5493_v46, %v9812_v44 }
 0x48c   :  { %v11068_v31 = vpop.xlane.xlu0 %5498  ;;  %v5465_v58 = vpop.xlane.xlu1 %5464 }
 0x48d   :  { %v6150_v39 = vrot.slane %v5465_v58, %v9835_v62  ;;  %v6224_v58 = vrot.slane %v11064_v15, %v9827_v52 }
 0x490   :  { %v11070_v51 = vpop.xlane.xlu0 %5470  ;;  %v5437_v1 = vpop.xlane.xlu1 %5436 }
 0x491   :  { %v6081_v55 = vrot.slane %v5437_v1, %v9858_v8  ;;  %v6215_v1 = vsel %vm4387_vm3, %v6214_v42, %v6210_v14  ;;  %vm11576_vm3 = vmmov %vm11572_vm0 }
 0x492   :  { %v6220_v2 = vsel %vm4394_vm4, %v6219_v34, %v6215_v1  ;;  %vm11577_vm4 = vmmov %vm11572_vm0 }
 0x493   :  { %v6082_v49 = vsel %vm4422_vm8, %v6081_v55, %v6077_v19  ;;  %v6225_v57 = vsel %vm4401_vm5, %v6224_v58, %v6220_v2 }
 0x494   :  { %v5443_v28 = vpop.xlane.xlu0 %5442  ;;  %v5497_v59 = vpop.xlane.xlu1 %5496  ;;  %v6087_v7 = vsel %vm4429_vm9, %v6086_v40, %v6082_v49 }
 0x495   :  { %v6096_v10 = vrot.slane %v5443_v28, %v9896_v41  ;;  %v6229_v29 = vrot.slane %v5497_v59, %v9835_v62 }
 0x497   :  { %v6230_v59 = vsel %vm4408_vm6, %v6229_v29, %v6225_v57 }
 0x498   :  { %v11072_v17 = vpop.xlane.xlu0 %5502  ;;  %v5469_v0 = vpop.xlane.xlu1 %5468 }
 0x499   :  { %v6160_v45 = vrot.slane %v5469_v0, %v9858_v8  ;;  %v6234_v0 = vrot.slane %v11068_v31, %v9850_v27 }
 0x49c   :  { %v11074_v25 = vpop.xlane.xlu0 %5474  ;;  %v5441_v20 = vpop.xlane.xlu1 %5440 }
 0x49d   :  { %v6091_v43 = vrot.slane %v5441_v20, %v9881_v23  ;;  %v6146_v20 = vsel %vm4401_vm5, %v6145_v61, %v6141_v4  ;;  %v6175_v22 = vrot.slane %v11074_v25, %v9896_v41  ;;  %vm11578_vm5 = vcmask 1046534  }
 0x49e   :  { %v6151_v21 = vsel %vm4408_vm6, %v6150_v39, %v6146_v20  ;;  %vm11579_vm6 = vcmask 1047559  }
 0x49f   :  { %v6092_v63 = vsel %vm4436_vm10, %v6091_v43, %v6087_v7  ;;  %v6156_v11 = vsel %vm4415_vm7, %v6155_v60, %v6151_v21 }
 0x4a0   :  { %v11077_v48 = vpop.xlane.xlu1 %5500  ;;  %v5447_v36 = vpop.xlane.xlu0 %5446  ;;  %v6097_v35 = vsel %vm4443_vm11, %v6096_v10, %v6092_v63  ;;  %v6161_v50 = vsel %vm4422_vm8, %v6160_v45, %v6156_v11 }
 0x4a1   :  { %v6106_v52 = vrot.slane %v5447_v36, %v9919_v16  ;;  %v6239_v15 = vrot.slane %v11077_v48, %v9858_v8  ;;  %v6165_v8 = vrot.slane %v11070_v51, %v9873_v13  ;;  %v6235_v48 = vsel %vm4415_vm7, %v6234_v0, %v6230_v59 }
 0x4a3   :  { %v6240_v31 = vsel %vm4422_vm8, %v6239_v15, %v6235_v48  ;;  %v6166_v33 = vsel %vm4429_vm9, %v6165_v8, %v6161_v50 }
 0x4a4   :  { %v11082_v24 = vpop.xlane.xlu1 %5472  ;;  %v11088_v47 = vpop.xlane.xlu0 %5506 }
 0x4a5   :  { %v6170_v55 = vrot.slane %v11082_v24, %v9881_v23  ;;  %v6244_v24 = vrot.slane %v11072_v17, %v9873_v13  ;;  %v6254_v17 = vrot.slane %v11088_v47, %v9896_v41 }
 0x4a7   :  { %v6171_v51 = vsel %vm4436_vm10, %v6170_v55, %v6166_v33 }
 0x4a8   :  { %v5445_v54 = vpop.xlane.xlu1 %5444  ;;  %v5479_v53 = vpop.xlane.xlu0 %5478 }
 0x4a9   :  { %v6101_v44 = vrot.slane %v5445_v54, %v9904_v6 }
 0x4ab   :  { %v6102_v28 = vsel %vm11574_vm1, %v6101_v44, %v6097_v35 }
 0x4ac   :  { %v5505_v9 = vpop.xlane.xlu1 %5504  ;;  %v5451_v62 = vpop.xlane.xlu0 %5450  ;;  %v6107_v36 = vsel %vm4457_vm13, %v6106_v52, %v6102_v28 }
 0x4ad   :  { %v6116_v5 = vrot.slane %v5451_v62, %v9941_v12  ;;  %v6249_v3 = vrot.slane %v5505_v9, %v9881_v23  ;;  %v6245_v23 = vsel %vm4429_vm9, %v6244_v24, %v6240_v31  ;;  %v6185_v9 = vrot.slane %v5479_v53, %v9919_v16 }
 0x4af   :  { %v6250_v43 = vsel %vm4436_vm10, %v6249_v3, %v6245_v23 }
 0x4b0   :  { %v5477_v46 = vpop.xlane.xlu1 %5476  ;;  %v5511_v49 = vpop.xlane.xlu0 %5510  ;;  %v6255_v25 = vsel %vm4443_vm11, %v6254_v17, %v6250_v43 }
 0x4b1   :  { %v6180_v30 = vrot.slane %v5477_v46, %v9904_v6  ;;  %v6264_v4 = vrot.slane %v5511_v49, %v9919_v16 }
 0x4b4   :  { %v5449_v56 = vpop.xlane.xlu1 %5448 }
 0x4b5   :  { %v6111_v37 = vrot.slane %v5449_v56, %v9929_v26 }
 0x4b7   :  { %v6112_v27 = vsel %vm4464_vm14, %v6111_v37, %v6107_v36 }
 0x4b8   :  { %v6117_v54 = vsel %vm4471_vm15, %v6116_v5, %v6112_v27  ;;  %v5509_v38 = vpop.xlane.xlu1 %5508 }
 0x4b9   :  { %v6280_v19 = vsel %vm11575_vm2, %v6117_v54, %v11046_v18  ;;  %v6259_v14 = vrot.slane %v5509_v38, %v9904_v6  ;;  %v6176_v18 = vsel %vm4443_vm11, %v6175_v22, %v6171_v51  ;;  %v5513_v6 = vpop.xlane.xlu0 %5512 }
 0x4ba   :  { %v6181_v40 = vsel %vm11576_vm3, %v6180_v30, %v6176_v18  ;;  %v6269_v53 = vrot.slane %v5513_v6, %v9929_v26 }
 0x4bb   :  { %v6260_v42 = vsel %vm11577_vm4, %v6259_v14, %v6255_v25  ;;  %v6186_v39 = vsel %vm4457_vm13, %v6185_v9, %v6181_v40 }
 0x4bc   :  { %v5481_v13 = vpop.xlane.xlu1 %5480  ;;  %v6265_v7 = vsel %vm4457_vm13, %v6264_v4, %v6260_v42 }
 0x4bd   :  { %v6190_v34 = vrot.slane %v5481_v13, %v9929_v26  ;;  %v6270_v44 = vsel %vm4464_vm14, %v6269_v53, %v6265_v7 }
 0x4bf   :  { %v6191_v47 = vsel %vm4464_vm14, %v6190_v34, %v6186_v39 }
 0x4c0   :  { %v5483_v32 = vpop.xlane.xlu1 %5482 }
 0x4c1   :  { %v6195_v41 = vrot.slane %v5483_v32, %v9941_v12 }
 0x4c3   :  { %v6196_v61 = vsel %vm4471_vm15, %v6195_v41, %v6191_v47 }
 0x4c4   :  { %v5515_v1 = vpop.xlane.xlu1 %5514  ;;  %v6281_v63 = vsel %vm11578_vm5, %v6196_v61, %v6280_v19 }
 0x4c5   :  { %v6274_v16 = vrot.slane %v5515_v1, %v9941_v12 }
 0x4c7   :  { %v6275_v2 = vsel %vm4471_vm15, %v6274_v16, %v6270_v44 }
 0x4c8   :  { %v6282_v10 = vsel %vm11579_vm6, %v6275_v2, %v6281_v63 }
 0x4c9   :  { %6284 = vst [vmem:[#allocation4] sm:$0xff] %v6282_v10 }
 0x4ca   :  { %7333 = shalt.err (!%p7330_p12)
}
 0x4cb   :  { %s7334_s13 = scalar_lea.hbm %s11199_s8, 128 }
 0x4cc   :  { %p7335_p13 = scmp.ne.s32.totalorder %s11199_s8, %s7334_s13  ;;  %p7338_p0 = scmp.lt.u32.totalorder %s7334_s13, %s11199_s8 }
 0x4ce   :  { %p7340_p1 = pnand %p7338_p0, %p7335_p13 }
 0x4d0   :  { %7343 = shalt.err (!%p7340_p1)
}
 0x4d1   :  { %6306 = dma.vmem_to_hbm [thread:$0]  %s6304_s9, 128, %s11199_s8, [#allocation5]  }
 0x4d2   :  { %7344 = dma.done.wait [#allocation3], 128  }
 0x4d3   :  { %7345 = vsyncadd [#allocation3], 4294967168 }
 0x4d4   :  { %7346 = dma.done.wait [#allocation5], 128  }
 0x4d5   :  { %7347 = vsyncadd [#allocation5], 4294967168 }
 0x4d6   :  { %6315 = vsyncpa [#allocation3], 1 }
 0x4d7   :  { %6316 = vsyncpa [#allocation5], 1 }

</bundles_post_ra>
